<compile_context>
chip_gen: v6e
topology: v6e:2x2x1
jax: 0.10.0
libtpu: 0.0.40
codegen_flags: <defaults>
</compile_context>

<pallas_src>
import jax
import jax.numpy as jnp
import numpy as np
from jax import lax
from jax.experimental import pallas as pl
from jax.experimental.pallas import tpu as pltpu  # noqa: F401  (TPU backend assumed)


def _proto_metric_kernel(q_ref, s_ref, o_ref):
    # q_ref: [Q, C, HW]   query feature maps (native NCHW, H*W merged)
    # s_ref: [S, C, HW]   support feature maps, S = way * shot (consecutive shots)
    # o_ref: [Q, way] f32 negative squared Euclidean distance to each prototype
    q = q_ref[...].astype(jnp.float32)
    s = s_ref[...].astype(jnp.float32)

    Q, C, HW = q.shape
    S = s.shape[0]
    way = o_ref.shape[1]
    shot = S // way

    # AdaptiveAvgPool2d(1): mean over the flattened spatial (lane/minor) axis.
    q_pool = jnp.sum(q, axis=2) * (1.0 / HW)            # [Q, C]
    s_pool = jnp.sum(s, axis=2)                          # [S, C]  (1/HW folded into G)

    # Shot-mean as a tiny MXU matmul with an iota-built group-selector matrix.
    # Equal group sizes -> mean-of-means == this fused weighted sum (exact).
    w_idx = lax.broadcasted_iota(jnp.int32, (way, S), 0)
    s_idx = lax.broadcasted_iota(jnp.int32, (way, S), 1)
    in_group = jnp.logical_and(s_idx >= w_idx * shot, s_idx < (w_idx + 1) * shot)
    G = jnp.where(in_group, 1.0 / (shot * HW), 0.0)      # [way, S]
    proto = jnp.dot(G, s_pool, preferred_element_type=jnp.float32)   # [way, C]

    # -||q - p||^2 = 2 q.p - ||q||^2 - ||p||^2 ; q.p runs on the MXU with C as
    # the contraction dim on both operands (no [Q, way, C] broadcast temp).
    qp = lax.dot_general(
        q_pool, proto,
        dimension_numbers=(((1,), (1,)), ((), ())),
        preferred_element_type=jnp.float32,
    )                                                    # [Q, way]
    q_sq = jnp.sum(q_pool * q_pool, axis=1, keepdims=True)   # [Q, 1]
    p_sq = jnp.sum(proto * proto, axis=1)[None, :]            # [1, way]
    o_ref[...] = 2.0 * qp - q_sq - p_sq


def prototype_metric(x1, x2, way_num=5):
    """x1: query images [Q, C, H, W]; x2: support set [way*shot, C, H, W]."""
    Q, C, H, W = x1.shape
    S = x2.shape[0]
    assert S % way_num == 0, "support count must be way_num * shot_num"
    HW = H * W

    # Free, contiguous reshapes only (merge H,W) — no wrapper transpose, so
    # each input crosses HBM exactly once.
    q3 = x1.reshape(Q, C, HW)
    s3 = x2.reshape(S, C, HW)

    flops = (
        Q * C * HW + S * C * HW           # spatial pooling sums
        + 2 * way_num * S * C             # group-mean matmul
        + 2 * Q * way_num * C             # distance matmul
        + 2 * (Q + way_num) * C           # squared norms
        + 3 * Q * way_num                 # final combine
    )
    bytes_accessed = (
        q3.size * q3.dtype.itemsize
        + s3.size * s3.dtype.itemsize
        + Q * way_num * 4
    )

    return pl.pallas_call(
        _proto_metric_kernel,
        out_shape=jax.ShapeDtypeStruct((Q, way_num), jnp.float32),
        in_specs=[
            pl.BlockSpec(q3.shape, lambda: (0, 0, 0)),
            pl.BlockSpec(s3.shape, lambda: (0, 0, 0)),
        ],
        out_specs=pl.BlockSpec((Q, way_num), lambda: (0, 0)),
        cost_estimate=pl.CostEstimate(
            flops=flops, transcendentals=0, bytes_accessed=bytes_accessed
        ),
    )(q3, s3)


def _reference(x1, x2, way_num=5):
    # Pure-JAX reference mirroring the PyTorch forward exactly.
    Q, C, H, W = x1.shape
    S = x2.shape[0]
    shot = S // way_num
    query = jnp.mean(x1.astype(jnp.float32), axis=(2, 3))                 # [Q, C]
    supp = jnp.mean(x2.astype(jnp.float32), axis=(2, 3)).reshape(way_num, shot, C)
    proto = jnp.mean(supp, axis=1)                                        # [way, C]
    return -jnp.sum((query[:, None, :] - proto[None, :, :]) ** 2, axis=-1)


if __name__ == "__main__":
    # Small few-shot sized inputs (5-way, 5-shot, C=64 features, 5x5 maps).
    way_num, shot_num = 5, 5
    Q, C, H, W = 15, 64, 5, 5

    key = jax.random.PRNGKey(0)
    k1, k2 = jax.random.split(key)
    x1 = jax.random.normal(k1, (Q, C, H, W), dtype=jnp.float32)
    x2 = jax.random.normal(k2, (way_num * shot_num, C, H, W), dtype=jnp.float32)

    out = prototype_metric(x1, x2, way_num=way_num)
    out = jax.block_until_ready(out)

    ref = _reference(x1, x2, way_num=way_num)
    # Slightly looser tolerance: the ||q||^2 + ||p||^2 - 2 q.p formulation has
    # mild cancellation vs. the direct (q-p)^2 sum.
    np.testing.assert_allclose(np.asarray(out), np.asarray(ref), rtol=1e-4, atol=1e-4)
    assert out.shape == (Q, way_num)

    print("KERNEL_OK")
</pallas_src>

<mosaic_0001>
module attributes {stable_mosaic.version = 11 : i64} {
  func.func @_proto_metric_kernel(%arg0: memref<15x64x25xf32, #tpu.memory_space<vmem>>, %arg1: memref<25x64x25xf32, #tpu.memory_space<vmem>>, %arg2: memref<15x5xf32, #tpu.memory_space<vmem>>) attributes {dimension_semantics = [], scalar_prefetch = 0 : i64, scratch_operands = 0 : i64, tpu.core_type = #tpu.core_type<tc>} {
    %c0 = arith.constant 0 : index
    %c0_0 = arith.constant 0 : index
    %c0_1 = arith.constant 0 : index
    %0 = vector.load %arg0[%c0, %c0_0, %c0_1] : memref<15x64x25xf32, #tpu.memory_space<vmem>>, vector<15x64x25xf32>
    %c0_2 = arith.constant 0 : index
    %c0_3 = arith.constant 0 : index
    %c0_4 = arith.constant 0 : index
    %1 = vector.load %arg1[%c0_2, %c0_3, %c0_4] : memref<25x64x25xf32, #tpu.memory_space<vmem>>, vector<25x64x25xf32>
    %cst = arith.constant dense<0.000000e+00> : vector<15x64xf32>
    %2 = vector.multi_reduction <add>, %0, %cst [2] : vector<15x64x25xf32> to vector<15x64xf32>
    %cst_5 = arith.constant 4.000000e-02 : f32
    %3 = vector.broadcast %cst_5 : f32 to vector<15x64xf32>
    %4 = arith.mulf %2, %3 : vector<15x64xf32>
    %cst_6 = arith.constant dense<0.000000e+00> : vector<25x64xf32>
    %5 = vector.multi_reduction <add>, %1, %cst_6 [2] : vector<25x64x25xf32> to vector<25x64xf32>
    %6 = tpu.iota {dimensions = array<i32: 0>} : vector<5x25xi32>
    %7 = tpu.iota {dimensions = array<i32: 1>} : vector<5x25xi32>
    %c5_i32 = arith.constant 5 : i32
    %8 = vector.broadcast %c5_i32 : i32 to vector<5x25xi32>
    %9 = arith.muli %6, %8 : vector<5x25xi32>
    %10 = arith.cmpi sge, %7, %9 : vector<5x25xi32>
    %c1_i32 = arith.constant 1 : i32
    %11 = vector.broadcast %c1_i32 : i32 to vector<5x25xi32>
    %12 = arith.addi %6, %11 : vector<5x25xi32>
    %c5_i32_7 = arith.constant 5 : i32
    %13 = vector.broadcast %c5_i32_7 : i32 to vector<5x25xi32>
    %14 = arith.muli %12, %13 : vector<5x25xi32>
    %15 = arith.cmpi slt, %7, %14 : vector<5x25xi32>
    %16 = arith.andi %10, %15 : vector<5x25xi1>
    %cst_8 = arith.constant 8.000000e-03 : f32
    %cst_9 = arith.constant 0.000000e+00 : f32
    %17 = vector.broadcast %cst_8 : f32 to vector<5x25xf32>
    %18 = vector.broadcast %cst_9 : f32 to vector<5x25xf32>
    %19 = arith.select %16, %17, %18 : vector<5x25xi1>, vector<5x25xf32>
    %cst_10 = arith.constant dense<0.000000e+00> : vector<5x64xf32>
    %20 = tpu.matmul %19, %5, %cst_10 {dimension_numbers = #tpu.dot_dimension_numbers<[1], [0], [0], [1], [0, 0, 1, 1], [], []>} : vector<5x25xf32>, vector<25x64xf32>, vector<5x64xf32> -> vector<5x64xf32>
    %cst_11 = arith.constant dense<0.000000e+00> : vector<15x5xf32>
    %21 = tpu.matmul %4, %20, %cst_11 {dimension_numbers = #tpu.dot_dimension_numbers<[1], [1], [0], [0], [0, 0, 1, 0], [], []>} : vector<15x64xf32>, vector<5x64xf32>, vector<15x5xf32> -> vector<15x5xf32>
    %22 = arith.mulf %4, %4 : vector<15x64xf32>
    %cst_12 = arith.constant dense<0.000000e+00> : vector<15xf32>
    %23 = vector.multi_reduction <add>, %22, %cst_12 [1] : vector<15x64xf32> to vector<15xf32>
    %24 = vector.shape_cast %23 : vector<15xf32> to vector<15x1xf32>
    %25 = arith.mulf %20, %20 : vector<5x64xf32>
    %cst_13 = arith.constant dense<0.000000e+00> : vector<5xf32>
    %26 = vector.multi_reduction <add>, %25, %cst_13 [1] : vector<5x64xf32> to vector<5xf32>
    %27 = vector.shape_cast %26 : vector<5xf32> to vector<1x5xf32>
    %cst_14 = arith.constant 2.000000e+00 : f32
    %28 = vector.broadcast %cst_14 : f32 to vector<15x5xf32>
    %29 = arith.mulf %28, %21 : vector<15x5xf32>
    %30 = vector.broadcast %24 : vector<15x1xf32> to vector<15x5xf32>
    %31 = arith.subf %29, %30 : vector<15x5xf32>
    %32 = vector.broadcast %27 : vector<1x5xf32> to vector<15x5xf32>
    %33 = arith.subf %31, %32 : vector<15x5xf32>
    %c0_15 = arith.constant 0 : index
    %c0_16 = arith.constant 0 : index
    %34 = vector.load %arg2[%c0_15, %c0_16] : memref<15x5xf32, #tpu.memory_space<vmem>>, vector<15x5xf32>
    tpu.vector_store %arg2[%c0_15, %c0_16], %33 {strides = array<i32>} : memref<15x5xf32, #tpu.memory_space<vmem>>, vector<15x5xf32>,
    return
  }
}

</mosaic_0001>

<bundles_post_ra>
// kernel: tpu_custom_call.1
= control target key start
LH: loop header
LB: loop body
LE: loop exit
PB: predicated region body
PF: predicated region fallthrough
CT: control target
= control target key end

     0   :  { %vm331_vm0 = vcmask 203776   ;;  %vm1632_vm1 = vcmask 130112   ;;  %vm1639_vm2 = vcmask 195712   ;;  %vm1646_vm3 = vcmask 261312   ;;  %s7336_s0 = inlined_call_operand.vmem [shape: f32[15,64,25], index: 0, kind: input, shape index: {}]   ;;  %s7337_s1 = inlined_call_operand.vmem [shape: f32[25,64,25], index: 1, kind: input, shape index: {}]   ;;  %s7338_s2 = inlined_call_operand.vmem [shape: f32[15,5], index: 2, kind: output, shape index: {}]  }
   0x1   :  { %v13_v0 = vld [vmem:[%s7336_s0 + $0x10] sm:$0xff]  ;;  %v11_v1 = vld [vmem:[%s7336_s0] sm:$0xff]  ;;  %v14_v2 = vld [vmem:[%s7336_s0 + $0x18] sm:$0xff]  ;;  %vm1653_vm4 = vcmask 326912   ;;  %vm1660_vm5 = vcmask 392512   ;;  %vm1667_vm6 = vcmask 458112  }
   0x2   :  { %v338_v3 = vsel %vm331_vm0, %v13_v0, 0.0  ;;  %v332_v4 = vsel %vm331_vm0, %v11_v1, 0.0  ;;  %v12_v5 = vld [vmem:[%s7336_s0 + $0x8] sm:$0xff]  ;;  %v341_v6 = vsel %vm331_vm0, %v14_v2, 0.0  ;;  %v15_v9 = vld [vmem:[%s7336_s0 + $0x20] sm:$0xff]  ;;  %v18_v12 = vld [vmem:[%s7336_s0 + $0x38] sm:$0xff] }
   0x3   :  { %339 = vadd.xlane.f32.xlu1 %v338_v3  ;;  %333 = vadd.xlane.f32.xlu0 %v332_v4  ;;  %v335_v7 = vsel %vm331_vm0, %v12_v5, 0.0  ;;  %v16_v8 = vld [vmem:[%s7336_s0 + $0x28] sm:$0xff]  ;;  %v344_v11 = vsel %vm331_vm0, %v15_v9, 0.0  ;;  %v17_v13 = vld [vmem:[%s7336_s0 + $0x30] sm:$0xff]  ;;  %v353_v14 = vsel %vm331_vm0, %v18_v12, 0.0  ;;  %v19_v17 = vld [vmem:[%s7336_s0 + $0x40] sm:$0xff] }
   0x4   :  { %v347_v10 = vsel %vm331_vm0, %v16_v8, 0.0  ;;  %v350_v15 = vsel %vm331_vm0, %v17_v13, 0.0  ;;  %v20_v16 = vld [vmem:[%s7336_s0 + $0x48] sm:$0xff]  ;;  %v356_v19 = vsel %vm331_vm0, %v19_v17, 0.0  ;;  %v22_v20 = vld [vmem:[%s7336_s0 + $0x58] sm:$0xff]  ;;  %v21_v21 = vld [vmem:[%s7336_s0 + $0x50] sm:$0xff] }
   0x5   :  { %v359_v18 = vsel %vm331_vm0, %v20_v16, 0.0  ;;  %v365_v22 = vsel %vm331_vm0, %v22_v20, 0.0  ;;  %v362_v23 = vsel %vm331_vm0, %v21_v21, 0.0  ;;  %v24_v24 = vld [vmem:[%s7336_s0 + $0x68] sm:$0xff]  ;;  %v23_v25 = vld [vmem:[%s7336_s0 + $0x60] sm:$0xff]  ;;  %v26_v28 = vld [vmem:[%s7336_s0 + $0x78] sm:$0xff] }
   0x6   :  { %v371_v26 = vsel %vm331_vm0, %v24_v24, 0.0  ;;  %v368_v27 = vsel %vm331_vm0, %v23_v25, 0.0  ;;  %v25_v29 = vld [vmem:[%s7336_s0 + $0x70] sm:$0xff]  ;;  %v377_v30 = vsel %vm331_vm0, %v26_v28, 0.0  ;;  %v28_v32 = vld [vmem:[%s7336_s0 + $0x88] sm:$0xff]  ;;  %v27_v33 = vld [vmem:[%s7336_s0 + $0x80] sm:$0xff] }
   0x7   :  { %342 = vadd.xlane.f32.xlu1 %v341_v6  ;;  %336 = vadd.xlane.f32.xlu0 %v335_v7  ;;  %v374_v31 = vsel %vm331_vm0, %v25_v29, 0.0  ;;  %v383_v34 = vsel %vm331_vm0, %v28_v32, 0.0  ;;  %v380_v35 = vsel %vm331_vm0, %v27_v33, 0.0  ;;  %v30_v36 = vld [vmem:[%s7336_s0 + $0x98] sm:$0xff]  ;;  %v29_v37 = vld [vmem:[%s7336_s0 + $0x90] sm:$0xff]  ;;  %v32_v40 = vld [vmem:[%s7336_s0 + $0xa8] sm:$0xff] }
   0x8   :  { %v389_v38 = vsel %vm331_vm0, %v30_v36, 0.0  ;;  %v386_v39 = vsel %vm331_vm0, %v29_v37, 0.0  ;;  %v31_v41 = vld [vmem:[%s7336_s0 + $0xa0] sm:$0xff]  ;;  %v395_v42 = vsel %vm331_vm0, %v32_v40, 0.0  ;;  %v34_v44 = vld [vmem:[%s7336_s0 + $0xb8] sm:$0xff]  ;;  %v33_v45 = vld [vmem:[%s7336_s0 + $0xb0] sm:$0xff] }
   0x9   :  { %v392_v43 = vsel %vm331_vm0, %v31_v41, 0.0  ;;  %v401_v46 = vsel %vm331_vm0, %v34_v44, 0.0  ;;  %v398_v47 = vsel %vm331_vm0, %v33_v45, 0.0  ;;  %v36_v48 = vld [vmem:[%s7336_s0 + $0xc8] sm:$0xff]  ;;  %v35_v49 = vld [vmem:[%s7336_s0 + $0xc0] sm:$0xff]  ;;  %v38_v52 = vld [vmem:[%s7336_s0 + $0xd8] sm:$0xff] }
   0xa   :  { %v407_v50 = vsel %vm331_vm0, %v36_v48, 0.0  ;;  %v404_v51 = vsel %vm331_vm0, %v35_v49, 0.0  ;;  %v37_v53 = vld [vmem:[%s7336_s0 + $0xd0] sm:$0xff]  ;;  %v413_v54 = vsel %vm331_vm0, %v38_v52, 0.0  ;;  %v40_v56 = vld [vmem:[%s7336_s0 + $0xe8] sm:$0xff]  ;;  %v39_v57 = vld [vmem:[%s7336_s0 + $0xe0] sm:$0xff] }
   0xb   :  { %348 = vadd.xlane.f32.xlu1 %v347_v10  ;;  %345 = vadd.xlane.f32.xlu0 %v344_v11  ;;  %v410_v55 = vsel %vm331_vm0, %v37_v53, 0.0  ;;  %v419_v58 = vsel %vm331_vm0, %v40_v56, 0.0  ;;  %v416_v59 = vsel %vm331_vm0, %v39_v57, 0.0  ;;  %v42_v60 = vld [vmem:[%s7336_s0 + $0xf8] sm:$0xff]  ;;  %v41_v61 = vld [vmem:[%s7336_s0 + $0xf0] sm:$0xff]  ;;  %v44_v0 = vld [vmem:[%s7336_s0 + $0x108] sm:$0xff] }
   0xc   :  { %v425_v62 = vsel %vm331_vm0, %v42_v60, 0.0  ;;  %v422_v63 = vsel %vm331_vm0, %v41_v61, 0.0  ;;  %v43_v1 = vld [vmem:[%s7336_s0 + $0x100] sm:$0xff]  ;;  %v431_v2 = vsel %vm331_vm0, %v44_v0, 0.0  ;;  %v46_v4 = vld [vmem:[%s7336_s0 + $0x118] sm:$0xff]  ;;  %v45_v5 = vld [vmem:[%s7336_s0 + $0x110] sm:$0xff] }
   0xd   :  { %v428_v3 = vsel %vm331_vm0, %v43_v1, 0.0  ;;  %v437_v6 = vsel %vm331_vm0, %v46_v4, 0.0  ;;  %v434_v7 = vsel %vm331_vm0, %v45_v5, 0.0  ;;  %v48_v8 = vld [vmem:[%s7336_s0 + $0x128] sm:$0xff]  ;;  %v47_v9 = vld [vmem:[%s7336_s0 + $0x120] sm:$0xff]  ;;  %v50_v12 = vld [vmem:[%s7336_s0 + $0x138] sm:$0xff] }
   0xe   :  { %v443_v10 = vsel %vm331_vm0, %v48_v8, 0.0  ;;  %v440_v11 = vsel %vm331_vm0, %v47_v9, 0.0  ;;  %v49_v13 = vld [vmem:[%s7336_s0 + $0x130] sm:$0xff]  ;;  %v52_v16 = vld [vmem:[%s7336_s0 + $0x148] sm:$0xff]  ;;  %v51_v17 = vld [vmem:[%s7336_s0 + $0x140] sm:$0xff]  ;;  %vm1674_vm7 = vcmask 523712  }
   0xf   :  { %354 = vadd.xlane.f32.xlu1 %v353_v14  ;;  %351 = vadd.xlane.f32.xlu0 %v350_v15  ;;  %v449_v14 = vsel %vm331_vm0, %v50_v12, 0.0  ;;  %v446_v15 = vsel %vm331_vm0, %v49_v13, 0.0  ;;  %v54_v20 = vld [vmem:[%s7336_s0 + $0x158] sm:$0xff]  ;;  %v53_v21 = vld [vmem:[%s7336_s0 + $0x150] sm:$0xff]  ;;  %v56_v24 = vld [vmem:[%s7336_s0 + $0x168] sm:$0xff]  ;;  %vm2612_vm8 = vcmask 1041409  }
  0x10   :  { %v55_v25 = vld [vmem:[%s7336_s0 + $0x160] sm:$0xff]  ;;  %v58_v28 = vld [vmem:[%s7336_s0 + $0x178] sm:$0xff]  ;;  %v57_v29 = vld [vmem:[%s7336_s0 + $0x170] sm:$0xff]  ;;  %vm2614_vm9 = vcmask 1042434   ;;  %vm2616_vm10 = vcmask 1043459   ;;  %vm2618_vm11 = vcmask 1044484  }
  0x11   :  { %v60_v32 = vld [vmem:[%s7336_s0 + $0x188] sm:$0xff]  ;;  %v59_v33 = vld [vmem:[%s7336_s0 + $0x180] sm:$0xff]  ;;  %v62_v36 = vld [vmem:[%s7336_s0 + $0x198] sm:$0xff]  ;;  %vm7341_vm12 = vcmask 1045509   ;;  %vm7342_vm13 = vcmask 1046534   ;;  %vm7339_vm14 = vcmask 1047559  }
  0x12   :  { %v61_v37 = vld [vmem:[%s7336_s0 + $0x190] sm:$0xff]  ;;  %v64_v40 = vld [vmem:[%s7336_s0 + $0x1a8] sm:$0xff]  ;;  %v63_v41 = vld [vmem:[%s7336_s0 + $0x1a0] sm:$0xff]  ;;  %vm7340_vm15 = vcmask 523264  }
  0x13   :  { %360 = vadd.xlane.f32.xlu1 %v359_v18  ;;  %357 = vadd.xlane.f32.xlu0 %v356_v19  ;;  %v455_v18 = vsel %vm331_vm0, %v52_v16, 0.0  ;;  %v452_v19 = vsel %vm331_vm0, %v51_v17, 0.0  ;;  %v66_v44 = vld [vmem:[%s7336_s0 + $0x1b8] sm:$0xff]  ;;  %v65_v45 = vld [vmem:[%s7336_s0 + $0x1b0] sm:$0xff]  ;;  %v68_v48 = vld [vmem:[%s7336_s0 + $0x1c8] sm:$0xff] }
  0x14   :  { %v67_v49 = vld [vmem:[%s7336_s0 + $0x1c0] sm:$0xff]  ;;  %v70_v52 = vld [vmem:[%s7336_s0 + $0x1d8] sm:$0xff]  ;;  %v69_v53 = vld [vmem:[%s7336_s0 + $0x1d0] sm:$0xff] }
  0x15   :  { %v72_v56 = vld [vmem:[%s7336_s0 + $0x1e8] sm:$0xff]  ;;  %v71_v57 = vld [vmem:[%s7336_s0 + $0x1e0] sm:$0xff]  ;;  %v74_v60 = vld [vmem:[%s7336_s0 + $0x1f8] sm:$0xff] }
  0x16   :  { %v73_v61 = vld [vmem:[%s7336_s0 + $0x1f0] sm:$0xff]  ;;  %v76_v0 = vld [vmem:[%s7336_s0 + $0x208] sm:$0xff]  ;;  %v75_v1 = vld [vmem:[%s7336_s0 + $0x200] sm:$0xff] }
  0x17   :  { %366 = vadd.xlane.f32.xlu1 %v365_v22  ;;  %363 = vadd.xlane.f32.xlu0 %v362_v23  ;;  %v461_v22 = vsel %vm331_vm0, %v54_v20, 0.0  ;;  %v458_v23 = vsel %vm331_vm0, %v53_v21, 0.0  ;;  %v78_v4 = vld [vmem:[%s7336_s0 + $0x218] sm:$0xff]  ;;  %v77_v5 = vld [vmem:[%s7336_s0 + $0x210] sm:$0xff]  ;;  %v80_v9 = vld [vmem:[%s7336_s0 + $0x228] sm:$0xff] }
  0x18   :  { %v530_v8 = vsel %vm331_vm0, %v77_v5, 0.0  ;;  %v539_v12 = vsel %vm331_vm0, %v80_v9, 0.0  ;;  %v84_v17 = vld [vmem:[%s7336_s0 + $0x248] sm:$0xff]  ;;  %v83_v21 = vld [vmem:[%s7336_s0 + $0x240] sm:$0xff] }
  0x1b   :  { %372 = vadd.xlane.f32.xlu1 %v371_v26  ;;  %369 = vadd.xlane.f32.xlu0 %v368_v27  ;;  %v467_v26 = vsel %vm331_vm0, %v56_v24, 0.0  ;;  %v464_v27 = vsel %vm331_vm0, %v55_v25, 0.0 }
  0x1f   :  { %378 = vadd.xlane.f32.xlu1 %v377_v30  ;;  %375 = vadd.xlane.f32.xlu0 %v374_v31  ;;  %v473_v30 = vsel %vm331_vm0, %v58_v28, 0.0  ;;  %v470_v31 = vsel %vm331_vm0, %v57_v29, 0.0  ;;  %v551_v28 = vsel %vm331_vm0, %v84_v17, 0.0 }
  0x23   :  { %384 = vadd.xlane.f32.xlu1 %v383_v34  ;;  %381 = vadd.xlane.f32.xlu0 %v380_v35  ;;  %v479_v34 = vsel %vm331_vm0, %v60_v32, 0.0  ;;  %v476_v35 = vsel %vm331_vm0, %v59_v33, 0.0  ;;  %v548_v33 = vsel %vm331_vm0, %v83_v21, 0.0 }
  0x27   :  { %390 = vadd.xlane.f32.xlu1 %v389_v38  ;;  %387 = vadd.xlane.f32.xlu0 %v386_v39  ;;  %v485_v38 = vsel %vm331_vm0, %v62_v36, 0.0  ;;  %v482_v39 = vsel %vm331_vm0, %v61_v37, 0.0 }
  0x2b   :  { %396 = vadd.xlane.f32.xlu1 %v395_v42  ;;  %393 = vadd.xlane.f32.xlu0 %v392_v43  ;;  %v491_v42 = vsel %vm331_vm0, %v64_v40, 0.0  ;;  %v488_v43 = vsel %vm331_vm0, %v63_v41, 0.0 }
  0x2f   :  { %402 = vadd.xlane.f32.xlu1 %v401_v46  ;;  %399 = vadd.xlane.f32.xlu0 %v398_v47  ;;  %v497_v46 = vsel %vm331_vm0, %v66_v44, 0.0  ;;  %v494_v47 = vsel %vm331_vm0, %v65_v45, 0.0 }
  0x33   :  { %408 = vadd.xlane.f32.xlu1 %v407_v50  ;;  %405 = vadd.xlane.f32.xlu0 %v404_v51  ;;  %v503_v50 = vsel %vm331_vm0, %v68_v48, 0.0  ;;  %v500_v51 = vsel %vm331_vm0, %v67_v49, 0.0  ;;  %v88_v48 = vld [vmem:[%s7336_s0 + $0x268] sm:$0xff] }
  0x37   :  { %414 = vadd.xlane.f32.xlu1 %v413_v54  ;;  %411 = vadd.xlane.f32.xlu0 %v410_v55  ;;  %v509_v54 = vsel %vm331_vm0, %v70_v52, 0.0  ;;  %v506_v55 = vsel %vm331_vm0, %v69_v53, 0.0 }
  0x3b   :  { %420 = vadd.xlane.f32.xlu1 %v419_v58  ;;  %417 = vadd.xlane.f32.xlu0 %v416_v59  ;;  %v515_v58 = vsel %vm331_vm0, %v72_v56, 0.0  ;;  %v512_v59 = vsel %vm331_vm0, %v71_v57, 0.0 }
  0x3f   :  { %426 = vadd.xlane.f32.xlu1 %v425_v62  ;;  %423 = vadd.xlane.f32.xlu0 %v422_v63  ;;  %v521_v62 = vsel %vm331_vm0, %v74_v60, 0.0  ;;  %v518_v63 = vsel %vm331_vm0, %v73_v61, 0.0  ;;  %v563_v61 = vsel %vm331_vm0, %v88_v48, 0.0  ;;  %v260_v48 = vld [vmem:[%s7337_s1 + $0x408] sm:$0xff] }
  0x43   :  { %432 = vadd.xlane.f32.xlu1 %v431_v2  ;;  %429 = vadd.xlane.f32.xlu0 %v428_v3  ;;  %v527_v2 = vsel %vm331_vm0, %v76_v0, 0.0  ;;  %v524_v3 = vsel %vm331_vm0, %v75_v1, 0.0 }
  0x47   :  { %438 = vadd.xlane.f32.xlu1 %v437_v6  ;;  %435 = vadd.xlane.f32.xlu0 %v434_v7  ;;  %v1412_v6 = vlaneseq  ;;  %v533_v7 = vsel %vm331_vm0, %v78_v4, 0.0 }
  0x49   :  { %v4735_v16 = vshrl.u32 %v1412_v6, 7 }
  0x4b   :  { %444 = vadd.xlane.f32.xlu1 %v443_v10  ;;  %441 = vadd.xlane.f32.xlu0 %v440_v11  ;;  %v79_v10 = vld [vmem:[%s7336_s0 + $0x220] sm:$0xff]  ;;  %v4725_v11 = vand.u32 127, %v1412_v6 }
  0x4c   :  { %v536_v13 = vsel %vm331_vm0, %v79_v10, 0.0 }
  0x4d   :  { %v1627_v20 = vadd.s32 4294967288, %v4725_v11  ;;  %v1648_v29 = vadd.s32 4294967264, %v4725_v11  ;;  %v4756_v32 = vsub.s32 %v4725_v11, %v4735_v16 }
  0x4f   :  { %450 = vadd.xlane.f32.xlu1 %v449_v14  ;;  %447 = vadd.xlane.f32.xlu0 %v446_v15  ;;  %v82_v14 = vld [vmem:[%s7336_s0 + $0x238] sm:$0xff]  ;;  %v81_v15 = vld [vmem:[%s7336_s0 + $0x230] sm:$0xff]  ;;  %v4769_v37 = vsub.s32 %v1627_v20, %v4735_v16 }
  0x50   :  { %v545_v24 = vsel %vm331_vm0, %v82_v14, 0.0  ;;  %v542_v25 = vsel %vm331_vm0, %v81_v15, 0.0 }
  0x53   :  { %456 = vadd.xlane.f32.xlu1 %v455_v18  ;;  %453 = vadd.xlane.f32.xlu0 %v452_v19  ;;  %v1634_v18 = vadd.s32 4294967280, %v4725_v11  ;;  %v1641_v19 = vadd.s32 4294967272, %v4725_v11 }
  0x55   :  { %v4766_v36 = vsub.s32 %v1641_v19, %v4735_v16 }
  0x57   :  { %462 = vadd.xlane.f32.xlu1 %v461_v22  ;;  %459 = vadd.xlane.f32.xlu0 %v458_v23 }
  0x5b   :  { %468 = vadd.xlane.f32.xlu1 %v467_v26  ;;  %465 = vadd.xlane.f32.xlu0 %v464_v27  ;;  %v1655_v26 = vadd.s32 4294967256, %v4725_v11 }
  0x5d   :  { %v4772_v41 = vsub.s32 %v1655_v26, %v4735_v16 }
  0x5f   :  { %474 = vadd.xlane.f32.xlu1 %v473_v30  ;;  %471 = vadd.xlane.f32.xlu0 %v470_v31  ;;  %v86_v30 = vld [vmem:[%s7336_s0 + $0x258] sm:$0xff] }
  0x63   :  { %480 = vadd.xlane.f32.xlu1 %v479_v34  ;;  %477 = vadd.xlane.f32.xlu0 %v476_v35  ;;  %v85_v34 = vld [vmem:[%s7336_s0 + $0x250] sm:$0xff]  ;;  %v4763_v35 = vsub.s32 %v1634_v18, %v4735_v16 }
  0x67   :  { %486 = vadd.xlane.f32.xlu1 %v485_v38  ;;  %483 = vadd.xlane.f32.xlu0 %v482_v39 }
  0x6b   :  { %492 = vadd.xlane.f32.xlu1 %v491_v42  ;;  %489 = vadd.xlane.f32.xlu0 %v488_v43  ;;  %v557_v42 = vsel %vm331_vm0, %v86_v30, 0.0  ;;  %v1669_v43 = vadd.s32 4294967240, %v4725_v11 }
  0x6d   :  { %v4790_v60 = vsub.s32 %v1669_v43, %v4735_v16 }
  0x6f   :  { %498 = vadd.xlane.f32.xlu1 %v497_v46  ;;  %495 = vadd.xlane.f32.xlu0 %v494_v47  ;;  %v4777_v46 = vsub.s32 %v1648_v29, %v4735_v16  ;;  %v554_v47 = vsel %vm331_vm0, %v85_v34, 0.0 }
  0x73   :  { %504 = vadd.xlane.f32.xlu1 %v503_v50  ;;  %501 = vadd.xlane.f32.xlu0 %v500_v51  ;;  %v1662_v51 = vadd.s32 4294967248, %v4725_v11 }
  0x75   :  { %v4802_v6 = vsub.s32 %v1662_v51, %v4735_v16 }
  0x77   :  { %510 = vadd.xlane.f32.xlu1 %v509_v54  ;;  %507 = vadd.xlane.f32.xlu0 %v506_v55 }
  0x7b   :  { %516 = vadd.xlane.f32.xlu1 %v515_v58  ;;  %513 = vadd.xlane.f32.xlu0 %v512_v59 }
  0x7f   :  { %522 = vadd.xlane.f32.xlu1 %v521_v62  ;;  %519 = vadd.xlane.f32.xlu0 %v518_v63 }
  0x83   :  { %528 = vadd.xlane.f32.xlu1 %v527_v2  ;;  %525 = vadd.xlane.f32.xlu0 %v524_v3  ;;  %v87_v2 = vld [vmem:[%s7336_s0 + $0x260] sm:$0xff] }
  0x84   :  { %v560_v18 = vsel %vm331_vm0, %v87_v2, 0.0  ;;  %v261_v2 = vld [vmem:[%s7337_s1 + $0x410] sm:$0xff] }
  0x87   :  { %534 = vadd.xlane.f32.xlu1 %v533_v7  ;;  %531 = vadd.xlane.f32.xlu0 %v530_v8 }
  0x8b   :  { %540 = vadd.xlane.f32.xlu1 %v539_v12  ;;  %537 = vadd.xlane.f32.xlu0 %v536_v13 }
  0x8c   :  { %v340_v22 = vpop.xlane.xlu1 %339  ;;  %v334_v23 = vpop.xlane.xlu0 %333 }
  0x8d   :  { %v692_v27 = vmul.f32 0.04, %v334_v23  ;;  %v694_v31 = vmul.f32 0.04, %v340_v22  ;;  %v259_v23 = vld [vmem:[%s7337_s1 + $0x400] sm:$0xff] }
  0x8f   :  { %546 = vadd.xlane.f32.xlu1 %v545_v24  ;;  %v3520_v38 = vmul.f32 %v692_v27, %v692_v27  ;;  %543 = vadd.xlane.f32.xlu0 %v542_v25  ;;  %v3522_v49 = vmul.f32 %v694_v31, %v694_v31  ;;  %v2842_v50 = vrot.slane %v692_v27, %v4756_v32  ;;  %v89_v24 = vld [vmem:[%s7336_s0 + $0x270] sm:$0xff] }
  0x90   :  { %v343_v39 = vpop.xlane.xlu1 %342  ;;  %v337_v40 = vpop.xlane.xlu0 %336  ;;  %v2851_v56 = vrot.slane %v694_v31, %v4763_v35 }
  0x91   :  { %v695_v44 = vmul.f32 0.04, %v343_v39  ;;  %v693_v45 = vmul.f32 0.04, %v337_v40  ;;  %v3763_v57 = vrot.slane %v3520_v38, %v4756_v32  ;;  %v3772_v3 = vrot.slane %v3522_v49, %v4763_v35 }
  0x92   :  { %v1196_v39 = vsel %vm331_vm0, %v259_v23, 0.0  ;;  %v566_v40 = vsel %vm331_vm0, %v89_v24, 0.0  ;;  %v269_v23 = vld [vmem:[%s7337_s1 + $0x450] sm:$0xff] }
  0x93   :  { %v2856_v52 = vrot.slane %v695_v44, %v4766_v36  ;;  %v3523_v53 = vmul.f32 %v695_v44, %v695_v44  ;;  %v2846_v54 = vrot.slane %v693_v45, %v4769_v37  ;;  %v3521_v55 = vmul.f32 %v693_v45, %v693_v45  ;;  %552 = vadd.xlane.f32.xlu1 %v551_v28 }
  0x94   :  { %549 = vadd.xlane.f32.xlu0 %v548_v33  ;;  %v349_v58 = vpop.xlane.xlu1 %348  ;;  %v346_v59 = vpop.xlane.xlu0 %345 }
  0x95   :  { %v3777_v62 = vrot.slane %v3523_v53, %v4766_v36  ;;  %v2847_v63 = vsel %vm1632_vm1, %v2846_v54, %v2842_v50  ;;  %v3767_v0 = vrot.slane %v3521_v55, %v4769_v37  ;;  %v697_v1 = vmul.f32 0.04, %v349_v58 }
  0x96   :  { %v2852_v4 = vsel %vm1639_vm2, %v2851_v56, %v2847_v63  ;;  %v696_v5 = vmul.f32 0.04, %v346_v59 }
  0x97   :  { %v3768_v7 = vsel %vm1632_vm1, %v3767_v0, %v3763_v57  ;;  %v2866_v8 = vrot.slane %v697_v1, %v4772_v41  ;;  %v3525_v9 = vmul.f32 %v697_v1, %v697_v1  ;;  %v2857_v10 = vsel %vm1646_vm3, %v2856_v52, %v2852_v4  ;;  %558 = vadd.xlane.f32.xlu1 %v557_v42  ;;  %v267_v42 = vld [vmem:[%s7337_s1 + $0x440] sm:$0xff] }
  0x98   :  { %v3773_v12 = vsel %vm1639_vm2, %v3772_v3, %v3768_v7  ;;  %v2861_v13 = vrot.slane %v696_v5, %v4777_v46  ;;  %v3524_v14 = vmul.f32 %v696_v5, %v696_v5  ;;  %555 = vadd.xlane.f32.xlu0 %v554_v47  ;;  %v355_v15 = vpop.xlane.xlu1 %354  ;;  %v352_v17 = vpop.xlane.xlu0 %351  ;;  %v1220_v54 = vsel %vm331_vm0, %v267_v42, 0.0  ;;  %v268_v3 = vld [vmem:[%s7337_s1 + $0x448] sm:$0xff] }
  0x99   :  { %v3787_v19 = vrot.slane %v3525_v9, %v4772_v41  ;;  %v3778_v20 = vsel %vm1646_vm3, %v3777_v62, %v3773_v12  ;;  %v699_v21 = vmul.f32 0.04, %v355_v15  ;;  %v698_v22 = vmul.f32 0.04, %v352_v17 }
  0x9a   :  { %v2862_v25 = vsel %vm1653_vm4, %v2861_v13, %v2857_v10  ;;  %v3782_v26 = vrot.slane %v3524_v14, %v4777_v46  ;;  %v1202_v15 = vsel %vm331_vm0, %v261_v2, 0.0  ;;  %v1223_v17 = vsel %vm331_vm0, %v268_v3, 0.0  ;;  %v196_v3 = vld [vmem:[%s7337_s1 + $0x208] sm:$0xff] }
  0x9b   :  { %v2876_v27 = vrot.slane %v699_v21, %v4790_v60  ;;  %v3527_v28 = vmul.f32 %v699_v21, %v699_v21  ;;  %v2867_v29 = vsel %vm1660_vm5, %v2866_v8, %v2862_v25  ;;  %v2871_v30 = vrot.slane %v698_v22, %v4802_v6  ;;  %564 = vadd.xlane.f32.xlu1 %v563_v61 }
  0x9c   :  { %v3783_v31 = vsel %vm1653_vm4, %v3782_v26, %v3778_v20  ;;  %v3526_v33 = vmul.f32 %v698_v22, %v698_v22  ;;  %561 = vadd.xlane.f32.xlu0 %v560_v18  ;;  %v361_v34 = vpop.xlane.xlu1 %360  ;;  %v358_v38 = vpop.xlane.xlu0 %357  ;;  %v1199_v61 = vsel %vm331_vm0, %v260_v48, 0.0  ;;  %v275_v18 = vld [vmem:[%s7337_s1 + $0x480] sm:$0xff] }
  0x9d   :  { %v3797_v43 = vrot.slane %v3527_v28, %v4790_v60  ;;  %v3788_v44 = vsel %vm1660_vm5, %v3787_v19, %v3783_v31  ;;  %v2872_v45 = vsel %vm1667_vm6, %v2871_v30, %v2867_v29  ;;  %v701_v47 = vmul.f32 0.04, %v361_v34 }
  0x9e   :  { %v4836_v49 = vsel %vm1674_vm7, %v2876_v27, %v2872_v45  ;;  %v3792_v50 = vrot.slane %v3526_v33, %v4802_v6  ;;  %v700_v51 = vmul.f32 0.04, %v358_v38  ;;  %v1244_v29 = vsel %vm331_vm0, %v275_v18, 0.0  ;;  %v276_v45 = vld [vmem:[%s7337_s1 + $0x488] sm:$0xff] }
  0x9f   :  { %v2885_v52 = vrot.slane %v701_v47, %v4769_v37  ;;  %v3529_v53 = vmul.f32 %v701_v47, %v701_v47  ;;  %1197 = vadd.xlane.f32.xlu1 %v1196_v39  ;;  %v1226_v39 = vsel %vm331_vm0, %v269_v23, 0.0  ;;  %v262_v23 = vld [vmem:[%s7337_s1 + $0x418] sm:$0xff] }
  0xa0   :  { %v3793_v55 = vsel %vm1667_vm6, %v3792_v50, %v3788_v44  ;;  %v2881_v56 = vrot.slane %v700_v51, %v4756_v32  ;;  %v3528_v57 = vmul.f32 %v700_v51, %v700_v51  ;;  %567 = vadd.xlane.f32.xlu0 %v566_v40  ;;  %v367_v58 = vpop.xlane.xlu1 %366  ;;  %v364_v59 = vpop.xlane.xlu0 %363  ;;  %v195_v44 = vld [vmem:[%s7337_s1 + $0x200] sm:$0xff] }
  0xa1   :  { %v4845_v62 = vsel %vm1674_vm7, %v3797_v43, %v3793_v55  ;;  %v3806_v63 = vrot.slane %v3529_v53, %v4769_v37  ;;  %v703_v0 = vmul.f32 0.04, %v367_v58  ;;  %v702_v1 = vmul.f32 0.04, %v364_v59 }
  0xa2   :  { %v2886_v4 = vsel %vm1632_vm1, %v2885_v52, %v2881_v56  ;;  %v3802_v5 = vrot.slane %v3528_v57, %v4756_v32  ;;  %v1004_v58 = vsel %vm331_vm0, %v195_v44, 0.0  ;;  %v1247_v59 = vsel %vm331_vm0, %v276_v45, 0.0  ;;  %v277_v45 = vld [vmem:[%s7337_s1 + $0x490] sm:$0xff] }
  0xa3   :  { %v2895_v7 = vrot.slane %v703_v0, %v4766_v36  ;;  %v3531_v8 = vmul.f32 %v703_v0, %v703_v0  ;;  %v2890_v9 = vrot.slane %v702_v1, %v4763_v35  ;;  %v3530_v10 = vmul.f32 %v702_v1, %v702_v1  ;;  %1221 = vadd.xlane.f32.xlu1 %v1220_v54 }
  0xa4   :  { %v3807_v12 = vsel %vm1632_vm1, %v3806_v63, %v3802_v5  ;;  %1200 = vadd.xlane.f32.xlu0 %v1199_v61  ;;  %v373_v13 = vpop.xlane.xlu1 %372  ;;  %v370_v14 = vpop.xlane.xlu0 %369  ;;  %v203_v61 = vld [vmem:[%s7337_s1 + $0x240] sm:$0xff] }
  0xa5   :  { %v3816_v19 = vrot.slane %v3531_v8, %v4766_v36  ;;  %v2891_v20 = vsel %vm1639_vm2, %v2890_v9, %v2886_v4  ;;  %v3811_v21 = vrot.slane %v3530_v10, %v4763_v35  ;;  %v705_v22 = vmul.f32 0.04, %v373_v13 }
  0xa6   :  { %v2896_v24 = vsel %vm1646_vm3, %v2895_v7, %v2891_v20  ;;  %v704_v25 = vmul.f32 0.04, %v370_v14 }
  0xa7   :  { %v3812_v26 = vsel %vm1639_vm2, %v3811_v21, %v3807_v12  ;;  %v2905_v27 = vrot.slane %v705_v22, %v4772_v41  ;;  %v3533_v28 = vmul.f32 %v705_v22, %v705_v22  ;;  %1203 = vadd.xlane.f32.xlu1 %v1202_v15  ;;  %v1028_v12 = vsel %vm331_vm0, %v203_v61, 0.0 }
  0xa8   :  { %v3817_v30 = vsel %vm1646_vm3, %v3816_v19, %v3812_v26  ;;  %v2900_v31 = vrot.slane %v704_v25, %v4777_v46  ;;  %v3532_v33 = vmul.f32 %v704_v25, %v704_v25  ;;  %1224 = vadd.xlane.f32.xlu0 %v1223_v17  ;;  %v379_v34 = vpop.xlane.xlu1 %378  ;;  %v376_v38 = vpop.xlane.xlu0 %375  ;;  %v1007_v19 = vsel %vm331_vm0, %v196_v3, 0.0  ;;  %v283_v3 = vld [vmem:[%s7337_s1 + $0x4c0] sm:$0xff] }
  0xa9   :  { %v3826_v40 = vrot.slane %v3533_v28, %v4772_v41  ;;  %v707_v42 = vmul.f32 0.04, %v379_v34  ;;  %v706_v43 = vmul.f32 0.04, %v376_v38  ;;  %v1250_v61 = vsel %vm331_vm0, %v277_v45, 0.0 }
  0xaa   :  { %v2901_v47 = vsel %vm1653_vm4, %v2900_v31, %v2896_v24  ;;  %v3821_v48 = vrot.slane %v3532_v33, %v4777_v46  ;;  %v204_v24 = vld [vmem:[%s7337_s1 + $0x248] sm:$0xff] }
  0xab   :  { %v2915_v50 = vrot.slane %v707_v42, %v4790_v60  ;;  %v3535_v51 = vmul.f32 %v707_v42, %v707_v42  ;;  %v2906_v52 = vsel %vm1660_vm5, %v2905_v27, %v2901_v47  ;;  %v2910_v53 = vrot.slane %v706_v43, %v4802_v6  ;;  %1245 = vadd.xlane.f32.xlu1 %v1244_v29 }
  0xac   :  { %v3822_v54 = vsel %vm1653_vm4, %v3821_v48, %v3817_v30  ;;  %v3534_v55 = vmul.f32 %v706_v43, %v706_v43  ;;  %1227 = vadd.xlane.f32.xlu0 %v1226_v39  ;;  %v385_v56 = vpop.xlane.xlu1 %384  ;;  %v382_v57 = vpop.xlane.xlu0 %381  ;;  %v1205_v39 = vsel %vm331_vm0, %v262_v23, 0.0 }
  0xad   :  { %v3836_v63 = vrot.slane %v3535_v51, %v4790_v60  ;;  %v3827_v0 = vsel %vm1660_vm5, %v3826_v40, %v3822_v54  ;;  %v2911_v1 = vsel %vm1667_vm6, %v2910_v53, %v2906_v52  ;;  %v709_v2 = vmul.f32 0.04, %v385_v56  ;;  %v284_v54 = vld [vmem:[%s7337_s1 + $0x4c8] sm:$0xff] }
  0xae   :  { %v2916_v4 = vsel %vm1674_vm7, %v2915_v50, %v2911_v1  ;;  %v3831_v5 = vrot.slane %v3534_v55, %v4802_v6  ;;  %v708_v7 = vmul.f32 0.04, %v382_v57  ;;  %v270_v50 = vld [vmem:[%s7337_s1 + $0x458] sm:$0xff] }
  0xaf   :  { %v4905_v8 = vsel %vm2612_vm8, %v2916_v4, %v4836_v49  ;;  %v2924_v9 = vrot.slane %v709_v2, %v4769_v37  ;;  %v3537_v10 = vmul.f32 %v709_v2, %v709_v2  ;;  %1005 = vadd.xlane.f32.xlu1 %v1004_v58  ;;  %v1229_v2 = vsel %vm331_vm0, %v270_v50, 0.0 }
  0xb0   :  { %v3832_v13 = vsel %vm1667_vm6, %v3831_v5, %v3827_v0  ;;  %v2920_v14 = vrot.slane %v708_v7, %v4756_v32  ;;  %v3536_v15 = vmul.f32 %v708_v7, %v708_v7  ;;  %1248 = vadd.xlane.f32.xlu0 %v1247_v59  ;;  %v391_v17 = vpop.xlane.xlu1 %390  ;;  %v388_v18 = vpop.xlane.xlu0 %387  ;;  %v1271_v7 = vsel %vm331_vm0, %v284_v54, 0.0 }
  0xb1   :  { %v3837_v20 = vsel %vm1674_vm7, %v3836_v63, %v3832_v13  ;;  %v3845_v49 = vrot.slane %v3537_v10, %v4769_v37  ;;  %v711_v21 = vmul.f32 0.04, %v391_v17  ;;  %v710_v22 = vmul.f32 0.04, %v388_v18 }
  0xb2   :  { %v4922_v25 = vsel %vm2612_vm8, %v3837_v20, %v4845_v62  ;;  %v2925_v26 = vsel %vm1632_vm1, %v2924_v9, %v2920_v14  ;;  %v3841_v27 = vrot.slane %v3536_v15, %v4756_v32  ;;  %v1031_v62 = vsel %vm331_vm0, %v204_v24, 0.0  ;;  %v205_v20 = vld [vmem:[%s7337_s1 + $0x250] sm:$0xff] }
  0xb3   :  { %v2934_v28 = vrot.slane %v711_v21, %v4766_v36  ;;  %v3539_v29 = vmul.f32 %v711_v21, %v711_v21  ;;  %v2929_v30 = vrot.slane %v710_v22, %v4763_v35  ;;  %v3538_v31 = vmul.f32 %v710_v22, %v710_v22  ;;  %1029 = vadd.xlane.f32.xlu1 %v1028_v12  ;;  %v197_v24 = vld [vmem:[%s7337_s1 + $0x210] sm:$0xff] }
  0xb4   :  { %v3846_v33 = vsel %vm1632_vm1, %v3845_v49, %v3841_v27  ;;  %1008 = vadd.xlane.f32.xlu0 %v1007_v19  ;;  %v397_v34 = vpop.xlane.xlu1 %396  ;;  %v394_v38 = vpop.xlane.xlu0 %393  ;;  %v1268_v19 = vsel %vm331_vm0, %v283_v3, 0.0 }
  0xb5   :  { %v3855_v40 = vrot.slane %v3539_v29, %v4766_v36  ;;  %v2930_v42 = vsel %vm1639_vm2, %v2929_v30, %v2925_v26  ;;  %v3850_v43 = vrot.slane %v3538_v31, %v4763_v35  ;;  %v713_v44 = vmul.f32 0.04, %v397_v34 }
  0xb6   :  { %v2935_v47 = vsel %vm1646_vm3, %v2934_v28, %v2930_v42  ;;  %v712_v48 = vmul.f32 0.04, %v394_v38  ;;  %v1034_v31 = vsel %vm331_vm0, %v205_v20, 0.0  ;;  %v1010_v42 = vsel %vm331_vm0, %v197_v24, 0.0  ;;  %v278_v24 = vld [vmem:[%s7337_s1 + $0x498] sm:$0xff] }
  0xb7   :  { %v3851_v51 = vsel %vm1639_vm2, %v3850_v43, %v3846_v33  ;;  %v2944_v52 = vrot.slane %v713_v44, %v4772_v41  ;;  %v3541_v53 = vmul.f32 %v713_v44, %v713_v44  ;;  %1206 = vadd.xlane.f32.xlu1 %v1205_v39 }
  0xb8   :  { %v3856_v55 = vsel %vm1646_vm3, %v3855_v40, %v3851_v51  ;;  %v2939_v56 = vrot.slane %v712_v48, %v4777_v46  ;;  %v3540_v57 = vmul.f32 %v712_v48, %v712_v48  ;;  %1032 = vadd.xlane.f32.xlu0 %v1031_v62  ;;  %v403_v58 = vpop.xlane.xlu1 %402  ;;  %v400_v59 = vpop.xlane.xlu0 %399  ;;  %v211_v48 = vld [vmem:[%s7337_s1 + $0x280] sm:$0xff] }
  0xb9   :  { %v3865_v63 = vrot.slane %v3541_v53, %v4772_v41  ;;  %v715_v0 = vmul.f32 0.04, %v403_v58  ;;  %v714_v1 = vmul.f32 0.04, %v400_v59 }
  0xba   :  { %v2940_v4 = vsel %vm1653_vm4, %v2939_v56, %v2935_v47  ;;  %v3860_v5 = vrot.slane %v3540_v57, %v4777_v46 }
  0xbb   :  { %v2954_v9 = vrot.slane %v715_v0, %v4790_v60  ;;  %v3543_v10 = vmul.f32 %v715_v0, %v715_v0  ;;  %v2945_v12 = vsel %vm1660_vm5, %v2944_v52, %v2940_v4  ;;  %v2949_v13 = vrot.slane %v714_v1, %v4802_v6  ;;  %1251 = vadd.xlane.f32.xlu1 %v1250_v61  ;;  %v271_v4 = vld [vmem:[%s7337_s1 + $0x460] sm:$0xff] }
  0xbc   :  { %v3861_v14 = vsel %vm1653_vm4, %v3860_v5, %v3856_v55  ;;  %v3542_v15 = vmul.f32 %v714_v1, %v714_v1  ;;  %1230 = vadd.xlane.f32.xlu0 %v1229_v2  ;;  %v409_v17 = vpop.xlane.xlu1 %408  ;;  %v406_v18 = vpop.xlane.xlu0 %405  ;;  %v1052_v61 = vsel %vm331_vm0, %v211_v48, 0.0  ;;  %v1232_v20 = vsel %vm331_vm0, %v271_v4, 0.0  ;;  %v291_v48 = vld [vmem:[%s7337_s1 + $0x500] sm:$0xff] }
  0xbd   :  { %v3875_v49 = vrot.slane %v3543_v10, %v4790_v60  ;;  %v3866_v21 = vsel %vm1660_vm5, %v3865_v63, %v3861_v14  ;;  %v2950_v22 = vsel %vm1667_vm6, %v2949_v13, %v2945_v12  ;;  %v717_v23 = vmul.f32 0.04, %v409_v17  ;;  %v285_v13 = vld [vmem:[%s7337_s1 + $0x4d0] sm:$0xff] }
  0xbe   :  { %v2955_v26 = vsel %vm1674_vm7, %v2954_v9, %v2950_v22  ;;  %v3870_v27 = vrot.slane %v3542_v15, %v4802_v6  ;;  %v716_v28 = vmul.f32 0.04, %v406_v18  ;;  %v263_v9 = vld [vmem:[%s7337_s1 + $0x420] sm:$0xff] }
  0xbf   :  { %v2963_v29 = vrot.slane %v717_v23, %v4769_v37  ;;  %v3545_v30 = vmul.f32 %v717_v23, %v717_v23  ;;  %1272 = vadd.xlane.f32.xlu1 %v1271_v7  ;;  %v4977_v33 = vsel %vm2614_vm9, %v2955_v26, %v4905_v8  ;;  %v212_v8 = vld [vmem:[%s7337_s1 + $0x288] sm:$0xff]  ;;  %v1208_v23 = vsel %vm331_vm0, %v263_v9, 0.0 }
  0xc0   :  { %v3871_v34 = vsel %vm1667_vm6, %v3870_v27, %v3866_v21  ;;  %v2959_v38 = vrot.slane %v716_v28, %v4756_v32  ;;  %v3544_v39 = vmul.f32 %v716_v28, %v716_v28  ;;  %1269 = vadd.xlane.f32.xlu0 %v1268_v19  ;;  %v415_v62 = vpop.xlane.xlu1 %414  ;;  %v412_v40 = vpop.xlane.xlu0 %411  ;;  %v1055_v59 = vsel %vm331_vm0, %v212_v8, 0.0  ;;  %v292_v8 = vld [vmem:[%s7337_s1 + $0x508] sm:$0xff] }
  0xc1   :  { %v3876_v43 = vsel %vm1674_vm7, %v3875_v49, %v3871_v34  ;;  %v3884_v44 = vrot.slane %v3545_v30, %v4769_v37  ;;  %v719_v45 = vmul.f32 0.04, %v415_v62  ;;  %v718_v47 = vmul.f32 0.04, %v412_v40 }
  0xc2   :  { %v2964_v50 = vsel %vm1632_vm1, %v2963_v29, %v2959_v38  ;;  %v3880_v51 = vrot.slane %v3544_v39, %v4756_v32  ;;  %v4999_v63 = vsel %vm2614_vm9, %v3876_v43, %v4922_v25  ;;  %v1274_v28 = vsel %vm331_vm0, %v285_v13, 0.0 }
  0xc3   :  { %v2973_v52 = vrot.slane %v719_v45, %v4766_v36  ;;  %v3547_v53 = vmul.f32 %v719_v45, %v719_v45  ;;  %v2968_v54 = vrot.slane %v718_v47, %v4763_v35  ;;  %v3546_v55 = vmul.f32 %v718_v47, %v718_v47  ;;  %1035 = vadd.xlane.f32.xlu1 %v1034_v31 }
  0xc4   :  { %v3885_v56 = vsel %vm1632_vm1, %v3884_v44, %v3880_v51  ;;  %1011 = vadd.xlane.f32.xlu0 %v1010_v42  ;;  %v421_v57 = vpop.xlane.xlu1 %420  ;;  %v418_v58 = vpop.xlane.xlu0 %417  ;;  %v1253_v42 = vsel %vm331_vm0, %v278_v24, 0.0 }
  0xc5   :  { %v3894_v0 = vrot.slane %v3547_v53, %v4766_v36  ;;  %v2969_v1 = vsel %vm1639_vm2, %v2968_v54, %v2964_v50  ;;  %v3889_v2 = vrot.slane %v3546_v55, %v4763_v35  ;;  %v721_v3 = vmul.f32 0.04, %v421_v57 }
  0xc6   :  { %v2974_v5 = vsel %vm1646_vm3, %v2973_v52, %v2969_v1  ;;  %v720_v7 = vmul.f32 0.04, %v418_v58 }
  0xc7   :  { %v3890_v25 = vsel %vm1639_vm2, %v3889_v2, %v3885_v56  ;;  %v2983_v10 = vrot.slane %v721_v3, %v4772_v41  ;;  %v3549_v12 = vmul.f32 %v721_v3, %v721_v3  ;;  %1056 = vadd.xlane.f32.xlu1 %v1055_v59  ;;  %v1295_v59 = vsel %vm331_vm0, %v292_v8, 0.0  ;;  %v132_v3 = vld [vmem:[%s7337_s1 + $0x8] sm:$0xff] }
  0xc8   :  { %v3895_v14 = vsel %vm1646_vm3, %v3894_v0, %v3890_v25  ;;  %v2978_v15 = vrot.slane %v720_v7, %v4777_v46  ;;  %v3548_v17 = vmul.f32 %v720_v7, %v720_v7  ;;  %1053 = vadd.xlane.f32.xlu0 %v1052_v61  ;;  %v427_v18 = vpop.xlane.xlu1 %426  ;;  %v424_v19 = vpop.xlane.xlu0 %423  ;;  %v1292_v61 = vsel %vm331_vm0, %v291_v48, 0.0 }
  0xc9   :  { %v3904_v49 = vrot.slane %v3549_v12, %v4772_v41  ;;  %v723_v21 = vmul.f32 0.04, %v427_v18  ;;  %v722_v22 = vmul.f32 0.04, %v424_v19  ;;  %v815_v13 = vsel %vm331_vm0, %v132_v3, 0.0 }
  0xca   :  { %v2979_v26 = vsel %vm1653_vm4, %v2978_v15, %v2974_v5  ;;  %v3899_v27 = vrot.slane %v3548_v17, %v4777_v46  ;;  %v131_v5 = vld [vmem:[%s7337_s1] sm:$0xff] }
  0xcb   :  { %v2993_v29 = vrot.slane %v723_v21, %v4790_v60  ;;  %v3551_v30 = vmul.f32 %v723_v21, %v723_v21  ;;  %v2984_v31 = vsel %vm1660_vm5, %v2983_v10, %v2979_v26  ;;  %v2988_v34 = vrot.slane %v722_v22, %v4802_v6  ;;  %1233 = vadd.xlane.f32.xlu1 %v1232_v20  ;;  %v140_v20 = vld [vmem:[%s7337_s1 + $0x48] sm:$0xff]  ;;  %v139_v21 = vld [vmem:[%s7337_s1 + $0x40] sm:$0xff] }
  0xcc   :  { %v3900_v38 = vsel %vm1653_vm4, %v3899_v27, %v3895_v14  ;;  %v3550_v39 = vmul.f32 %v722_v22, %v722_v22  ;;  %1209 = vadd.xlane.f32.xlu0 %v1208_v23  ;;  %v433_v62 = vpop.xlane.xlu1 %432  ;;  %v430_v40 = vpop.xlane.xlu0 %429  ;;  %v812_v19 = vsel %vm331_vm0, %v131_v5, 0.0 }
  0xcd   :  { %v3914_v43 = vrot.slane %v3551_v30, %v4790_v60  ;;  %v3905_v44 = vsel %vm1660_vm5, %v3904_v49, %v3900_v38  ;;  %v2989_v45 = vsel %vm1667_vm6, %v2988_v34, %v2984_v31  ;;  %v5035_v47 = vmul.f32 0.04, %v433_v62  ;;  %v206_v38 = vld [vmem:[%s7337_s1 + $0x258] sm:$0xff] }
  0xce   :  { %v2994_v50 = vsel %vm1674_vm7, %v2993_v29, %v2989_v45  ;;  %v3909_v51 = vrot.slane %v3550_v39, %v4802_v6  ;;  %v5045_v52 = vmul.f32 0.04, %v430_v40  ;;  %v836_v34 = vsel %vm331_vm0, %v139_v21, 0.0  ;;  %v198_v62 = vld [vmem:[%s7337_s1 + $0x218] sm:$0xff]  ;;  %v272_v21 = vld [vmem:[%s7337_s1 + $0x468] sm:$0xff] }
  0xcf   :  { %v3553_v53 = vmul.f32 %v5035_v47, %v5035_v47  ;;  %1275 = vadd.xlane.f32.xlu1 %v1274_v28  ;;  %v5051_v54 = vsel %vm2616_vm10, %v2994_v50, %v4977_v33  ;;  %v839_v28 = vsel %vm331_vm0, %v140_v20, 0.0  ;;  %v1037_v8 = vsel %vm331_vm0, %v206_v38, 0.0  ;;  %v279_v20 = vld [vmem:[%s7337_s1 + $0x4a0] sm:$0xff] }
  0xd0   :  { %v3910_v55 = vsel %vm1667_vm6, %v3909_v51, %v3905_v44  ;;  %v3552_v56 = vmul.f32 %v5045_v52, %v5045_v52  ;;  %1254 = vadd.xlane.f32.xlu0 %v1253_v42  ;;  %v439_v57 = vpop.xlane.xlu1 %438  ;;  %v436_v58 = vpop.xlane.xlu0 %435  ;;  %v1013_v51 = vsel %vm331_vm0, %v198_v62, 0.0  ;;  %v300_v62 = vld [vmem:[%s7337_s1 + $0x548] sm:$0xff] }
  0xd1   :  { %v3915_v0 = vsel %vm1674_vm7, %v3914_v43, %v3910_v55  ;;  %v3923_v1 = vrot.slane %v3553_v53, %v4769_v37  ;;  %v5060_v2 = vmul.f32 0.04, %v439_v57  ;;  %v5062_v33 = vmul.f32 0.04, %v436_v58  ;;  %v219_v53 = vld [vmem:[%s7337_s1 + $0x2c0] sm:$0xff]  ;;  %v213_v58 = vld [vmem:[%s7337_s1 + $0x290] sm:$0xff] }
  0xd2   :  { %v3919_v4 = vrot.slane %v3552_v56, %v4756_v32  ;;  %v5079_v14 = vsel %vm2616_vm10, %v3915_v0, %v4999_v63 }
  0xd3   :  { %v3555_v7 = vmul.f32 %v5060_v2, %v5060_v2  ;;  %v3554_v9 = vmul.f32 %v5062_v33, %v5062_v33  ;;  %1296 = vadd.xlane.f32.xlu1 %v1295_v59 }
  0xd4   :  { %v3924_v25 = vsel %vm1632_vm1, %v3923_v1, %v3919_v4  ;;  %1293 = vadd.xlane.f32.xlu0 %v1292_v61  ;;  %v445_v10 = vpop.xlane.xlu1 %444  ;;  %v442_v12 = vpop.xlane.xlu0 %441  ;;  %v1076_v4 = vsel %vm331_vm0, %v219_v53, 0.0  ;;  %v133_v53 = vld [vmem:[%s7337_s1 + $0x10] sm:$0xff] }
  0xd5   :  { %v3933_v15 = vrot.slane %v3555_v7, %v4766_v36  ;;  %v3928_v17 = vrot.slane %v3554_v9, %v4763_v35  ;;  %v5083_v18 = vmul.f32 0.04, %v445_v10  ;;  %v5089_v49 = vmul.f32 0.04, %v442_v12  ;;  %v264_v10 = vld [vmem:[%s7337_s1 + $0x428] sm:$0xff] }
  0xd7   :  { %v3929_v63 = vsel %vm1639_vm2, %v3928_v17, %v3924_v25  ;;  %v3557_v22 = vmul.f32 %v5083_v18, %v5083_v18  ;;  %816 = vadd.xlane.f32.xlu1 %v815_v13  ;;  %v3556_v24 = vmul.f32 %v5089_v49, %v5089_v49  ;;  %v1058_v25 = vsel %vm331_vm0, %v213_v58, 0.0  ;;  %v220_v13 = vld [vmem:[%s7337_s1 + $0x2c8] sm:$0xff] }
  0xd8   :  { %v3934_v23 = vsel %vm1646_vm3, %v3933_v15, %v3929_v63  ;;  %813 = vadd.xlane.f32.xlu0 %v812_v19  ;;  %v451_v26 = vpop.xlane.xlu1 %450  ;;  %v448_v27 = vpop.xlane.xlu0 %447 }
  0xd9   :  { %v3943_v29 = vrot.slane %v3557_v22, %v4772_v41  ;;  %v5102_v30 = vmul.f32 0.04, %v451_v26  ;;  %v5104_v31 = vmul.f32 0.04, %v448_v27  ;;  %v3938_v39 = vrot.slane %v3556_v24, %v4777_v46  ;;  %v293_v26 = vld [vmem:[%s7337_s1 + $0x510] sm:$0xff]  ;;  %v286_v27 = vld [vmem:[%s7337_s1 + $0x4d8] sm:$0xff] }
  0xda   :  { %v1211_v24 = vsel %vm331_vm0, %v264_v10, 0.0  ;;  %v207_v10 = vld [vmem:[%s7337_s1 + $0x260] sm:$0xff] }
  0xdb   :  { %v3559_v40 = vmul.f32 %v5102_v30, %v5102_v30  ;;  %840 = vadd.xlane.f32.xlu1 %v839_v28  ;;  %v3939_v42 = vsel %vm1653_vm4, %v3938_v39, %v3934_v23  ;;  %v3558_v43 = vmul.f32 %v5104_v31, %v5104_v31  ;;  %v1079_v39 = vsel %vm331_vm0, %v220_v13, 0.0 }
  0xdc   :  { %837 = vadd.xlane.f32.xlu0 %v836_v34  ;;  %v457_v44 = vpop.xlane.xlu1 %456  ;;  %v454_v45 = vpop.xlane.xlu0 %453  ;;  %v3944_v48 = vsel %vm1660_vm5, %v3943_v29, %v3939_v42  ;;  %v1256_v42 = vsel %vm331_vm0, %v279_v20, 0.0  ;;  %v3007_v20 = vrot.slane %v5062_v33, %v4763_v35  ;;  %v5254_v33 = vsel %vm331_vm0, %v207_v10, 0.0 }
  0xdd   :  { %v5121_v50 = vmul.f32 0.04, %v457_v44  ;;  %v3953_v55 = vrot.slane %v3559_v40, %v4790_v60  ;;  %v3948_v56 = vrot.slane %v3558_v43, %v4802_v6  ;;  %v5129_v57 = vmul.f32 0.04, %v454_v45 }
  0xde   :  { %v1235_v43 = vsel %vm331_vm0, %v272_v21, 0.0  ;;  %v1298_v45 = vsel %vm331_vm0, %v293_v26, 0.0 }
  0xdf   :  { %v3561_v59 = vmul.f32 %v5121_v50, %v5121_v50  ;;  %1038 = vadd.xlane.f32.xlu1 %v1037_v8  ;;  %v3949_v61 = vsel %vm1667_vm6, %v3948_v56, %v3944_v48  ;;  %v3560_v0 = vmul.f32 %v5129_v57, %v5129_v57  ;;  %v1277_v8 = vsel %vm331_vm0, %v286_v27, 0.0  ;;  %v299_v48 = vld [vmem:[%s7337_s1 + $0x540] sm:$0xff] }
  0xe0   :  { %1014 = vadd.xlane.f32.xlu0 %v1013_v51  ;;  %v463_v1 = vpop.xlane.xlu1 %462  ;;  %v460_v3 = vpop.xlane.xlu0 %459  ;;  %v3954_v15 = vsel %vm1674_vm7, %v3953_v55, %v3949_v61  ;;  %v141_v51 = vld [vmem:[%s7337_s1 + $0x50] sm:$0xff]  ;;  %v3002_v55 = vrot.slane %v5035_v47, %v4769_v37  ;;  %v2998_v47 = vrot.slane %v5045_v52, %v4756_v32 }
  0xe1   :  { %v3962_v5 = vrot.slane %v3561_v59, %v4769_v37  ;;  %v5141_v7 = vmul.f32 0.04, %v463_v1  ;;  %v5143_v9 = vmul.f32 0.04, %v460_v3  ;;  %v3958_v12 = vrot.slane %v3560_v0, %v4756_v32  ;;  %v148_v1 = vld [vmem:[%s7337_s1 + $0x88] sm:$0xff]  ;;  %v147_v3 = vld [vmem:[%s7337_s1 + $0x80] sm:$0xff] }
  0xe2   :  { %v5174_v28 = vsel %vm2618_vm11, %v3954_v15, %v5079_v14  ;;  %v5208_v0 = vsel %vm331_vm0, %v300_v62, 0.0  ;;  %v1316_v15 = vsel %vm331_vm0, %v299_v48, 0.0  ;;  %v5232_v52 = vsel %vm331_vm0, %v141_v51, 0.0 }
  0xe3   :  { %v3563_v17 = vmul.f32 %v5141_v7, %v5141_v7  ;;  %v3562_v19 = vmul.f32 %v5143_v9, %v5143_v9  ;;  %1077 = vadd.xlane.f32.xlu1 %v1076_v4  ;;  %v3963_v63 = vsel %vm1632_vm1, %v3962_v5, %v3958_v12  ;;  %v199_v12 = vld [vmem:[%s7337_s1 + $0x220] sm:$0xff]  ;;  %v3012_v48 = vrot.slane %v5060_v2, %v4766_v36 }
  0xe4   :  { %1059 = vadd.xlane.f32.xlu0 %v1058_v25  ;;  %v469_v22 = vpop.xlane.xlu1 %468  ;;  %v466_v23 = vpop.xlane.xlu0 %465 }
  0xe5   :  { %v3972_v29 = vrot.slane %v3563_v17, %v4766_v36  ;;  %v3967_v34 = vrot.slane %v3562_v19, %v4763_v35  ;;  %v5178_v38 = vmul.f32 0.04, %v469_v22  ;;  %v5184_v40 = vmul.f32 0.04, %v466_v23  ;;  %v221_v19 = vld [vmem:[%s7337_s1 + $0x2d0] sm:$0xff] }
  0xe6   :  { %v5235_v17 = vsel %vm331_vm0, %v133_v53, 0.0  ;;  %v5248_v22 = vsel %vm331_vm0, %v147_v3, 0.0 }
  0xe7   :  { %v3968_v14 = vsel %vm1639_vm2, %v3967_v34, %v3963_v63  ;;  %v3565_v44 = vmul.f32 %v5178_v38, %v5178_v38  ;;  %1212 = vadd.xlane.f32.xlu1 %v1211_v24  ;;  %v3564_v58 = vmul.f32 %v5184_v40, %v5184_v40  ;;  %v5245_v63 = vsel %vm331_vm0, %v148_v1, 0.0  ;;  %v214_v34 = vld [vmem:[%s7337_s1 + $0x298] sm:$0xff]  ;;  %v265_v1 = vld [vmem:[%s7337_s1 + $0x430] sm:$0xff] }
  0xe8   :  { %v3973_v56 = vsel %vm1646_vm3, %v3972_v29, %v3968_v14  ;;  %1080 = vadd.xlane.f32.xlu0 %v1079_v39  ;;  %v475_v59 = vpop.xlane.xlu1 %474  ;;  %v472_v61 = vpop.xlane.xlu0 %471  ;;  %v5257_v29 = vsel %vm331_vm0, %v199_v12, 0.0  ;;  %v3003_v39 = vsel %vm1632_vm1, %v3002_v55, %v2998_v47  ;;  %v228_v14 = vld [vmem:[%s7337_s1 + $0x308] sm:$0xff]  ;;  %v5290_v2 = vsel %vm331_vm0, %v214_v34, 0.0 }
  0xe9   :  { %v3982_v4 = vrot.slane %v3565_v44, %v4772_v41  ;;  %v5219_v5 = vmul.f32 0.04, %v475_v59  ;;  %v5221_v25 = vmul.f32 0.04, %v472_v61  ;;  %v3977_v13 = vrot.slane %v3564_v58, %v4777_v46  ;;  %v227_v44 = vld [vmem:[%s7337_s1 + $0x300] sm:$0xff] }
  0xea   :  { %v3008_v58 = vsel %vm1639_vm2, %v3007_v20, %v3003_v39  ;;  %v3017_v59 = vrot.slane %v5089_v49, %v4777_v46  ;;  %v5299_v49 = vsel %vm331_vm0, %v228_v14, 0.0  ;;  %v280_v14 = vld [vmem:[%s7337_s1 + $0x4a8] sm:$0xff] }
  0xeb   :  { %v3567_v21 = vmul.f32 %v5219_v5, %v5219_v5  ;;  %1257 = vadd.xlane.f32.xlu1 %v1256_v42  ;;  %v3978_v23 = vsel %vm1653_vm4, %v3977_v13, %v3973_v56  ;;  %v3566_v24 = vmul.f32 %v5221_v25, %v5221_v25  ;;  %v273_v56 = vld [vmem:[%s7337_s1 + $0x470] sm:$0xff] }
  0xec   :  { %1236 = vadd.xlane.f32.xlu0 %v1235_v43  ;;  %v481_v26 = vpop.xlane.xlu1 %480  ;;  %v478_v27 = vpop.xlane.xlu0 %477  ;;  %v3983_v62 = vsel %vm1660_vm5, %v3982_v4, %v3978_v23  ;;  %v5267_v43 = vsel %vm331_vm0, %v221_v19, 0.0  ;;  %v5310_v20 = vsel %vm331_vm0, %v273_v56, 0.0  ;;  %v5315_v23 = vsel %vm331_vm0, %v265_v1, 0.0 }
  0xed   :  { %v5264_v42 = vmul.f32 0.04, %v481_v26  ;;  %v3992_v51 = vrot.slane %v3567_v21, %v4790_v60  ;;  %v3987_v53 = vrot.slane %v3566_v24, %v4802_v6  ;;  %v5279_v55 = vmul.f32 0.04, %v478_v27 }
  0xee   :  { %v3013_v21 = vsel %vm1646_vm3, %v3012_v48, %v3008_v58  ;;  %v3022_v26 = vrot.slane %v5083_v18, %v4772_v41  ;;  %v3027_v18 = vrot.slane %v5104_v31, %v4802_v6  ;;  %v3037_v56 = vrot.slane %v5129_v57, %v4756_v32 }
  0xef   :  { %v3569_v61 = vmul.f32 %v5264_v42, %v5264_v42  ;;  %1299 = vadd.xlane.f32.xlu1 %v1298_v45  ;;  %v3988_v3 = vsel %vm1667_vm6, %v3987_v53, %v3983_v62  ;;  %v3568_v47 = vmul.f32 %v5279_v55, %v5279_v55  ;;  %v5302_v45 = vsel %vm331_vm0, %v227_v44, 0.0  ;;  %v287_v62 = vld [vmem:[%s7337_s1 + $0x4e0] sm:$0xff] }
  0xf0   :  { %1278 = vadd.xlane.f32.xlu0 %v1277_v8  ;;  %v487_v4 = vpop.xlane.xlu1 %486  ;;  %v484_v10 = vpop.xlane.xlu0 %483  ;;  %v3993_v24 = vsel %vm1674_vm7, %v3992_v51, %v3988_v3  ;;  %v3018_v27 = vsel %vm1653_vm4, %v3017_v59, %v3013_v21  ;;  %v3041_v44 = vrot.slane %v5121_v50, %v4769_v37  ;;  %v3032_v50 = vrot.slane %v5102_v30, %v4790_v60 }
  0xf1   :  { %v4001_v12 = vrot.slane %v3569_v61, %v4769_v37  ;;  %v5305_v13 = vmul.f32 0.04, %v487_v4  ;;  %v5307_v19 = vmul.f32 0.04, %v484_v10  ;;  %v3997_v8 = vrot.slane %v3568_v47, %v4756_v32 }
  0xf2   :  { %v3023_v1 = vsel %vm1660_vm5, %v3022_v26, %v3018_v27  ;;  %v3046_v57 = vrot.slane %v5143_v9, %v4763_v35  ;;  %v3080_v30 = vrot.slane %v5264_v42, %v4769_v37  ;;  %v3076_v4 = vrot.slane %v5279_v55, %v4756_v32 }
  0xf3   :  { %v3571_v34 = vmul.f32 %v5305_v13, %v5305_v13  ;;  %v3570_v39 = vmul.f32 %v5307_v19, %v5307_v19  ;;  %1320 = vadd.xlane.f32.xlu1 %v5208_v0  ;;  %v4002_v48 = vsel %vm1632_vm1, %v4001_v12, %v3997_v8  ;;  %v5339_v0 = vsel %vm7341_vm12, %v3993_v24, %v5174_v28  ;;  %v301_v8 = vld [vmem:[%s7337_s1 + $0x550] sm:$0xff] }
  0xf4   :  { %1317 = vadd.xlane.f32.xlu0 %v1316_v15  ;;  %v493_v51 = vpop.xlane.xlu1 %492  ;;  %v490_v53 = vpop.xlane.xlu0 %489  ;;  %v5352_v15 = vsel %vm331_vm0, %v287_v62, 0.0  ;;  %v5355_v28 = vsel %vm331_vm0, %v280_v14, 0.0  ;;  %v3042_v42 = vsel %vm1632_vm1, %v3041_v44, %v3037_v56  ;;  %v3051_v26 = vrot.slane %v5141_v7, %v4766_v36 }
  0xf5   :  { %v4011_v58 = vrot.slane %v3571_v34, %v4766_v36  ;;  %v4006_v59 = vrot.slane %v3570_v39, %v4763_v35  ;;  %v5345_v31 = vmul.f32 0.04, %v493_v51  ;;  %v5349_v61 = vmul.f32 0.04, %v490_v53 }
  0xf6   :  { %v3047_v39 = vsel %vm1639_vm2, %v3046_v57, %v3042_v42  ;;  %v5394_v7 = vsel %vm331_vm0, %v301_v8, 0.0 }
  0xf7   :  { %v4007_v3 = vsel %vm1639_vm2, %v4006_v59, %v4002_v48  ;;  %v3573_v47 = vmul.f32 %v5345_v31, %v5345_v31  ;;  %843 = vadd.xlane.f32.xlu1 %v5232_v52  ;;  %v3572_v12 = vmul.f32 %v5349_v61, %v5349_v61  ;;  %v3028_v52 = vsel %vm1667_vm6, %v3027_v18, %v3023_v1 }
  0xf8   :  { %v4012_v10 = vsel %vm1646_vm3, %v4011_v58, %v4007_v3  ;;  %819 = vadd.xlane.f32.xlu0 %v5235_v17  ;;  %v499_v9 = vpop.xlane.xlu1 %498  ;;  %v496_v21 = vpop.xlane.xlu0 %495  ;;  %v3085_v17 = vrot.slane %v5307_v19, %v4763_v35  ;;  %v3056_v19 = vrot.slane %v5184_v40, %v4777_v46  ;;  %v3081_v18 = vsel %vm1632_vm1, %v3080_v30, %v3076_v4 }
  0xf9   :  { %v5377_v24 = vmul.f32 0.04, %v499_v9  ;;  %v5379_v55 = vmul.f32 0.04, %v496_v21  ;;  %v4021_v27 = vrot.slane %v3573_v47, %v4772_v41  ;;  %v4016_v34 = vrot.slane %v3572_v12, %v4777_v46 }
  0xfa   :  { %v5402_v53 = vsel %vm1674_vm7, %v3032_v50, %v3028_v52  ;;  %v3052_v40 = vsel %vm1646_vm3, %v3051_v26, %v3047_v39  ;;  %v3086_v1 = vsel %vm1639_vm2, %v3085_v17, %v3081_v18  ;;  %v3095_v57 = vrot.slane %v5349_v61, %v4777_v46 }
  0xfb   :  { %v3575_v62 = vmul.f32 %v5377_v24, %v5377_v24  ;;  %v3574_v14 = vmul.f32 %v5379_v55, %v5379_v55  ;;  %864 = vadd.xlane.f32.xlu1 %v5245_v63  ;;  %v4017_v44 = vsel %vm1653_vm4, %v4016_v34, %v4012_v10  ;;  %v3090_v63 = vrot.slane %v5305_v13, %v4766_v36 }
  0xfc   :  { %861 = vadd.xlane.f32.xlu0 %v5248_v22  ;;  %v505_v48 = vpop.xlane.xlu1 %504  ;;  %v502_v51 = vpop.xlane.xlu0 %501  ;;  %v4022_v22 = vsel %vm1660_vm5, %v4021_v27, %v4017_v44  ;;  %v3061_v50 = vrot.slane %v5178_v38, %v4772_v41  ;;  %v3057_v30 = vsel %vm1653_vm4, %v3056_v19, %v3052_v40  ;;  %v3100_v42 = vrot.slane %v5345_v31, %v4772_v41 }
  0xfd   :  { %v4026_v56 = vrot.slane %v3574_v14, %v4802_v6  ;;  %v749_v58 = vmul.f32 0.04, %v505_v48  ;;  %v748_v59 = vmul.f32 0.04, %v502_v51  ;;  %v4031_v3 = vrot.slane %v3575_v62, %v4790_v60 }
  0xfe   :  { %v3091_v38 = vsel %vm1646_vm3, %v3090_v63, %v3086_v1  ;;  %v3105_v17 = vrot.slane %v5379_v55, %v4802_v6  ;;  %v3071_v51 = vrot.slane %v5219_v5, %v4790_v60  ;;  %v3062_v63 = vsel %vm1660_vm5, %v3061_v50, %v3057_v30 }
  0xff   :  { %v3577_v47 = vmul.f32 %v749_v58, %v749_v58  ;;  %v3576_v13 = vmul.f32 %v748_v59, %v748_v59  ;;  %1041 = vadd.xlane.f32.xlu1 %v5254_v33  ;;  %v3119_v4 = vrot.slane %v749_v58, %v4769_v37  ;;  %v3115_v10 = vrot.slane %v748_v59, %v4756_v32 }
 0x100   :  { %1017 = vadd.xlane.f32.xlu0 %v5257_v29  ;;  %v511_v61 = vpop.xlane.xlu1 %510  ;;  %v508_v12 = vpop.xlane.xlu0 %507  ;;  %v4027_v9 = vsel %vm1667_vm6, %v4026_v56, %v4022_v22  ;;  %v3066_v33 = vrot.slane %v5221_v25, %v4802_v6  ;;  %v3096_v26 = vsel %vm1653_vm4, %v3095_v57, %v3091_v38  ;;  %v3110_v1 = vrot.slane %v5377_v24, %v4790_v60 }
 0x101   :  { %v4040_v21 = vrot.slane %v3577_v47, %v4769_v37  ;;  %v4036_v8 = vrot.slane %v3576_v13, %v4756_v32  ;;  %v751_v52 = vmul.f32 0.04, %v511_v61  ;;  %v750_v29 = vmul.f32 0.04, %v508_v12 }
 0x102   :  { %v4032_v39 = vsel %vm1674_vm7, %v4031_v3, %v4027_v9  ;;  %v3120_v62 = vsel %vm1632_vm1, %v3119_v4, %v3115_v10  ;;  %v3067_v58 = vsel %vm1667_vm6, %v3066_v33, %v3062_v63  ;;  %v3101_v40 = vsel %vm1660_vm5, %v3100_v42, %v3096_v26 }
 0x103   :  { %v4041_v27 = vsel %vm1632_vm1, %v4040_v21, %v4036_v8  ;;  %v3579_v34 = vmul.f32 %v751_v52, %v751_v52  ;;  %1083 = vadd.xlane.f32.xlu1 %v5267_v43  ;;  %v3124_v25 = vrot.slane %v750_v29, %v4763_v35  ;;  %v3578_v14 = vmul.f32 %v750_v29, %v750_v29 }
 0x104   :  { %1062 = vadd.xlane.f32.xlu0 %v5290_v2  ;;  %v517_v31 = vpop.xlane.xlu1 %516  ;;  %v514_v19 = vpop.xlane.xlu0 %513  ;;  %v5439_v18 = vsel %vm7342_vm13, %v4032_v39, %v5339_v0  ;;  %v3129_v55 = vrot.slane %v751_v52, %v4766_v36  ;;  %v3106_v3 = vsel %vm1667_vm6, %v3105_v17, %v3101_v40  ;;  %v3072_v9 = vsel %vm1674_vm7, %v3071_v51, %v3067_v58  ;;  %v308_v51 = vld [vmem:[%s7337_s1 + $0x588] sm:$0xff] }
 0x105   :  { %v4050_v44 = vrot.slane %v3579_v34, %v4766_v36  ;;  %v753_v43 = vmul.f32 0.04, %v517_v31  ;;  %v752_v48 = vmul.f32 0.04, %v514_v19  ;;  %v3125_v56 = vsel %vm1639_vm2, %v3124_v25, %v3120_v62 }
 0x106   :  { %v4045_v2 = vrot.slane %v3578_v14, %v4763_v35  ;;  %v3130_v13 = vsel %vm1646_vm3, %v3129_v55, %v3125_v56  ;;  %v3427_v38 = vsel %vm2618_vm11, %v5402_v53, %v5051_v54 }
 0x107   :  { %v3581_v59 = vmul.f32 %v753_v43, %v753_v43  ;;  %v3134_v0 = vrot.slane %v752_v48, %v4777_v46  ;;  %1104 = vadd.xlane.f32.xlu1 %v5299_v49  ;;  %v3580_v57 = vmul.f32 %v752_v48, %v752_v48  ;;  %v294_v49 = vld [vmem:[%s7337_s1 + $0x518] sm:$0xff]  ;;  %v3139_v47 = vrot.slane %v753_v43, %v4772_v41 }
 0x108   :  { %v4046_v5 = vsel %vm1639_vm2, %v4045_v2, %v4041_v27  ;;  %1101 = vadd.xlane.f32.xlu0 %v5302_v45  ;;  %v523_v22 = vpop.xlane.xlu1 %522  ;;  %v520_v50 = vpop.xlane.xlu0 %519  ;;  %v1301_v21 = vsel %vm331_vm0, %v294_v49, 0.0  ;;  %v3111_v27 = vsel %vm1674_vm7, %v3110_v1, %v3106_v3  ;;  %v3428_v39 = vsel %vm7341_vm12, %v3072_v9, %v3427_v38 }
 0x109   :  { %v4051_v24 = vsel %vm1646_vm3, %v4050_v44, %v4046_v5  ;;  %v755_v30 = vmul.f32 0.04, %v523_v22  ;;  %v4060_v4 = vrot.slane %v3581_v59, %v4772_v41  ;;  %v3135_v45 = vsel %vm1653_vm4, %v3134_v0, %v3130_v13 }
 0x10a   :  { %v4055_v10 = vrot.slane %v3580_v57, %v4777_v46  ;;  %v754_v61 = vmul.f32 0.04, %v520_v50  ;;  %v3140_v34 = vsel %vm1660_vm5, %v3139_v47, %v3135_v45  ;;  %v3429_v43 = vsel %vm7342_vm13, %v3111_v27, %v3428_v39  ;;  %v323_v45 = vld [vmem:[%s7337_s1 + $0x600] sm:$0xff] }
 0x10b   :  { %v3149_v12 = vrot.slane %v755_v30, %v4790_v60  ;;  %1239 = vadd.xlane.f32.xlu1 %v5310_v20  ;;  %v3583_v52 = vmul.f32 %v755_v30, %v755_v30  ;;  %v1343_v57 = vsel %vm331_vm0, %v308_v51, 0.0 }
 0x10c   :  { %v4056_v8 = vsel %vm1653_vm4, %v4055_v10, %v4051_v24  ;;  %v3144_v33 = vrot.slane %v754_v61, %v4802_v6  ;;  %v3582_v42 = vmul.f32 %v754_v61, %v754_v61  ;;  %1215 = vadd.xlane.f32.xlu0 %v5315_v23  ;;  %v529_v26 = vpop.xlane.xlu1 %528  ;;  %v526_v29 = vpop.xlane.xlu0 %525 }
 0x10d   :  { %v757_v17 = vmul.f32 0.04, %v529_v26  ;;  %v756_v20 = vmul.f32 0.04, %v526_v29  ;;  %v4061_v62 = vsel %vm1660_vm5, %v4060_v4, %v4056_v8  ;;  %v4070_v19 = vrot.slane %v3583_v52, %v4790_v60 }
 0x10e   :  { %v4065_v54 = vrot.slane %v3582_v42, %v4802_v6  ;;  %v3145_v53 = vsel %vm1667_vm6, %v3144_v33, %v3140_v34  ;;  %v1388_v29 = vsel %vm331_vm0, %v323_v45, 0.0 }
 0x10f   :  { %v3158_v25 = vrot.slane %v757_v17, %v4769_v37  ;;  %v3585_v14 = vmul.f32 %v757_v17, %v757_v17  ;;  %v3154_v23 = vrot.slane %v756_v20, %v4756_v32  ;;  %v3584_v31 = vmul.f32 %v756_v20, %v756_v20  ;;  %1281 = vadd.xlane.f32.xlu1 %v5352_v15 }
 0x110   :  { %1260 = vadd.xlane.f32.xlu0 %v5355_v28  ;;  %v535_v55 = vpop.xlane.xlu1 %534  ;;  %v3150_v44 = vsel %vm1674_vm7, %v3149_v12, %v3145_v53  ;;  %v532_v48 = vpop.xlane.xlu0 %531  ;;  %v4066_v63 = vsel %vm1667_vm6, %v4065_v54, %v4061_v62  ;;  %v307_v28 = vld [vmem:[%s7337_s1 + $0x580] sm:$0xff]  ;;  %v142_v54 = vld [vmem:[%s7337_s1 + $0x58] sm:$0xff] }
 0x111   :  { %v4079_v56 = vrot.slane %v3585_v14, %v4769_v37  ;;  %v3159_v15 = vsel %vm1632_vm1, %v3158_v25, %v3154_v23  ;;  %v4075_v2 = vrot.slane %v3584_v31, %v4756_v32  ;;  %v759_v58 = vmul.f32 0.04, %v535_v55  ;;  %v134_v25 = vld [vmem:[%s7337_s1 + $0x18] sm:$0xff] }
 0x112   :  { %v3430_v59 = vsel %vm7339_vm14, %v3150_v44, %v3429_v43  ;;  %v758_v0 = vmul.f32 0.04, %v532_v48  ;;  %v1340_v47 = vsel %vm331_vm0, %v307_v28, 0.0  ;;  %v4071_v13 = vsel %vm1674_vm7, %v4070_v19, %v4066_v63 }
 0x113   :  { %v4080_v40 = vsel %vm1632_vm1, %v4079_v56, %v4075_v2  ;;  %v3168_v1 = vrot.slane %v759_v58, %v4766_v36  ;;  %v3587_v5 = vmul.f32 %v759_v58, %v759_v58  ;;  %4425 = vmatprep.mubr.msk.f32.mxu1 %vm7340_vm15, %v3430_v59  ;;  %1323 = vadd.xlane.f32.xlu1 %v5394_v7  ;;  %v324_v7 = vld [vmem:[%s7337_s1 + $0x608] sm:$0xff]  ;;  %v845_v43 = vsel %vm331_vm0, %v142_v54, 0.0  ;;  %v155_v2 = vld [vmem:[%s7337_s1 + $0xc0] sm:$0xff] }
 0x114   :  { %v3163_v22 = vrot.slane %v758_v0, %v4763_v35  ;;  %v3586_v50 = vmul.f32 %v758_v0, %v758_v0  ;;  %1302 = vadd.xlane.f32.xlu0 %v1301_v21  ;;  %v541_v3 = vpop.xlane.xlu1 %540  ;;  %v538_v49 = vpop.xlane.xlu0 %537  ;;  %v5519_v12 = vsel %vm7339_vm14, %v4071_v13, %v5439_v18  ;;  %v1391_v26 = vsel %vm331_vm0, %v324_v7, 0.0  ;;  %v149_v0 = vld [vmem:[%s7337_s1 + $0x90] sm:$0xff]  ;;  %v200_v7 = vld [vmem:[%s7337_s1 + $0x228] sm:$0xff] }
 0x115   :  { %v4089_v24 = vrot.slane %v3587_v5, %v4766_v36  ;;  %v761_v30 = vmul.f32 0.04, %v541_v3  ;;  %v760_v4 = vmul.f32 0.04, %v538_v49  ;;  %v884_v49 = vsel %vm331_vm0, %v155_v2, 0.0 }
 0x116   :  { %v3164_v10 = vsel %vm1639_vm2, %v3163_v22, %v3159_v15  ;;  %v4084_v61 = vrot.slane %v3586_v50, %v4763_v35  ;;  %v821_v15 = vsel %vm331_vm0, %v134_v25, 0.0  ;;  %vm4431_vm14 = vmmov 0  }
 0x117   :  { %v3178_v9 = vrot.slane %v761_v30, %v4772_v41  ;;  %v3589_v38 = vmul.f32 %v761_v30, %v761_v30  ;;  %v3169_v21 = vsel %vm1646_vm3, %v3168_v1, %v3164_v10  ;;  %v3173_v8 = vrot.slane %v760_v4, %v4777_v46  ;;  %1344 = vadd.xlane.f32.xlu1 %v1343_v57 }
 0x118   :  { %v4085_v52 = vsel %vm1639_vm2, %v4084_v61, %v4080_v40  ;;  %v3588_v33 = vmul.f32 %v760_v4, %v760_v4  ;;  %1341 = vadd.xlane.f32.xlu0 %v1340_v47  ;;  %v547_v42 = vpop.xlane.xlu1 %546  ;;  %v544_v34 = vpop.xlane.xlu0 %543  ;;  %v866_v4 = vsel %vm331_vm0, %v149_v0, 0.0 }
 0x119   :  { %v4099_v18 = vrot.slane %v3589_v38, %v4772_v41  ;;  %v4090_v17 = vsel %vm1646_vm3, %v4089_v24, %v4085_v52  ;;  %v3174_v20 = vsel %vm1653_vm4, %v3173_v8, %v3169_v21  ;;  %v763_v27 = vmul.f32 0.04, %v547_v42 }
 0x11a   :  { %v4094_v53 = vrot.slane %v3588_v33, %v4777_v46  ;;  %v3179_v39 = vsel %vm1660_vm5, %v3178_v9, %v3174_v20  ;;  %v762_v62 = vmul.f32 0.04, %v544_v34  ;;  %v156_v9 = vld [vmem:[%s7337_s1 + $0xc8] sm:$0xff] }
 0x11b   :  { %v3188_v14 = vrot.slane %v763_v27, %v4790_v60  ;;  %v3591_v23 = vmul.f32 %v763_v27, %v763_v27  ;;  %1392 = vadd.xlane.f32.xlu1 %v1391_v26  ;;  %v1019_v26 = vsel %vm331_vm0, %v200_v7, 0.0  ;;  %v887_v20 = vsel %vm331_vm0, %v156_v9, 0.0  ;;  %v215_v27 = vld [vmem:[%s7337_s1 + $0x2a0] sm:$0xff] }
 0x11c   :  { %v4095_v31 = vsel %vm1653_vm4, %v4094_v53, %v4090_v17  ;;  %v3183_v19 = vrot.slane %v762_v62, %v4802_v6  ;;  %v3590_v55 = vmul.f32 %v762_v62, %v762_v62  ;;  %1389 = vadd.xlane.f32.xlu0 %v1388_v29  ;;  %v553_v44 = vpop.xlane.xlu1 %552 }
 0x11d   :  { %v4109_v48 = vrot.slane %v3591_v23, %v4790_v60  ;;  %v4100_v51 = vsel %vm1660_vm5, %v4099_v18, %v4095_v31  ;;  %v765_v63 = vmul.f32 0.04, %v553_v44  ;;  %v550_v56 = vpop.xlane.xlu0 %549  ;;  %v1064_v44 = vsel %vm331_vm0, %v215_v27, 0.0 }
 0x11e   :  { %v3184_v58 = vsel %vm1667_vm6, %v3183_v19, %v3179_v39  ;;  %v4104_v28 = vrot.slane %v3590_v55, %v4802_v6  ;;  %v764_v59 = vmul.f32 0.04, %v550_v56  ;;  %v208_v39 = vld [vmem:[%s7337_s1 + $0x268] sm:$0xff] }
 0x11f   :  { %v5554_v40 = vsel %vm1674_vm7, %v3188_v14, %v3184_v58  ;;  %v3197_v1 = vrot.slane %v765_v63, %v4769_v37  ;;  %v3593_v5 = vmul.f32 %v765_v63, %v765_v63  ;;  %846 = vadd.xlane.f32.xlu1 %v845_v43  ;;  %v229_v43 = vld [vmem:[%s7337_s1 + $0x310] sm:$0xff]  ;;  %v1043_v56 = vsel %vm331_vm0, %v208_v39, 0.0 }
 0x120   :  { %v4105_v57 = vsel %vm1667_vm6, %v4104_v28, %v4100_v51  ;;  %v3193_v22 = vrot.slane %v764_v59, %v4756_v32  ;;  %v3592_v50 = vmul.f32 %v764_v59, %v764_v59  ;;  %822 = vadd.xlane.f32.xlu0 %v821_v15  ;;  %v559_v3 = vpop.xlane.xlu1 %558  ;;  %v222_v28 = vld [vmem:[%s7337_s1 + $0x2d8] sm:$0xff]  ;;  %v1106_v0 = vsel %vm331_vm0, %v229_v43, 0.0 }
 0x121   :  { %v5561_v47 = vsel %vm1674_vm7, %v4109_v48, %v4105_v57  ;;  %v4118_v13 = vrot.slane %v3593_v5, %v4769_v37  ;;  %v767_v24 = vmul.f32 0.04, %v559_v3  ;;  %v556_v30 = vpop.xlane.xlu0 %555 }
 0x122   :  { %v3198_v45 = vsel %vm1632_vm1, %v3197_v1, %v3193_v22  ;;  %v4114_v10 = vrot.slane %v3592_v50, %v4756_v32  ;;  %v766_v61 = vmul.f32 0.04, %v556_v30 }
 0x123   :  { %v3207_v38 = vrot.slane %v767_v24, %v4766_v36  ;;  %v3595_v21 = vmul.f32 %v767_v24, %v767_v24  ;;  %885 = vadd.xlane.f32.xlu1 %v884_v49  ;;  %v236_v24 = vld [vmem:[%s7337_s1 + $0x348] sm:$0xff] }
 0x124   :  { %v4119_v8 = vsel %vm1632_vm1, %v4118_v13, %v4114_v10  ;;  %v3202_v52 = vrot.slane %v766_v61, %v4763_v35  ;;  %v3594_v33 = vmul.f32 %v766_v61, %v766_v61  ;;  %867 = vadd.xlane.f32.xlu0 %v866_v4  ;;  %v565_v42 = vpop.xlane.xlu1 %564  ;;  %v1085_v13 = vsel %vm331_vm0, %v222_v28, 0.0  ;;  %v315_v28 = vld [vmem:[%s7337_s1 + $0x5c0] sm:$0xff] }
 0x125   :  { %v4128_v29 = vrot.slane %v3595_v21, %v4766_v36  ;;  %v769_v18 = vmul.f32 0.04, %v565_v42  ;;  %v562_v17 = vpop.xlane.xlu0 %561  ;;  %v1127_v21 = vsel %vm331_vm0, %v236_v24, 0.0  ;;  %v274_v42 = vld [vmem:[%s7337_s1 + $0x478] sm:$0xff] }
 0x126   :  { %v3203_v34 = vsel %vm1639_vm2, %v3202_v52, %v3198_v45  ;;  %v4123_v54 = vrot.slane %v3594_v33, %v4763_v35  ;;  %v768_v53 = vmul.f32 0.04, %v562_v17  ;;  %v235_v45 = vld [vmem:[%s7337_s1 + $0x340] sm:$0xff]  ;;  %v1241_v27 = vsel %vm331_vm0, %v274_v42, 0.0 }
 0x127   :  { %v3217_v62 = vrot.slane %v769_v18, %v4772_v41  ;;  %v3597_v25 = vmul.f32 %v769_v18, %v769_v18  ;;  %v3208_v14 = vsel %vm1646_vm3, %v3207_v38, %v3203_v34  ;;  %1020 = vadd.xlane.f32.xlu1 %v1019_v26  ;;  %v1124_v33 = vsel %vm331_vm0, %v235_v45, 0.0  ;;  %v135_v42 = vld [vmem:[%s7337_s1 + $0x20] sm:$0xff] }
 0x128   :  { %v4124_v23 = vsel %vm1639_vm2, %v4123_v54, %v4119_v8  ;;  %v3212_v31 = vrot.slane %v768_v53, %v4777_v46  ;;  %v3596_v19 = vmul.f32 %v768_v53, %v768_v53  ;;  %888 = vadd.xlane.f32.xlu0 %v887_v20  ;;  %v1198_v55 = vpop.xlane.xlu1 %1197  ;;  %v288_v53 = vld [vmem:[%s7337_s1 + $0x4e8] sm:$0xff] }
 0x129   :  { %v4138_v48 = vrot.slane %v3597_v25, %v4772_v41  ;;  %v4129_v51 = vsel %vm1646_vm3, %v4128_v29, %v4124_v23  ;;  %v568_v63 = vpop.xlane.xlu0 %567  ;;  %v2264_v5 = vrot.slane %v1198_v55, %v4756_v32  ;;  %v266_v29 = vld [vmem:[%s7337_s1 + $0x438] sm:$0xff] }
 0x12a   :  { %v3213_v15 = vsel %vm1653_vm4, %v3212_v31, %v3208_v14  ;;  %v4133_v2 = vrot.slane %v3596_v19, %v4777_v46  ;;  %v770_v58 = vmul.f32 0.04, %v568_v63  ;;  %v1217_v54 = vsel %vm331_vm0, %v266_v29, 0.0 }
 0x12b   :  { %v3218_v59 = vsel %vm1660_vm5, %v3217_v62, %v3213_v15  ;;  %1065 = vadd.xlane.f32.xlu1 %v1064_v44  ;;  %v281_v62 = vld [vmem:[%s7337_s1 + $0x4b0] sm:$0xff]  ;;  %v1283_v31 = vsel %vm331_vm0, %v288_v53, 0.0  ;;  %v302_v44 = vld [vmem:[%s7337_s1 + $0x558] sm:$0xff] }
 0x12c   :  { %v4134_v1 = vsel %vm1653_vm4, %v4133_v2, %v4129_v51  ;;  %v3222_v57 = vrot.slane %v770_v58, %v4802_v6  ;;  %v3598_v22 = vmul.f32 %v770_v58, %v770_v58  ;;  %1044 = vadd.xlane.f32.xlu0 %v1043_v56  ;;  %v1222_v50 = vpop.xlane.xlu1 %1221  ;;  %v1262_v55 = vsel %vm331_vm0, %v281_v62, 0.0 }
 0x12d   :  { %v4139_v3 = vsel %vm1660_vm5, %v4138_v48, %v4134_v1  ;;  %v1201_v49 = vpop.xlane.xlu0 %1200  ;;  %v2303_v61 = vrot.slane %v1222_v50, %v4756_v32  ;;  %v295_v48 = vld [vmem:[%s7337_s1 + $0x520] sm:$0xff]  ;;  %v1325_v15 = vsel %vm331_vm0, %v302_v44, 0.0 }
 0x12e   :  { %v5614_v30 = vsel %vm1667_vm6, %v3222_v57, %v3218_v59  ;;  %v4143_v4 = vrot.slane %v3598_v22, %v4802_v6  ;;  %v2268_v7 = vrot.slane %v1201_v49, %v4769_v37  ;;  %v1304_v58 = vsel %vm331_vm0, %v295_v48, 0.0 }
 0x12f   :  { %1107 = vadd.xlane.f32.xlu1 %v1106_v0  ;;  %v309_v0 = vld [vmem:[%s7337_s1 + $0x590] sm:$0xff]  ;;  %v1364_v22 = vsel %vm331_vm0, %v315_v28, 0.0 }
 0x130   :  { %v5622_v10 = vsel %vm1667_vm6, %v4143_v4, %v4139_v3  ;;  %v2269_v9 = vsel %vm1632_vm1, %v2268_v7, %v2264_v5  ;;  %1086 = vadd.xlane.f32.xlu0 %v1085_v13  ;;  %v1204_v38 = vpop.xlane.xlu1 %1203  ;;  %v1346_v49 = vsel %vm331_vm0, %v309_v0, 0.0  ;;  %v325_v13 = vld [vmem:[%s7337_s1 + $0x610] sm:$0xff]  ;;  %v316_v4 = vld [vmem:[%s7337_s1 + $0x5c8] sm:$0xff] }
 0x131   :  { %v2273_v8 = vrot.slane %v1204_v38, %v4763_v35  ;;  %v1225_v52 = vpop.xlane.xlu0 %1224  ;;  %v209_v28 = vld [vmem:[%s7337_s1 + $0x270] sm:$0xff] }
 0x132   :  { %v2307_v26 = vrot.slane %v1225_v52, %v4769_v37  ;;  %v143_v52 = vld [vmem:[%s7337_s1 + $0x60] sm:$0xff]  ;;  %v201_v0 = vld [vmem:[%s7337_s1 + $0x230] sm:$0xff] }
 0x133   :  { %v2274_v18 = vsel %vm1639_vm2, %v2273_v8, %v2269_v9  ;;  %1128 = vadd.xlane.f32.xlu1 %v1127_v21  ;;  %v1394_v9 = vsel %vm331_vm0, %v325_v13, 0.0  ;;  %v1367_v8 = vsel %vm331_vm0, %v316_v4, 0.0 }
 0x134   :  { %v2308_v17 = vsel %vm1632_vm1, %v2307_v26, %v2303_v61  ;;  %1125 = vadd.xlane.f32.xlu0 %v1124_v33  ;;  %v1246_v20 = vpop.xlane.xlu1 %1245 }
 0x135   :  { %v1228_v34 = vpop.xlane.xlu0 %1227  ;;  %v2342_v25 = vrot.slane %v1246_v20, %v4756_v32 }
 0x136   :  { %v2312_v39 = vrot.slane %v1228_v34, %v4763_v35  ;;  %v824_v34 = vsel %vm331_vm0, %v135_v42, 0.0 }
 0x137   :  { %1242 = vadd.xlane.f32.xlu1 %v1241_v27 }
 0x138   :  { %v2313_v14 = vsel %vm1639_vm2, %v2312_v39, %v2308_v17  ;;  %1218 = vadd.xlane.f32.xlu0 %v1217_v54  ;;  %v1006_v23 = vpop.xlane.xlu1 %1005  ;;  %v848_v17 = vsel %vm331_vm0, %v143_v52, 0.0  ;;  %v157_v54 = vld [vmem:[%s7337_s1 + $0xd0] sm:$0xff]  ;;  %v150_v39 = vld [vmem:[%s7337_s1 + $0x98] sm:$0xff] }
 0x139   :  { %v1249_v19 = vpop.xlane.xlu0 %1248  ;;  %v1952_v51 = vrot.slane %v1006_v23, %v4756_v32  ;;  %v237_v52 = vld [vmem:[%s7337_s1 + $0x350] sm:$0xff] }
 0x13a   :  { %v2346_v43 = vrot.slane %v1249_v19, %v4769_v37  ;;  %v869_v19 = vsel %vm331_vm0, %v150_v39, 0.0 }
 0x13b   :  { %1284 = vadd.xlane.f32.xlu1 %v1283_v31 }
 0x13c   :  { %v2347_v63 = vsel %vm1632_vm1, %v2346_v43, %v2342_v25  ;;  %1263 = vadd.xlane.f32.xlu0 %v1262_v55  ;;  %v1030_v56 = vpop.xlane.xlu1 %1029  ;;  %v164_v55 = vld [vmem:[%s7337_s1 + $0x108] sm:$0xff]  ;;  %v163_v43 = vld [vmem:[%s7337_s1 + $0x100] sm:$0xff] }
 0x13d   :  { %v1009_v2 = vpop.xlane.xlu0 %1008  ;;  %v1991_v1 = vrot.slane %v1030_v56, %v4756_v32  ;;  %v911_v56 = vsel %vm331_vm0, %v164_v55, 0.0 }
 0x13e   :  { %v1956_v59 = vrot.slane %v1009_v2, %v4769_v37 }
 0x13f   :  { %1326 = vadd.xlane.f32.xlu1 %v1325_v15 }
 0x140   :  { %v1957_v5 = vsel %vm1632_vm1, %v1956_v59, %v1952_v51  ;;  %1305 = vadd.xlane.f32.xlu0 %v1304_v58  ;;  %v1207_v57 = vpop.xlane.xlu1 %1206  ;;  %v908_v58 = vsel %vm331_vm0, %v163_v43, 0.0 }
 0x141   :  { %v2278_v50 = vrot.slane %v1207_v57, %v4766_v36  ;;  %v1033_v3 = vpop.xlane.xlu0 %1032  ;;  %v1046_v57 = vsel %vm331_vm0, %v209_v28, 0.0  ;;  %v303_v28 = vld [vmem:[%s7337_s1 + $0x560] sm:$0xff] }
 0x142   :  { %v1995_v24 = vrot.slane %v1033_v3, %v4769_v37  ;;  %v1022_v3 = vsel %vm331_vm0, %v201_v0, 0.0  ;;  %v296_v0 = vld [vmem:[%s7337_s1 + $0x528] sm:$0xff] }
 0x143   :  { %v2279_v7 = vsel %vm1646_vm3, %v2278_v50, %v2274_v18  ;;  %1365 = vadd.xlane.f32.xlu1 %v1364_v22 }
 0x144   :  { %v1996_v45 = vsel %vm1632_vm1, %v1995_v24, %v1991_v1  ;;  %1347 = vadd.xlane.f32.xlu0 %v1346_v49  ;;  %v1252_v61 = vpop.xlane.xlu1 %1251  ;;  %v223_v49 = vld [vmem:[%s7337_s1 + $0x2e0] sm:$0xff]  ;;  %v216_v24 = vld [vmem:[%s7337_s1 + $0x2a8] sm:$0xff] }
 0x145   :  { %v2351_v38 = vrot.slane %v1252_v61, %v4763_v35  ;;  %v1231_v21 = vpop.xlane.xlu0 %1230 }
 0x146   :  { %v2317_v33 = vrot.slane %v1231_v21, %v4766_v36 }
 0x147   :  { %v2352_v26 = vsel %vm1639_vm2, %v2351_v38, %v2347_v63  ;;  %1395 = vadd.xlane.f32.xlu1 %v1394_v9  ;;  %v1088_v9 = vsel %vm331_vm0, %v223_v49, 0.0  ;;  %v1307_v49 = vsel %vm331_vm0, %v296_v0, 0.0 }
 0x148   :  { %v2318_v29 = vsel %vm1646_vm3, %v2317_v33, %v2313_v14  ;;  %1368 = vadd.xlane.f32.xlu0 %v1367_v8  ;;  %v1273_v18 = vpop.xlane.xlu1 %1272  ;;  %v890_v14 = vsel %vm331_vm0, %v157_v54, 0.0  ;;  %v1067_v8 = vsel %vm331_vm0, %v216_v24, 0.0  ;;  %v244_v54 = vld [vmem:[%s7337_s1 + $0x388] sm:$0xff] }
 0x149   :  { %v2385_v20 = vrot.slane %v1273_v18, %v4769_v37  ;;  %v1270_v27 = vpop.xlane.xlu0 %1269 }
 0x14a   :  { %v2381_v53 = vrot.slane %v1270_v27, %v4756_v32 }
 0x14b   :  { %849 = vadd.xlane.f32.xlu1 %v848_v17  ;;  %v1130_v17 = vsel %vm331_vm0, %v237_v52, 0.0 }
 0x14c   :  { %v2386_v62 = vsel %vm1632_vm1, %v2385_v20, %v2381_v53  ;;  %825 = vadd.xlane.f32.xlu0 %v824_v34  ;;  %v1036_v25 = vpop.xlane.xlu1 %1035 }
 0x14d   :  { %v2000_v23 = vrot.slane %v1036_v25, %v4763_v35  ;;  %v1012_v31 = vpop.xlane.xlu0 %1011  ;;  %v1151_v25 = vsel %vm331_vm0, %v244_v54, 0.0 }
 0x14e   :  { %v1961_v44 = vrot.slane %v1012_v31, %v4763_v35 }
 0x14f   :  { %v5717_v48 = vsel %vm1639_vm2, %v2000_v23, %v1996_v45  ;;  %891 = vadd.xlane.f32.xlu1 %v890_v14 }
 0x150   :  { %v5720_v51 = vsel %vm1639_vm2, %v1961_v44, %v1957_v5  ;;  %870 = vadd.xlane.f32.xlu0 %v869_v19  ;;  %v1057_v63 = vpop.xlane.xlu1 %1056  ;;  %v289_v19 = vld [vmem:[%s7337_s1 + $0x4f0] sm:$0xff]  ;;  %v282_v44 = vld [vmem:[%s7337_s1 + $0x4b8] sm:$0xff] }
 0x151   :  { %v2034_v15 = vrot.slane %v1057_v63, %v4769_v37  ;;  %v1054_v2 = vpop.xlane.xlu0 %1053 }
 0x152   :  { %v2030_v59 = vrot.slane %v1054_v2, %v4756_v32 }
 0x153   :  { %912 = vadd.xlane.f32.xlu1 %v911_v56  ;;  %v1286_v56 = vsel %vm331_vm0, %v289_v19, 0.0 }
 0x154   :  { %v5733_v1 = vsel %vm1632_vm1, %v2034_v15, %v2030_v59  ;;  %909 = vadd.xlane.f32.xlu0 %v908_v58  ;;  %v1234_v5 = vpop.xlane.xlu1 %1233  ;;  %v1265_v58 = vsel %vm331_vm0, %v282_v44, 0.0 }
 0x155   :  { %v2322_v22 = vrot.slane %v1234_v5, %v4777_v46  ;;  %v1210_v50 = vpop.xlane.xlu0 %1209 }
 0x156   :  { %v2283_v13 = vrot.slane %v1210_v50, %v4777_v46 }
 0x157   :  { %v5746_v4 = vsel %vm1653_vm4, %v2322_v22, %v2318_v29  ;;  %1047 = vadd.xlane.f32.xlu1 %v1046_v57  ;;  %v1328_v22 = vsel %vm331_vm0, %v303_v28, 0.0 }
 0x158   :  { %v5749_v45 = vsel %vm1653_vm4, %v2283_v13, %v2279_v7  ;;  %1023 = vadd.xlane.f32.xlu0 %v1022_v3  ;;  %v1276_v61 = vpop.xlane.xlu1 %1275  ;;  %v230_v7 = vld [vmem:[%s7337_s1 + $0x318] sm:$0xff]  ;;  %v317_v13 = vld [vmem:[%s7337_s1 + $0x5d0] sm:$0xff] }
 0x159   :  { %v2390_v38 = vrot.slane %v1276_v61, %v4763_v35  ;;  %v1255_v21 = vpop.xlane.xlu0 %1254  ;;  %v1109_v34 = vsel %vm331_vm0, %v230_v7, 0.0  ;;  %v310_v61 = vld [vmem:[%s7337_s1 + $0x598] sm:$0xff]  ;;  %v136_v7 = vld [vmem:[%s7337_s1 + $0x28] sm:$0xff] }
 0x15a   :  { %v2356_v33 = vrot.slane %v1255_v21, %v4766_v36 }
 0x15b   :  { %v5762_v42 = vsel %vm1639_vm2, %v2390_v38, %v2386_v62  ;;  %1089 = vadd.xlane.f32.xlu1 %v1088_v9 }
 0x15c   :  { %v5765_v29 = vsel %vm1646_vm3, %v2356_v33, %v2352_v26  ;;  %1068 = vadd.xlane.f32.xlu0 %v1067_v8  ;;  %v1297_v18 = vpop.xlane.xlu1 %1296  ;;  %v243_v26 = vld [vmem:[%s7337_s1 + $0x380] sm:$0xff]  ;;  %v1370_v8 = vsel %vm331_vm0, %v317_v13, 0.0  ;;  %v1349_v33 = vsel %vm331_vm0, %v310_v61, 0.0 }
 0x15d   :  { %v2424_v20 = vrot.slane %v1297_v18, %v4769_v37  ;;  %v1294_v27 = vpop.xlane.xlu0 %1293  ;;  %v1148_v31 = vsel %vm331_vm0, %v243_v26, 0.0  ;;  %v151_v26 = vld [vmem:[%s7337_s1 + $0xa0] sm:$0xff] }
 0x15e   :  { %v2420_v53 = vrot.slane %v1294_v27, %v4756_v32  ;;  %v827_v27 = vsel %vm331_vm0, %v136_v7, 0.0 }
 0x15f   :  { %1131 = vadd.xlane.f32.xlu1 %v1130_v17 }
 0x160   :  { %v5778_v39 = vsel %vm1632_vm1, %v2424_v20, %v2420_v53  ;;  %1110 = vadd.xlane.f32.xlu0 %v1109_v34  ;;  %v817_v62 = vpop.xlane.xlu1 %816 }
 0x161   :  { %v1631_v14 = vrot.slane %v817_v62, %v4769_v37  ;;  %v814_v23 = vpop.xlane.xlu0 %813 }
 0x162   :  { %v1626_v55 = vrot.slane %v814_v23, %v4756_v32 }
 0x163   :  { %1152 = vadd.xlane.f32.xlu1 %v1151_v25 }
 0x164   :  { %v5791_v43 = vsel %vm1632_vm1, %v1631_v14, %v1626_v55  ;;  %1149 = vadd.xlane.f32.xlu0 %v1148_v31  ;;  %v841_v63 = vpop.xlane.xlu1 %840  ;;  %v872_v31 = vsel %vm331_vm0, %v151_v26, 0.0 }
 0x165   :  { %v1683_v15 = vrot.slane %v841_v63, %v4769_v37  ;;  %v838_v2 = vpop.xlane.xlu0 %837  ;;  %v165_v63 = vld [vmem:[%s7337_s1 + $0x110] sm:$0xff] }
 0x166   :  { %v1679_v59 = vrot.slane %v838_v2, %v4756_v32  ;;  %v914_v28 = vsel %vm331_vm0, %v165_v63, 0.0 }
 0x167   :  { %1287 = vadd.xlane.f32.xlu1 %v1286_v56  ;;  %v158_v56 = vld [vmem:[%s7337_s1 + $0xd8] sm:$0xff] }
 0x168   :  { %v5804_v5 = vsel %vm1632_vm1, %v1683_v15, %v1679_v59  ;;  %1266 = vadd.xlane.f32.xlu0 %v1265_v58  ;;  %v1039_v57 = vpop.xlane.xlu1 %1038 }
 0x169   :  { %v2005_v50 = vrot.slane %v1039_v57, %v4766_v36  ;;  %v1015_v3 = vpop.xlane.xlu0 %1014  ;;  %v893_v57 = vsel %vm331_vm0, %v158_v56, 0.0 }
 0x16a   :  { %v1966_v24 = vrot.slane %v1015_v3, %v4766_v36 }
 0x16b   :  { %v5818_v9 = vsel %vm1646_vm3, %v2005_v50, %v5717_v48  ;;  %1329 = vadd.xlane.f32.xlu1 %v1328_v22  ;;  %v326_v48 = vld [vmem:[%s7337_s1 + $0x618] sm:$0xff]  ;;  %v172_v22 = vld [vmem:[%s7337_s1 + $0x148] sm:$0xff] }
 0x16c   :  { %v5822_v38 = vsel %vm1646_vm3, %v1966_v24, %v5720_v51  ;;  %1308 = vadd.xlane.f32.xlu0 %v1307_v49  ;;  %v1078_v21 = vpop.xlane.xlu1 %1077  ;;  %v1397_v53 = vsel %vm331_vm0, %v326_v48, 0.0  ;;  %v935_v13 = vsel %vm331_vm0, %v172_v22, 0.0 }
 0x16d   :  { %v1060_v52 = vpop.xlane.xlu0 %1059  ;;  %v2069_v51 = vrot.slane %v1078_v21, %v4756_v32 }
 0x16e   :  { %v2039_v18 = vrot.slane %v1060_v52, %v4763_v35 }
 0x16f   :  { %1371 = vadd.xlane.f32.xlu1 %v1370_v8  ;;  %v210_v8 = vld [vmem:[%s7337_s1 + $0x278] sm:$0xff] }
 0x170   :  { %v5836_v17 = vsel %vm1639_vm2, %v2039_v18, %v5733_v1  ;;  %1350 = vadd.xlane.f32.xlu0 %v1349_v33  ;;  %v1213_v20 = vpop.xlane.xlu1 %1212  ;;  %v144_v1 = vld [vmem:[%s7337_s1 + $0x68] sm:$0xff]  ;;  %v1049_v7 = vsel %vm331_vm0, %v210_v8, 0.0 }
 0x171   :  { %v2288_v34 = vrot.slane %v1213_v20, %v4772_v41  ;;  %v1081_v54 = vpop.xlane.xlu0 %1080  ;;  %v851_v44 = vsel %vm331_vm0, %v144_v1, 0.0  ;;  %v224_v20 = vld [vmem:[%s7337_s1 + $0x2e8] sm:$0xff] }
 0x172   :  { %v2073_v62 = vrot.slane %v1081_v54, %v4769_v37 }
 0x173   :  { %v5850_v25 = vsel %vm1660_vm5, %v2288_v34, %v5749_v45  ;;  %828 = vadd.xlane.f32.xlu1 %v827_v27  ;;  %v217_v34 = vld [vmem:[%s7337_s1 + $0x2b0] sm:$0xff] }
 0x174   :  { %v5853_v14 = vsel %vm1632_vm1, %v2073_v62, %v2069_v51  ;;  %1398 = vadd.xlane.f32.xlu0 %v1397_v53  ;;  %v1258_v23 = vpop.xlane.xlu1 %1257  ;;  %v1091_v62 = vsel %vm331_vm0, %v224_v20, 0.0 }
 0x175   :  { %v2361_v19 = vrot.slane %v1258_v23, %v4777_v46  ;;  %v1237_v55 = vpop.xlane.xlu0 %1236 }
 0x176   :  { %v2327_v45 = vrot.slane %v1237_v55, %v4772_v41 }
 0x177   :  { %v5867_v15 = vsel %vm1653_vm4, %v2361_v19, %v5765_v29  ;;  %873 = vadd.xlane.f32.xlu1 %v872_v31  ;;  %v1070_v31 = vsel %vm331_vm0, %v217_v34, 0.0  ;;  %v238_v19 = vld [vmem:[%s7337_s1 + $0x358] sm:$0xff] }
 0x178   :  { %v5871_v2 = vsel %vm1660_vm5, %v2327_v45, %v5746_v4  ;;  %852 = vadd.xlane.f32.xlu0 %v851_v44  ;;  %v1300_v58 = vpop.xlane.xlu1 %1299  ;;  %v171_v4 = vld [vmem:[%s7337_s1 + $0x140] sm:$0xff]  ;;  %v1133_v63 = vsel %vm331_vm0, %v238_v19, 0.0 }
 0x179   :  { %v2429_v59 = vrot.slane %v1300_v58, %v4763_v35  ;;  %v1279_v0 = vpop.xlane.xlu0 %1278  ;;  %v932_v21 = vsel %vm331_vm0, %v171_v4, 0.0 }
 0x17a   :  { %v2395_v29 = vrot.slane %v1279_v0, %v4766_v36  ;;  %v245_v0 = vld [vmem:[%s7337_s1 + $0x390] sm:$0xff] }
 0x17b   :  { %v5885_v50 = vsel %vm1639_vm2, %v2429_v59, %v5778_v39  ;;  %915 = vadd.xlane.f32.xlu1 %v914_v28  ;;  %v251_v28 = vld [vmem:[%s7337_s1 + $0x3c0] sm:$0xff] }
 0x17c   :  { %v5889_v3 = vsel %vm1646_vm3, %v2395_v29, %v5762_v42  ;;  %894 = vadd.xlane.f32.xlu0 %v893_v57  ;;  %v1321_v49 = vpop.xlane.xlu1 %1320  ;;  %v202_v42 = vld [vmem:[%s7337_s1 + $0x238] sm:$0xff]  ;;  %v1172_v4 = vsel %vm331_vm0, %v251_v28, 0.0 }
 0x17d   :  { %v2463_v24 = vrot.slane %v1321_v49, %v4769_v37  ;;  %v1318_v61 = vpop.xlane.xlu0 %1317  ;;  %v1025_v51 = vsel %vm331_vm0, %v202_v42, 0.0 }
 0x17e   :  { %v2459_v39 = vrot.slane %v1318_v61, %v4756_v32  ;;  %v290_v61 = vld [vmem:[%s7337_s1 + $0x4f8] sm:$0xff] }
 0x17f   :  { %936 = vadd.xlane.f32.xlu1 %v935_v13  ;;  %v1289_v42 = vsel %vm331_vm0, %v290_v61, 0.0 }
 0x180   :  { %v5902_v52 = vsel %vm1632_vm1, %v2463_v24, %v2459_v39  ;;  %933 = vadd.xlane.f32.xlu0 %v932_v21  ;;  %v844_v33 = vpop.xlane.xlu1 %843  ;;  %v1154_v24 = vsel %vm331_vm0, %v245_v0, 0.0 }
 0x181   :  { %v1688_v18 = vrot.slane %v844_v33, %v4763_v35  ;;  %v820_v48 = vpop.xlane.xlu0 %819 }
 0x182   :  { %v1638_v27 = vrot.slane %v820_v48, %v4763_v35  ;;  %v304_v48 = vld [vmem:[%s7337_s1 + $0x568] sm:$0xff] }
 0x183   :  { %v5916_v54 = vsel %vm1639_vm2, %v1688_v18, %v5804_v5  ;;  %1050 = vadd.xlane.f32.xlu1 %v1049_v7 }
 0x184   :  { %v5920_v53 = vsel %vm1639_vm2, %v1638_v27, %v5791_v43  ;;  %1026 = vadd.xlane.f32.xlu0 %v1025_v51  ;;  %v865_v26 = vpop.xlane.xlu1 %864  ;;  %v231_v43 = vld [vmem:[%s7337_s1 + $0x320] sm:$0xff]  ;;  %v1331_v27 = vsel %vm331_vm0, %v304_v48, 0.0 }
 0x185   :  { %v1722_v1 = vrot.slane %v865_v26, %v4769_v37  ;;  %v862_v23 = vpop.xlane.xlu0 %861  ;;  %v1112_v58 = vsel %vm331_vm0, %v231_v43, 0.0 }
 0x186   :  { %v1718_v5 = vrot.slane %v862_v23, %v4756_v32 }
 0x187   :  { %1092 = vadd.xlane.f32.xlu1 %v1091_v62 }
 0x188   :  { %v5933_v55 = vsel %vm1632_vm1, %v1722_v1, %v1718_v5  ;;  %1071 = vadd.xlane.f32.xlu0 %v1070_v31  ;;  %v1042_v44 = vpop.xlane.xlu1 %1041  ;;  %v318_v1 = vld [vmem:[%s7337_s1 + $0x5d8] sm:$0xff]  ;;  %v311_v31 = vld [vmem:[%s7337_s1 + $0x5a0] sm:$0xff] }
 0x189   :  { %v2010_v45 = vrot.slane %v1042_v44, %v4777_v46  ;;  %v1018_v56 = vpop.xlane.xlu0 %1017  ;;  %v1373_v44 = vsel %vm331_vm0, %v318_v1, 0.0  ;;  %v173_v1 = vld [vmem:[%s7337_s1 + $0x150] sm:$0xff] }
 0x18a   :  { %v1971_v59 = vrot.slane %v1018_v56, %v4777_v46  ;;  %v1352_v56 = vsel %vm331_vm0, %v311_v31, 0.0 }
 0x18b   :  { %v5947_v57 = vsel %vm1653_vm4, %v2010_v45, %v5818_v9  ;;  %1134 = vadd.xlane.f32.xlu1 %v1133_v63 }
 0x18c   :  { %v5951_v22 = vsel %vm1653_vm4, %v1971_v59, %v5822_v38  ;;  %1113 = vadd.xlane.f32.xlu0 %v1112_v58  ;;  %v1084_v29 = vpop.xlane.xlu1 %1083  ;;  %v252_v38 = vld [vmem:[%s7337_s1 + $0x3c8] sm:$0xff]  ;;  %v137_v58 = vld [vmem:[%s7337_s1 + $0x30] sm:$0xff] }
 0x18d   :  { %v2078_v49 = vrot.slane %v1084_v29, %v4763_v35  ;;  %v1063_v13 = vpop.xlane.xlu0 %1062  ;;  %v1175_v18 = vsel %vm331_vm0, %v252_v38, 0.0  ;;  %v830_v29 = vsel %vm331_vm0, %v137_v58, 0.0 }
 0x18e   :  { %v2044_v9 = vrot.slane %v1063_v13, %v4766_v36 }
 0x18f   :  { %v5965_v21 = vsel %vm1639_vm2, %v2078_v49, %v5853_v14  ;;  %1173 = vadd.xlane.f32.xlu1 %v1172_v4 }
 0x190   :  { %v5969_v8 = vsel %vm1646_vm3, %v2044_v9, %v5836_v17  ;;  %1155 = vadd.xlane.f32.xlu0 %v1154_v24  ;;  %v1105_v39 = vpop.xlane.xlu1 %1104  ;;  %v297_v17 = vld [vmem:[%s7337_s1 + $0x530] sm:$0xff]  ;;  %v152_v24 = vld [vmem:[%s7337_s1 + $0xa8] sm:$0xff] }
 0x191   :  { %v2112_v33 = vrot.slane %v1105_v39, %v4769_v37  ;;  %v1102_v7 = vpop.xlane.xlu0 %1101  ;;  %v1310_v62 = vsel %vm331_vm0, %v297_v17, 0.0  ;;  %v875_v39 = vsel %vm331_vm0, %v152_v24, 0.0  ;;  %v232_v24 = vld [vmem:[%s7337_s1 + $0x328] sm:$0xff] }
 0x192   :  { %v2108_v14 = vrot.slane %v1102_v7, %v4756_v32 }
 0x193   :  { %1290 = vadd.xlane.f32.xlu1 %v1289_v42 }
 0x194   :  { %v5982_v51 = vsel %vm1632_vm1, %v2112_v33, %v2108_v14  ;;  %1176 = vadd.xlane.f32.xlu0 %v1175_v18  ;;  %v1240_v20 = vpop.xlane.xlu1 %1239  ;;  %v166_v18 = vld [vmem:[%s7337_s1 + $0x118] sm:$0xff] }
 0x195   :  { %v2332_v34 = vrot.slane %v1240_v20, %v4802_v6  ;;  %v1216_v26 = vpop.xlane.xlu0 %1215  ;;  %v917_v17 = vsel %vm331_vm0, %v166_v18, 0.0  ;;  %v246_v18 = vld [vmem:[%s7337_s1 + $0x398] sm:$0xff] }
 0x196   :  { %v2293_v23 = vrot.slane %v1216_v26, %v4802_v6  ;;  %v179_v26 = vld [vmem:[%s7337_s1 + $0x180] sm:$0xff] }
 0x197   :  { %v5996_v19 = vsel %vm1667_vm6, %v2332_v34, %v5871_v2  ;;  %1332 = vadd.xlane.f32.xlu1 %v1331_v27 }
 0x198   :  { %v6000_v5 = vsel %vm1667_vm6, %v2293_v23, %v5850_v25  ;;  %1311 = vadd.xlane.f32.xlu0 %v1310_v62  ;;  %v1282_v43 = vpop.xlane.xlu1 %1281  ;;  %v327_v25 = vld [vmem:[%s7337_s1 + $0x620] sm:$0xff] }
 0x199   :  { %v2400_v63 = vrot.slane %v1282_v43, %v4777_v46  ;;  %v1261_v45 = vpop.xlane.xlu0 %1260  ;;  %v1400_v13 = vsel %vm331_vm0, %v327_v25, 0.0  ;;  %v956_v43 = vsel %vm331_vm0, %v179_v26, 0.0 }
 0x19a   :  { %v2366_v2 = vrot.slane %v1261_v45, %v4772_v41  ;;  %v938_v45 = vsel %vm331_vm0, %v173_v1, 0.0  ;;  %v253_v1 = vld [vmem:[%s7337_s1 + $0x3d0] sm:$0xff] }
 0x19b   :  { %v6014_v28 = vsel %vm1653_vm4, %v2400_v63, %v5889_v3  ;;  %1374 = vadd.xlane.f32.xlu1 %v1373_v44 }
 0x19c   :  { %v6018_v59 = vsel %vm1660_vm5, %v2366_v2, %v5867_v15  ;;  %1353 = vadd.xlane.f32.xlu0 %v1352_v56  ;;  %v1324_v0 = vpop.xlane.xlu1 %1323  ;;  %v145_v15 = vld [vmem:[%s7337_s1 + $0x70] sm:$0xff]  ;;  %v218_v56 = vld [vmem:[%s7337_s1 + $0x2b8] sm:$0xff]  ;;  %v180_v2 = vld [vmem:[%s7337_s1 + $0x188] sm:$0xff] }
 0x19d   :  { %v2468_v4 = vrot.slane %v1324_v0, %v4763_v35  ;;  %v1303_v49 = vpop.xlane.xlu0 %1302  ;;  %v854_v7 = vsel %vm331_vm0, %v145_v15, 0.0 }
 0x19e   :  { %v2434_v3 = vrot.slane %v1303_v49, %v4766_v36 }
 0x19f   :  { %v6032_v61 = vsel %vm1639_vm2, %v2468_v4, %v5902_v52  ;;  %831 = vadd.xlane.f32.xlu1 %v830_v29  ;;  %v1073_v4 = vsel %vm331_vm0, %v218_v56, 0.0 }
 0x1a0   :  { %v6036_v9 = vsel %vm1646_vm3, %v2434_v3, %v5885_v50  ;;  %1401 = vadd.xlane.f32.xlu0 %v1400_v13  ;;  %v1345_v38 = vpop.xlane.xlu1 %1344  ;;  %v159_v50 = vld [vmem:[%s7337_s1 + $0xe0] sm:$0xff]  ;;  %v959_v13 = vsel %vm331_vm0, %v180_v2, 0.0  ;;  %v312_v2 = vld [vmem:[%s7337_s1 + $0x5a8] sm:$0xff] }
 0x1a1   :  { %v2502_v42 = vrot.slane %v1345_v38, %v4769_v37  ;;  %v1342_v33 = vpop.xlane.xlu0 %1341  ;;  %v896_v34 = vsel %vm331_vm0, %v159_v50, 0.0 }
 0x1a2   :  { %v2498_v52 = vrot.slane %v1342_v33, %v4756_v32 }
 0x1a3   :  { %876 = vadd.xlane.f32.xlu1 %v875_v39  ;;  %v1115_v39 = vsel %vm331_vm0, %v232_v24, 0.0 }
 0x1a4   :  { %v6049_v48 = vsel %vm1632_vm1, %v2502_v42, %v2498_v52  ;;  %855 = vadd.xlane.f32.xlu0 %v854_v7  ;;  %v1393_v14 = vpop.xlane.xlu1 %1392 }
 0x1a5   :  { %v2580_v20 = vrot.slane %v1393_v14, %v4769_v37  ;;  %v1390_v27 = vpop.xlane.xlu0 %1389 }
 0x1a6   :  { %v2576_v62 = vrot.slane %v1390_v27, %v4756_v32 }
 0x1a7   :  { %918 = vadd.xlane.f32.xlu1 %v917_v17 }
 0x1a8   :  { %v6062_v23 = vsel %vm1632_vm1, %v2580_v20, %v2576_v62  ;;  %897 = vadd.xlane.f32.xlu0 %v896_v34  ;;  %v847_v31 = vpop.xlane.xlu1 %846  ;;  %v1157_v20 = vsel %vm331_vm0, %v246_v18, 0.0  ;;  %v298_v62 = vld [vmem:[%s7337_s1 + $0x538] sm:$0xff] }
 0x1a9   :  { %v1693_v44 = vrot.slane %v847_v31, %v4766_v36  ;;  %v823_v63 = vpop.xlane.xlu0 %822 }
 0x1aa   :  { %v1645_v58 = vrot.slane %v823_v63, %v4766_v36  ;;  %v1313_v63 = vsel %vm331_vm0, %v298_v62, 0.0 }
 0x1ab   :  { %v6076_v25 = vsel %vm1646_vm3, %v1693_v44, %v5916_v54  ;;  %957 = vadd.xlane.f32.xlu1 %v956_v43  ;;  %v225_v54 = vld [vmem:[%s7337_s1 + $0x2f0] sm:$0xff] }
 0x1ac   :  { %v6080_v0 = vsel %vm1646_vm3, %v1645_v58, %v5920_v53  ;;  %939 = vadd.xlane.f32.xlu0 %v938_v45  ;;  %v886_v29 = vpop.xlane.xlu1 %885  ;;  %v1094_v7 = vsel %vm331_vm0, %v225_v54, 0.0  ;;  %v1178_v58 = vsel %vm331_vm0, %v253_v1, 0.0 }
 0x1ad   :  { %v868_v49 = vpop.xlane.xlu0 %867  ;;  %v1757_v53 = vrot.slane %v886_v29, %v4756_v32 }
 0x1ae   :  { %v1727_v3 = vrot.slane %v868_v49, %v4763_v35 }
 0x1af   :  { %1074 = vadd.xlane.f32.xlu1 %v1073_v4 }
 0x1b0   :  { %v6094_v15 = vsel %vm1639_vm2, %v1727_v3, %v5933_v55  ;;  %960 = vadd.xlane.f32.xlu0 %v959_v13  ;;  %v1021_v38 = vpop.xlane.xlu1 %1020  ;;  %v239_v55 = vld [vmem:[%s7337_s1 + $0x360] sm:$0xff]  ;;  %v1355_v13 = vsel %vm331_vm0, %v312_v2, 0.0 }
 0x1b1   :  { %v1976_v42 = vrot.slane %v1021_v38, %v4772_v41  ;;  %v889_v33 = vpop.xlane.xlu0 %888  ;;  %v1136_v26 = vsel %vm331_vm0, %v239_v55, 0.0 }
 0x1b2   :  { %v1761_v52 = vrot.slane %v889_v33, %v4769_v37 }
 0x1b3   :  { %v6108_v50 = vsel %vm1660_vm5, %v1976_v42, %v5951_v22  ;;  %1116 = vadd.xlane.f32.xlu1 %v1115_v39 }
 0x1b4   :  { %v6111_v14 = vsel %vm1632_vm1, %v1761_v52, %v1757_v53  ;;  %1095 = vadd.xlane.f32.xlu0 %v1094_v7  ;;  %v1066_v17 = vpop.xlane.xlu1 %1065  ;;  %v328_v53 = vld [vmem:[%s7337_s1 + $0x628] sm:$0xff]  ;;  %v146_v52 = vld [vmem:[%s7337_s1 + $0x78] sm:$0xff] }
 0x1b5   :  { %v2049_v27 = vrot.slane %v1066_v17, %v4777_v46  ;;  %v1045_v34 = vpop.xlane.xlu0 %1044  ;;  %v1403_v42 = vsel %vm331_vm0, %v328_v53, 0.0  ;;  %v138_v17 = vld [vmem:[%s7337_s1 + $0x38] sm:$0xff] }
 0x1b6   :  { %v2015_v22 = vrot.slane %v1045_v34, %v4772_v41 }
 0x1b7   :  { %v6125_v31 = vsel %vm1653_vm4, %v2049_v27, %v5969_v8  ;;  %1158 = vadd.xlane.f32.xlu1 %v1157_v20 }
 0x1b8   :  { %v6129_v43 = vsel %vm1660_vm5, %v2015_v22, %v5947_v57  ;;  %1137 = vadd.xlane.f32.xlu0 %v1136_v26  ;;  %v1108_v44 = vpop.xlane.xlu1 %1107  ;;  %v305_v57 = vld [vmem:[%s7337_s1 + $0x570] sm:$0xff]  ;;  %v857_v26 = vsel %vm331_vm0, %v146_v52, 0.0 }
 0x1b9   :  { %v2117_v45 = vrot.slane %v1108_v44, %v4763_v35  ;;  %v1087_v56 = vpop.xlane.xlu0 %1086  ;;  %v1334_v54 = vsel %vm331_vm0, %v305_v57, 0.0  ;;  %v833_v44 = vsel %vm331_vm0, %v138_v17, 0.0 }
 0x1ba   :  { %v2083_v8 = vrot.slane %v1087_v56, %v4766_v36 }
 0x1bb   :  { %v6143_v29 = vsel %vm1639_vm2, %v2117_v45, %v5982_v51  ;;  %1314 = vadd.xlane.f32.xlu1 %v1313_v63 }
 0x1bc   :  { %v6147_v4 = vsel %vm1646_vm3, %v2083_v8, %v5965_v21  ;;  %1179 = vadd.xlane.f32.xlu0 %v1178_v58  ;;  %v1129_v49 = vpop.xlane.xlu1 %1128  ;;  %v319_v21 = vld [vmem:[%s7337_s1 + $0x5e0] sm:$0xff] }
 0x1bd   :  { %v2151_v24 = vrot.slane %v1129_v49, %v4769_v37  ;;  %v1126_v3 = vpop.xlane.xlu0 %1125  ;;  %v1376_v18 = vsel %vm331_vm0, %v319_v21, 0.0 }
 0x1be   :  { %v2147_v51 = vrot.slane %v1126_v3, %v4756_v32 }
 0x1bf   :  { %1356 = vadd.xlane.f32.xlu1 %v1355_v13  ;;  %v174_v13 = vld [vmem:[%s7337_s1 + $0x158] sm:$0xff] }
 0x1c0   :  { %v6160_v38 = vsel %vm1632_vm1, %v2151_v24, %v2147_v51  ;;  %1335 = vadd.xlane.f32.xlu0 %v1334_v54  ;;  %v1243_v39 = vpop.xlane.xlu1 %1242  ;;  %v941_v53 = vsel %vm331_vm0, %v174_v13, 0.0 }
 0x1c1   :  { %v2337_v33 = vrot.slane %v1243_v39, %v4790_v60  ;;  %v1219_v7 = vpop.xlane.xlu0 %1218  ;;  %v187_v39 = vld [vmem:[%s7337_s1 + $0x1c0] sm:$0xff] }
 0x1c2   :  { %v2298_v55 = vrot.slane %v1219_v7, %v4790_v60 }
 0x1c3   :  { %v2338_v20 = vsel %vm1674_vm7, %v2337_v33, %v5996_v19  ;;  %1404 = vadd.xlane.f32.xlu1 %v1403_v42  ;;  %v160_v19 = vld [vmem:[%s7337_s1 + $0xe8] sm:$0xff] }
 0x1c4   :  { %v2299_v27 = vsel %vm1674_vm7, %v2298_v55, %v6000_v5  ;;  %1377 = vadd.xlane.f32.xlu0 %v1376_v18  ;;  %v1285_v34 = vpop.xlane.xlu1 %1284  ;;  %v153_v5 = vld [vmem:[%s7337_s1 + $0xb0] sm:$0xff]  ;;  %v899_v2 = vsel %vm331_vm0, %v160_v19, 0.0  ;;  %v980_v18 = vsel %vm331_vm0, %v187_v39, 0.0 }
 0x1c5   :  { %v6178_v62 = vsel %vm2612_vm8, %v2338_v20, %v2299_v27  ;;  %v2405_v22 = vrot.slane %v1285_v34, %v4772_v41  ;;  %v1264_v1 = vpop.xlane.xlu0 %1263  ;;  %v878_v49 = vsel %vm331_vm0, %v153_v5, 0.0  ;;  %v226_v20 = vld [vmem:[%s7337_s1 + $0x2f8] sm:$0xff]  ;;  %v240_v5 = vld [vmem:[%s7337_s1 + $0x368] sm:$0xff] }
 0x1c6   :  { %v2371_v63 = vrot.slane %v1264_v1, %v4802_v6  ;;  %v1097_v1 = vsel %vm331_vm0, %v226_v20, 0.0 }
 0x1c7   :  { %v6191_v45 = vsel %vm1660_vm5, %v2405_v22, %v6014_v28  ;;  %858 = vadd.xlane.f32.xlu1 %v857_v26 }
 0x1c8   :  { %v6195_v56 = vsel %vm1667_vm6, %v2371_v63, %v6018_v59  ;;  %834 = vadd.xlane.f32.xlu0 %v833_v44  ;;  %v1327_v58 = vpop.xlane.xlu1 %1326  ;;  %v167_v59 = vld [vmem:[%s7337_s1 + $0x120] sm:$0xff] }
 0x1c9   :  { %v2473_v8 = vrot.slane %v1327_v58, %v4766_v36  ;;  %v1306_v57 = vpop.xlane.xlu0 %1305  ;;  %v920_v21 = vsel %vm331_vm0, %v167_v59, 0.0  ;;  %v233_v58 = vld [vmem:[%s7337_s1 + $0x330] sm:$0xff] }
 0x1ca   :  { %v2439_v28 = vrot.slane %v1306_v57, %v4777_v46  ;;  %v1118_v59 = vsel %vm331_vm0, %v233_v58, 0.0 }
 0x1cb   :  { %v6209_v24 = vsel %vm1646_vm3, %v2473_v8, %v6032_v61  ;;  %900 = vadd.xlane.f32.xlu1 %v899_v2  ;;  %v181_v61 = vld [vmem:[%s7337_s1 + $0x190] sm:$0xff] }
 0x1cc   :  { %v6213_v3 = vsel %vm1653_vm4, %v2439_v28, %v6036_v9  ;;  %879 = vadd.xlane.f32.xlu0 %v878_v49  ;;  %v1366_v54 = vpop.xlane.xlu1 %1365  ;;  %v962_v17 = vsel %vm331_vm0, %v181_v61, 0.0  ;;  %v1139_v49 = vsel %vm331_vm0, %v240_v5, 0.0 }
 0x1cd   :  { %v1348_v51 = vpop.xlane.xlu0 %1347  ;;  %v2537_v9 = vrot.slane %v1366_v54, %v4756_v32  ;;  %v254_v54 = vld [vmem:[%s7337_s1 + $0x3d8] sm:$0xff] }
 0x1ce   :  { %v2507_v42 = vrot.slane %v1348_v51, %v4763_v35  ;;  %v1181_v39 = vsel %vm331_vm0, %v254_v54, 0.0 }
 0x1cf   :  { %942 = vadd.xlane.f32.xlu1 %v941_v53 }
 0x1d0   :  { %v6227_v33 = vsel %vm1639_vm2, %v2507_v42, %v6049_v48  ;;  %921 = vadd.xlane.f32.xlu0 %v920_v21  ;;  %v1396_v7 = vpop.xlane.xlu1 %1395  ;;  %v188_v48 = vld [vmem:[%s7337_s1 + $0x1c8] sm:$0xff] }
 0x1d1   :  { %v2585_v52 = vrot.slane %v1396_v7, %v4763_v35  ;;  %v1369_v55 = vpop.xlane.xlu0 %1368  ;;  %v983_v63 = vsel %vm331_vm0, %v188_v48, 0.0  ;;  %v313_v7 = vld [vmem:[%s7337_s1 + $0x5b0] sm:$0xff] }
 0x1d2   :  { %v2541_v27 = vrot.slane %v1369_v55, %v4769_v37  ;;  %v1358_v55 = vsel %vm331_vm0, %v313_v7, 0.0  ;;  %v329_v48 = vld [vmem:[%s7337_s1 + $0x630] sm:$0xff] }
 0x1d3   :  { %v6241_v34 = vsel %vm1639_vm2, %v2585_v52, %v6062_v23  ;;  %981 = vadd.xlane.f32.xlu1 %v980_v18  ;;  %v1406_v5 = vsel %vm331_vm0, %v329_v48, 0.0 }
 0x1d4   :  { %v6244_v26 = vsel %vm1632_vm1, %v2541_v27, %v2537_v9  ;;  %963 = vadd.xlane.f32.xlu0 %v962_v17  ;;  %v850_v22 = vpop.xlane.xlu1 %849 }
 0x1d5   :  { %v1698_v44 = vrot.slane %v850_v22, %v4777_v46  ;;  %v826_v19 = vpop.xlane.xlu0 %825 }
 0x1d6   :  { %v1652_v23 = vrot.slane %v826_v19, %v4777_v46 }
 0x1d7   :  { %v6258_v2 = vsel %vm1653_vm4, %v1698_v44, %v6076_v25  ;;  %1098 = vadd.xlane.f32.xlu1 %v1097_v1  ;;  %v320_v1 = vld [vmem:[%s7337_s1 + $0x5e8] sm:$0xff] }
 0x1d8   :  { %v6262_v8 = vsel %vm1653_vm4, %v1652_v23, %v6080_v0  ;;  %984 = vadd.xlane.f32.xlu0 %v983_v63  ;;  %v892_v57 = vpop.xlane.xlu1 %891  ;;  %v247_v0 = vld [vmem:[%s7337_s1 + $0x3a0] sm:$0xff] }
 0x1d9   :  { %v1766_v13 = vrot.slane %v892_v57, %v4763_v35  ;;  %v871_v28 = vpop.xlane.xlu0 %870  ;;  %v1160_v9 = vsel %vm331_vm0, %v247_v0, 0.0  ;;  %v1379_v57 = vsel %vm331_vm0, %v320_v1, 0.0 }
 0x1da   :  { %v1732_v25 = vrot.slane %v871_v28, %v4766_v36 }
 0x1db   :  { %v6276_v53 = vsel %vm1639_vm2, %v1766_v13, %v6111_v14  ;;  %1140 = vadd.xlane.f32.xlu1 %v1139_v49  ;;  %v161_v49 = vld [vmem:[%s7337_s1 + $0xf0] sm:$0xff] }
 0x1dc   :  { %v6280_v51 = vsel %vm1646_vm3, %v1732_v25, %v6094_v15  ;;  %1119 = vadd.xlane.f32.xlu0 %v1118_v59  ;;  %v913_v21 = vpop.xlane.xlu1 %912  ;;  %v306_v15 = vld [vmem:[%s7337_s1 + $0x578] sm:$0xff]  ;;  %v902_v54 = vsel %vm331_vm0, %v161_v49, 0.0 }
 0x1dd   :  { %v1800_v42 = vrot.slane %v913_v21, %v4769_v37  ;;  %v910_v61 = vpop.xlane.xlu0 %909  ;;  %v1337_v27 = vsel %vm331_vm0, %v306_v15, 0.0 }
 0x1de   :  { %v1796_v14 = vrot.slane %v910_v61, %v4756_v32 }
 0x1df   :  { %1182 = vadd.xlane.f32.xlu1 %v1181_v39  ;;  %v175_v39 = vld [vmem:[%s7337_s1 + $0x160] sm:$0xff] }
 0x1e0   :  { %v6293_v18 = vsel %vm1632_vm1, %v1800_v42, %v1796_v14  ;;  %1161 = vadd.xlane.f32.xlu0 %v1160_v9  ;;  %v1048_v52 = vpop.xlane.xlu1 %1047  ;;  %v944_v7 = vsel %vm331_vm0, %v175_v39, 0.0 }
 0x1e1   :  { %v2020_v17 = vrot.slane %v1048_v52, %v4802_v6  ;;  %v1024_v20 = vpop.xlane.xlu0 %1023 }
 0x1e2   :  { %v1981_v22 = vrot.slane %v1024_v20, %v4802_v6 }
 0x1e3   :  { %v6307_v44 = vsel %vm1667_vm6, %v2020_v17, %v6129_v43  ;;  %1359 = vadd.xlane.f32.xlu1 %v1358_v55  ;;  %v189_v55 = vld [vmem:[%s7337_s1 + $0x1d0] sm:$0xff] }
 0x1e4   :  { %v6311_v19 = vsel %vm1667_vm6, %v1981_v22, %v6108_v50  ;;  %1338 = vadd.xlane.f32.xlu0 %v1337_v27  ;;  %v1090_v63 = vpop.xlane.xlu1 %1089  ;;  %v154_v50 = vld [vmem:[%s7337_s1 + $0xb8] sm:$0xff]  ;;  %v986_v27 = vsel %vm331_vm0, %v189_v55, 0.0 }
 0x1e5   :  { %v2088_v23 = vrot.slane %v1090_v63, %v4777_v46  ;;  %v1069_v58 = vpop.xlane.xlu0 %1068  ;;  %v881_v21 = vsel %vm331_vm0, %v154_v50, 0.0  ;;  %v241_v63 = vld [vmem:[%s7337_s1 + $0x370] sm:$0xff] }
 0x1e6   :  { %v2054_v43 = vrot.slane %v1069_v58, %v4772_v41 }
 0x1e7   :  { %v6325_v13 = vsel %vm1653_vm4, %v2088_v23, %v6147_v4  ;;  %1407 = vadd.xlane.f32.xlu1 %v1406_v5  ;;  %v234_v23 = vld [vmem:[%s7337_s1 + $0x338] sm:$0xff] }
 0x1e8   :  { %v6329_v28 = vsel %vm1660_vm5, %v2054_v43, %v6125_v31  ;;  %1380 = vadd.xlane.f32.xlu0 %v1379_v57  ;;  %v1132_v59 = vpop.xlane.xlu1 %1131  ;;  %v168_v31 = vld [vmem:[%s7337_s1 + $0x128] sm:$0xff]  ;;  %v1142_v43 = vsel %vm331_vm0, %v241_v63, 0.0 }
 0x1e9   :  { %v2156_v25 = vrot.slane %v1132_v59, %v4763_v35  ;;  %v1111_v0 = vpop.xlane.xlu0 %1110  ;;  %v923_v52 = vsel %vm331_vm0, %v168_v31, 0.0 }
 0x1ea   :  { %v2122_v4 = vrot.slane %v1111_v0, %v4766_v36 }
 0x1eb   :  { %v6343_v42 = vsel %vm1639_vm2, %v2156_v25, %v6160_v38  ;;  %903 = vadd.xlane.f32.xlu1 %v902_v54  ;;  %v1121_v25 = vsel %vm331_vm0, %v234_v23, 0.0 }
 0x1ec   :  { %v6347_v61 = vsel %vm1646_vm3, %v2122_v4, %v6143_v29  ;;  %882 = vadd.xlane.f32.xlu0 %v881_v21  ;;  %v1153_v9 = vpop.xlane.xlu1 %1152  ;;  %v182_v29 = vld [vmem:[%s7337_s1 + $0x198] sm:$0xff] }
 0x1ed   :  { %v2190_v14 = vrot.slane %v1153_v9, %v4769_v37  ;;  %v1150_v15 = vpop.xlane.xlu0 %1149  ;;  %v965_v1 = vsel %vm331_vm0, %v182_v29, 0.0 }
 0x1ee   :  { %v2186_v38 = vrot.slane %v1150_v15, %v4756_v32 }
 0x1ef   :  { %945 = vadd.xlane.f32.xlu1 %v944_v7 }
 0x1f0   :  { %v6360_v17 = vsel %vm1632_vm1, %v2190_v14, %v2186_v38  ;;  %924 = vadd.xlane.f32.xlu0 %v923_v52  ;;  %v1288_v20 = vpop.xlane.xlu1 %1287  ;;  %v321_v14 = vld [vmem:[%s7337_s1 + $0x5f0] sm:$0xff] }
 0x1f1   :  { %v2410_v48 = vrot.slane %v1288_v20, %v4802_v6  ;;  %v1267_v22 = vpop.xlane.xlu0 %1266  ;;  %v1382_v38 = vsel %vm331_vm0, %v321_v14, 0.0 }
 0x1f2   :  { %v2376_v5 = vrot.slane %v1267_v22, %v4790_v60 }
 0x1f3   :  { %v6374_v58 = vsel %vm1667_vm6, %v2410_v48, %v6191_v45  ;;  %987 = vadd.xlane.f32.xlu1 %v986_v27  ;;  %v255_v45 = vld [vmem:[%s7337_s1 + $0x3e0] sm:$0xff]  ;;  %v162_v48 = vld [vmem:[%s7337_s1 + $0xf8] sm:$0xff] }
 0x1f4   :  { %v2377_v57 = vsel %vm1674_vm7, %v2376_v5, %v6195_v56  ;;  %966 = vadd.xlane.f32.xlu0 %v965_v1  ;;  %v1330_v49 = vpop.xlane.xlu1 %1329  ;;  %v248_v56 = vld [vmem:[%s7337_s1 + $0x3a8] sm:$0xff]  ;;  %v1184_v4 = vsel %vm331_vm0, %v255_v45, 0.0  ;;  %v905_v5 = vsel %vm331_vm0, %v162_v48, 0.0 }
 0x1f5   :  { %v6381_v50 = vsel %vm2614_vm9, %v2377_v57, %v6178_v62  ;;  %v2478_v59 = vrot.slane %v1330_v49, %v4777_v46  ;;  %v1309_v54 = vpop.xlane.xlu0 %1308  ;;  %v1163_v7 = vsel %vm331_vm0, %v248_v56, 0.0 }
 0x1f6   :  { %v2444_v0 = vrot.slane %v1309_v54, %v4772_v41 }
 0x1f7   :  { %v6394_v21 = vsel %vm1653_vm4, %v2478_v59, %v6209_v24  ;;  %1143 = vadd.xlane.f32.xlu1 %v1142_v43  ;;  %v176_v43 = vld [vmem:[%s7337_s1 + $0x168] sm:$0xff] }
 0x1f8   :  { %v6398_v62 = vsel %vm1660_vm5, %v2444_v0, %v6213_v3  ;;  %1122 = vadd.xlane.f32.xlu0 %v1121_v25  ;;  %v1372_v39 = vpop.xlane.xlu1 %1371  ;;  %v314_v3 = vld [vmem:[%s7337_s1 + $0x5b8] sm:$0xff]  ;;  %v947_v45 = vsel %vm331_vm0, %v176_v43, 0.0 }
 0x1f9   :  { %v2546_v31 = vrot.slane %v1372_v39, %v4763_v35  ;;  %v1351_v9 = vpop.xlane.xlu0 %1350  ;;  %v1361_v27 = vsel %vm331_vm0, %v314_v3, 0.0 }
 0x1fa   :  { %v2512_v24 = vrot.slane %v1351_v9, %v4766_v36 }
 0x1fb   :  { %v6412_v15 = vsel %vm1639_vm2, %v2546_v31, %v6244_v26  ;;  %1185 = vadd.xlane.f32.xlu1 %v1184_v4  ;;  %v190_v4 = vld [vmem:[%s7337_s1 + $0x1d8] sm:$0xff] }
 0x1fc   :  { %v6416_v52 = vsel %vm1646_vm3, %v2512_v24, %v6227_v33  ;;  %1164 = vadd.xlane.f32.xlu0 %v1163_v7  ;;  %v829_v55 = vpop.xlane.xlu1 %828  ;;  %v330_v33 = vld [vmem:[%s7337_s1 + $0x638] sm:$0xff]  ;;  %v989_v14 = vsel %vm331_vm0, %v190_v4, 0.0 }
 0x1fd   :  { %v1659_v29 = vrot.slane %v829_v55, %v4772_v41  ;;  %v1399_v20 = vpop.xlane.xlu0 %1398  ;;  %v1409_v49 = vsel %vm331_vm0, %v330_v33, 0.0 }
 0x1fe   :  { %v2590_v26 = vrot.slane %v1399_v20, %v4766_v36 }
 0x1ff   :  { %v6430_v22 = vsel %vm1660_vm5, %v1659_v29, %v6262_v8  ;;  %1383 = vadd.xlane.f32.xlu1 %v1382_v38  ;;  %v249_v38 = vld [vmem:[%s7337_s1 + $0x3b0] sm:$0xff] }
 0x200   :  { %v6434_v1 = vsel %vm1646_vm3, %v2590_v26, %v6241_v34  ;;  %1362 = vadd.xlane.f32.xlu0 %v1361_v27  ;;  %v874_v63 = vpop.xlane.xlu1 %873  ;;  %v169_v34 = vld [vmem:[%s7337_s1 + $0x130] sm:$0xff]  ;;  %v1166_v27 = vsel %vm331_vm0, %v249_v38, 0.0 }
 0x201   :  { %v1737_v23 = vrot.slane %v874_v63, %v4777_v46  ;;  %v853_v57 = vpop.xlane.xlu0 %852  ;;  %v926_v39 = vsel %vm331_vm0, %v169_v34, 0.0  ;;  %v322_v63 = vld [vmem:[%s7337_s1 + $0x5f8] sm:$0xff] }
 0x202   :  { %v1703_v8 = vrot.slane %v853_v57, %v4772_v41 }
 0x203   :  { %v6448_v59 = vsel %vm1653_vm4, %v1737_v23, %v6280_v51  ;;  %906 = vadd.xlane.f32.xlu1 %v905_v5  ;;  %v256_v23 = vld [vmem:[%s7337_s1 + $0x3e8] sm:$0xff] }
 0x204   :  { %v6452_v54 = vsel %vm1660_vm5, %v1703_v8, %v6258_v2  ;;  %1410 = vadd.xlane.f32.xlu0 %v1409_v49  ;;  %v916_v25 = vpop.xlane.xlu1 %915  ;;  %v183_v2 = vld [vmem:[%s7337_s1 + $0x1a0] sm:$0xff]  ;;  %v1385_v8 = vsel %vm331_vm0, %v322_v63, 0.0 }
 0x205   :  { %v1805_v0 = vrot.slane %v916_v25, %v4763_v35  ;;  %v895_v56 = vpop.xlane.xlu0 %894  ;;  %v968_v55 = vsel %vm331_vm0, %v183_v2, 0.0 }
 0x206   :  { %v1771_v51 = vrot.slane %v895_v56, %v4766_v36  ;;  %v4430_v56 = vmov 0.0  }
 0x207   :  { %v6466_v31 = vsel %vm1639_vm2, %v1805_v0, %v6293_v18  ;;  %948 = vadd.xlane.f32.xlu1 %v947_v45  ;;  %v1187_v0 = vsel %vm331_vm0, %v256_v23, 0.0  ;;  %4412 = vmatprep.subr.mxu0 %v4430_v56 }
 0x208   :  { %v6470_v9 = vsel %vm1646_vm3, %v1771_v51, %v6276_v53  ;;  %927 = vadd.xlane.f32.xlu0 %v926_v39  ;;  %v937_v7 = vpop.xlane.xlu1 %936  ;;  %v242_v53 = vld [vmem:[%s7337_s1 + $0x378] sm:$0xff]  ;;  %4420 = vmatprep.mubr.msk.f32.mxu0 %vm4431_vm14, %v4430_v56  ;;  %vm2646_vm14 = vcmask 1040384  }
 0x209   :  { %v1839_v24 = vrot.slane %v937_v7, %v4769_v37  ;;  %v934_v3 = vpop.xlane.xlu0 %933  ;;  %v1145_v33 = vsel %vm331_vm0, %v242_v53, 0.0  ;;  %v170_v39 = vld [vmem:[%s7337_s1 + $0x138] sm:$0xff] }
 0x20a   :  { %v1835_v18 = vrot.slane %v934_v3, %v4756_v32  ;;  %v929_v3 = vsel %vm331_vm0, %v170_v39, 0.0 }
 0x20b   :  { %990 = vadd.xlane.f32.xlu1 %v989_v14 }
 0x20c   :  { %v6483_v29 = vsel %vm1632_vm1, %v1839_v24, %v1835_v18  ;;  %969 = vadd.xlane.f32.xlu0 %v968_v55  ;;  %v1051_v20 = vpop.xlane.xlu1 %1050  ;;  %v191_v55 = vld [vmem:[%s7337_s1 + $0x1e0] sm:$0xff] }
 0x20d   :  { %v2025_v48 = vrot.slane %v1051_v20, %v4790_v60  ;;  %v1027_v26 = vpop.xlane.xlu0 %1026  ;;  %v992_v20 = vsel %vm331_vm0, %v191_v55, 0.0 }
 0x20e   :  { %v1986_v5 = vrot.slane %v1027_v26, %v4790_v60  ;;  %v257_v26 = vld [vmem:[%s7337_s1 + $0x3f0] sm:$0xff] }
 0x20f   :  { %v2026_v57 = vsel %vm1674_vm7, %v2025_v48, %v6307_v44  ;;  %1167 = vadd.xlane.f32.xlu1 %v1166_v27  ;;  %v177_v44 = vld [vmem:[%s7337_s1 + $0x170] sm:$0xff]  ;;  %v1190_v23 = vsel %vm331_vm0, %v257_v26, 0.0 }
 0x210   :  { %v1987_v49 = vsel %vm1674_vm7, %v1986_v5, %v6311_v19  ;;  %1146 = vadd.xlane.f32.xlu0 %v1145_v33  ;;  %v1093_v43 = vpop.xlane.xlu1 %1092  ;;  %v950_v7 = vsel %vm331_vm0, %v177_v44, 0.0 }
 0x211   :  { %v6501_v34 = vsel %vm2612_vm8, %v2026_v57, %v1987_v49  ;;  %v2093_v25 = vrot.slane %v1093_v43, %v4772_v41  ;;  %v1072_v45 = vpop.xlane.xlu0 %1071 }
 0x212   :  { %v2059_v19 = vrot.slane %v1072_v45, %v4802_v6 }
 0x213   :  { %v6515_v4 = vsel %vm1660_vm5, %v2093_v25, %v6325_v13  ;;  %1386 = vadd.xlane.f32.xlu1 %v1385_v8  ;;  %v185_v8 = vld [vmem:[%s7337_s1 + $0x1b0] sm:$0xff] }
 0x214   :  { %v6519_v51 = vsel %vm1667_vm6, %v2059_v19, %v6329_v28  ;;  %1188 = vadd.xlane.f32.xlu0 %v1187_v0  ;;  %v1135_v2 = vpop.xlane.xlu1 %1134  ;;  %v184_v28 = vld [vmem:[%s7337_s1 + $0x1a8] sm:$0xff]  ;;  %v974_v39 = vsel %vm331_vm0, %v185_v8, 0.0 }
 0x215   :  { %v2161_v14 = vrot.slane %v1135_v2, %v4766_v36  ;;  %v1114_v24 = vpop.xlane.xlu0 %1113  ;;  %v971_v48 = vsel %vm331_vm0, %v184_v28, 0.0 }
 0x216   :  { %v2127_v13 = vrot.slane %v1114_v24, %v4777_v46 }
 0x217   :  { %v6533_v38 = vsel %vm1646_vm3, %v2161_v14, %v6343_v42  ;;  %951 = vadd.xlane.f32.xlu1 %v950_v7  ;;  %v250_v42 = vld [vmem:[%s7337_s1 + $0x3b8] sm:$0xff] }
 0x218   :  { %v6537_v18 = vsel %vm1653_vm4, %v2127_v13, %v6347_v61  ;;  %930 = vadd.xlane.f32.xlu0 %v929_v3  ;;  %v1174_v53 = vpop.xlane.xlu1 %1173  ;;  %v1169_v43 = vsel %vm331_vm0, %v250_v42, 0.0 }
 0x219   :  { %v1156_v27 = vpop.xlane.xlu0 %1155  ;;  %v2225_v61 = vrot.slane %v1174_v53, %v4756_v32 }
 0x21a   :  { %v2195_v33 = vrot.slane %v1156_v27, %v4763_v35 }
 0x21b   :  { %993 = vadd.xlane.f32.xlu1 %v992_v20 }
 0x21c   :  { %v6551_v63 = vsel %vm1639_vm2, %v2195_v33, %v6360_v17  ;;  %972 = vadd.xlane.f32.xlu0 %v971_v48  ;;  %v1291_v5 = vpop.xlane.xlu1 %1290  ;;  %v178_v17 = vld [vmem:[%s7337_s1 + $0x178] sm:$0xff]  ;;  %v193_v48 = vld [vmem:[%s7337_s1 + $0x1f0] sm:$0xff] }
 0x21d   :  { %v2415_v57 = vrot.slane %v1291_v5, %v4790_v60  ;;  %v1177_v49 = vpop.xlane.xlu0 %1176  ;;  %v953_v14 = vsel %vm331_vm0, %v178_v17, 0.0 }
 0x21e   :  { %v2229_v25 = vrot.slane %v1177_v49, %v4769_v37  ;;  %v91_v49 = vld [vmem:[%s7336_s0 + $0x280] sm:$0xff] }
 0x21f   :  { %v2416_v45 = vsel %vm1674_vm7, %v2415_v57, %v6374_v58  ;;  %1191 = vadd.xlane.f32.xlu1 %v1190_v23  ;;  %v258_v58 = vld [vmem:[%s7337_s1 + $0x3f8] sm:$0xff]  ;;  %v572_v17 = vsel %vm331_vm0, %v91_v49, 0.0 }
 0x220   :  { %v6567_v0 = vsel %vm2616_vm10, %v2416_v45, %v6381_v50  ;;  %v6570_v44 = vsel %vm1632_vm1, %v2229_v25, %v2225_v61  ;;  %1170 = vadd.xlane.f32.xlu0 %v1169_v43  ;;  %v1333_v19 = vpop.xlane.xlu1 %1332  ;;  %v192_v50 = vld [vmem:[%s7337_s1 + $0x1e8] sm:$0xff]  ;;  %v1193_v28 = vsel %vm331_vm0, %v258_v58, 0.0  ;;  %v998_v61 = vsel %vm331_vm0, %v193_v48, 0.0 }
 0x221   :  { %v2483_v2 = vrot.slane %v1333_v19, %v4772_v41  ;;  %v1312_v7 = vpop.xlane.xlu0 %1311  ;;  %v995_v27 = vsel %vm331_vm0, %v192_v50, 0.0 }
 0x222   :  { %v2449_v24 = vrot.slane %v1312_v7, %v4802_v6 }
 0x223   :  { %v6584_v3 = vsel %vm1660_vm5, %v2483_v2, %v6394_v21  ;;  %975 = vadd.xlane.f32.xlu1 %v974_v39  ;;  %v93_v2 = vld [vmem:[%s7336_s0 + $0x290] sm:$0xff] }
 0x224   :  { %v6588_v55 = vsel %vm1667_vm6, %v2449_v24, %v6398_v62  ;;  %954 = vadd.xlane.f32.xlu0 %v953_v14  ;;  %v1375_v13 = vpop.xlane.xlu1 %1374  ;;  %v186_v62 = vld [vmem:[%s7337_s1 + $0x1b8] sm:$0xff]  ;;  %v578_v24 = vsel %vm331_vm0, %v93_v2, 0.0 }
 0x225   :  { %v2551_v53 = vrot.slane %v1375_v13, %v4766_v36  ;;  %v1354_v20 = vpop.xlane.xlu0 %1353  ;;  %v977_v57 = vsel %vm331_vm0, %v186_v62, 0.0 }
 0x226   :  { %v2517_v21 = vrot.slane %v1354_v20, %v4777_v46 }
 0x227   :  { %v6602_v26 = vsel %vm1646_vm3, %v2551_v53, %v6412_v15  ;;  %1194 = vadd.xlane.f32.xlu1 %v1193_v28  ;;  %v100_v53 = vld [vmem:[%s7336_s0 + $0x2c8] sm:$0xff] }
 0x228   :  { %v6606_v33 = vsel %vm1653_vm4, %v2517_v21, %v6416_v52  ;;  %996 = vadd.xlane.f32.xlu0 %v995_v27  ;;  %v832_v42 = vpop.xlane.xlu1 %831  ;;  %v194_v52 = vld [vmem:[%s7337_s1 + $0x1f8] sm:$0xff]  ;;  %v599_v21 = vsel %vm331_vm0, %v100_v53, 0.0 }
 0x229   :  { %v1666_v5 = vrot.slane %v832_v42, %v4802_v6  ;;  %v1402_v23 = vpop.xlane.xlu0 %1401  ;;  %v1001_v39 = vsel %vm331_vm0, %v194_v52, 0.0 }
 0x22a   :  { %v2595_v15 = vrot.slane %v1402_v23, %v4777_v46 }
 0x22b   :  { %v6620_v43 = vsel %vm1667_vm6, %v1666_v5, %v6430_v22  ;;  %999 = vadd.xlane.f32.xlu1 %v998_v61  ;;  %v101_v61 = vld [vmem:[%s7336_s0 + $0x2d0] sm:$0xff] }
 0x22c   :  { %v6624_v8 = vsel %vm1653_vm4, %v2595_v15, %v6434_v1  ;;  %978 = vadd.xlane.f32.xlu0 %v977_v57  ;;  %v877_v25 = vpop.xlane.xlu1 %876  ;;  %v92_v1 = vld [vmem:[%s7336_s0 + $0x288] sm:$0xff]  ;;  %v602_v49 = vsel %vm331_vm0, %v101_v61, 0.0 }
 0x22d   :  { %v1742_v45 = vrot.slane %v877_v25, %v4772_v41  ;;  %v856_v19 = vpop.xlane.xlu0 %855  ;;  %v575_v28 = vsel %vm331_vm0, %v92_v1, 0.0 }
 0x22e   :  { %v1708_v22 = vrot.slane %v856_v19, %v4802_v6 }
 0x22f   :  { %v6638_v7 = vsel %vm1660_vm5, %v1742_v45, %v6448_v59  ;;  %573 = vadd.xlane.f32.xlu1 %v572_v17  ;;  %v108_v17 = vld [vmem:[%s7336_s0 + $0x308] sm:$0xff] }
 0x230   :  { %v6642_v14 = vsel %vm1667_vm6, %v1708_v22, %v6452_v54  ;;  %1002 = vadd.xlane.f32.xlu0 %v1001_v39  ;;  %v919_v58 = vpop.xlane.xlu1 %918  ;;  %v99_v54 = vld [vmem:[%s7336_s0 + $0x2c0] sm:$0xff]  ;;  %v623_v1 = vsel %vm331_vm0, %v108_v17, 0.0 }
 0x231   :  { %v1810_v50 = vrot.slane %v919_v58, %v4766_v36  ;;  %v898_v13 = vpop.xlane.xlu0 %897  ;;  %v596_v42 = vsel %vm331_vm0, %v99_v54, 0.0 }
 0x232   :  { %v1776_v59 = vrot.slane %v898_v13, %v4777_v46 }
 0x233   :  { %v6656_v20 = vsel %vm1646_vm3, %v1810_v50, %v6466_v31  ;;  %579 = vadd.xlane.f32.xlu1 %v578_v24  ;;  %v94_v31 = vld [vmem:[%s7336_s0 + $0x298] sm:$0xff] }
 0x234   :  { %v6660_v27 = vsel %vm1653_vm4, %v1776_v59, %v6470_v9  ;;  %576 = vadd.xlane.f32.xlu0 %v575_v28  ;;  %v958_v48 = vpop.xlane.xlu1 %957  ;;  %v581_v25 = vsel %vm331_vm0, %v94_v31, 0.0 }
 0x235   :  { %v940_v62 = vpop.xlane.xlu0 %939  ;;  %v1874_v9 = vrot.slane %v958_v48, %v4756_v32 }
 0x236   :  { %v1844_v5 = vrot.slane %v940_v62, %v4763_v35 }
 0x237   :  { %600 = vadd.xlane.f32.xlu1 %v599_v21 }
 0x238   :  { %v6674_v23 = vsel %vm1639_vm2, %v1844_v5, %v6483_v29  ;;  %597 = vadd.xlane.f32.xlu0 %v596_v42  ;;  %v1075_v57 = vpop.xlane.xlu1 %1074  ;;  %v107_v29 = vld [vmem:[%s7336_s0 + $0x300] sm:$0xff] }
 0x239   :  { %v2064_v15 = vrot.slane %v1075_v57, %v4790_v60  ;;  %v961_v52 = vpop.xlane.xlu0 %960  ;;  %v620_v50 = vsel %vm331_vm0, %v107_v29, 0.0  ;;  %v115_v42 = vld [vmem:[%s7336_s0 + $0x340] sm:$0xff] }
 0x23a   :  { %v1878_v45 = vrot.slane %v961_v52, %v4769_v37 }
 0x23b   :  { %v2065_v19 = vsel %vm1674_vm7, %v2064_v15, %v6519_v51  ;;  %603 = vadd.xlane.f32.xlu1 %v602_v49  ;;  %v102_v51 = vld [vmem:[%s7336_s0 + $0x2d8] sm:$0xff] }
 0x23c   :  { %v6690_v39 = vsel %vm2614_vm9, %v2065_v19, %v6501_v34  ;;  %v6693_v2 = vsel %vm1632_vm1, %v1878_v45, %v1874_v9  ;;  %582 = vadd.xlane.f32.xlu0 %v581_v25  ;;  %v1117_v22 = vpop.xlane.xlu1 %1116  ;;  %v95_v34 = vld [vmem:[%s7336_s0 + $0x2a0] sm:$0xff]  ;;  %v605_v54 = vsel %vm331_vm0, %v102_v51, 0.0  ;;  %v644_v9 = vsel %vm331_vm0, %v115_v42, 0.0  ;;  %v90_v42 = vld [vmem:[%s7336_s0 + $0x278] sm:$0xff] }
 0x23d   :  { %v2132_v58 = vrot.slane %v1117_v22, %v4772_v41  ;;  %v1096_v24 = vpop.xlane.xlu0 %1095  ;;  %v584_v62 = vsel %vm331_vm0, %v95_v34, 0.0  ;;  %v123_v34 = vld [vmem:[%s7336_s0 + $0x380] sm:$0xff] }
 0x23e   :  { %v2098_v13 = vrot.slane %v1096_v24, %v4802_v6 }
 0x23f   :  { %v6707_v28 = vsel %vm1660_vm5, %v2132_v58, %v6537_v18  ;;  %624 = vadd.xlane.f32.xlu1 %v623_v1 }
 0x240   :  { %v6711_v53 = vsel %vm1667_vm6, %v2098_v13, %v6515_v4  ;;  %621 = vadd.xlane.f32.xlu0 %v620_v50  ;;  %v1159_v59 = vpop.xlane.xlu1 %1158  ;;  %v109_v4 = vld [vmem:[%s7336_s0 + $0x310] sm:$0xff] }
 0x241   :  { %v2200_v48 = vrot.slane %v1159_v59, %v4766_v36  ;;  %v1138_v21 = vpop.xlane.xlu0 %1137  ;;  %v626_v15 = vsel %vm331_vm0, %v109_v4, 0.0  ;;  %v117_v59 = vld [vmem:[%s7336_s0 + $0x350] sm:$0xff]  ;;  %v124_v4 = vld [vmem:[%s7336_s0 + $0x388] sm:$0xff] }
 0x242   :  { %v2166_v18 = vrot.slane %v1138_v21, %v4777_v46 }
 0x243   :  { %v6725_v61 = vsel %vm1646_vm3, %v2200_v48, %v6551_v63  ;;  %606 = vadd.xlane.f32.xlu1 %v605_v54  ;;  %v96_v63 = vld [vmem:[%s7336_s0 + $0x2a8] sm:$0xff]  ;;  %v668_v54 = vsel %vm331_vm0, %v123_v34, 0.0 }
 0x244   :  { %v6730_v5 = vsel %vm1653_vm4, %v2166_v18, %v6533_v38  ;;  %585 = vadd.xlane.f32.xlu0 %v584_v62  ;;  %v1315_v31 = vpop.xlane.xlu1 %1314  ;;  %v116_v38 = vld [vmem:[%s7336_s0 + $0x348] sm:$0xff]  ;;  %v587_v29 = vsel %vm331_vm0, %v96_v63, 0.0  ;;  %v650_v62 = vsel %vm331_vm0, %v117_v59, 0.0 }
 0x245   :  { %v2454_v57 = vrot.slane %v1315_v31, %v4790_v60  ;;  %v1180_v49 = vpop.xlane.xlu0 %1179  ;;  %v647_v1 = vsel %vm331_vm0, %v116_v38, 0.0  ;;  %v671_v38 = vsel %vm331_vm0, %v124_v4, 0.0 }
 0x246   :  { %v2234_v52 = vrot.slane %v1180_v49, %v4763_v35  ;;  %v569_v49 = vsel %vm331_vm0, %v90_v42, 0.0 }
 0x247   :  { %v2455_v25 = vsel %vm1674_vm7, %v2454_v57, %v6588_v55  ;;  %645 = vadd.xlane.f32.xlu1 %v644_v9  ;;  %v110_v55 = vld [vmem:[%s7336_s0 + $0x318] sm:$0xff] }
 0x248   :  { %v6746_v17 = vsel %vm1639_vm2, %v2234_v52, %v6570_v44  ;;  %627 = vadd.xlane.f32.xlu0 %v626_v15  ;;  %v6748_v45 = vpop.xlane.xlu1 %1356  ;;  %v6753_v19 = vsel %vm2618_vm11, %v2455_v25, %v6567_v0  ;;  %v103_v44 = vld [vmem:[%s7336_s0 + $0x2e0] sm:$0xff]  ;;  %v629_v50 = vsel %vm331_vm0, %v110_v55, 0.0 }
 0x249   :  { %v1336_v22 = vpop.xlane.xlu0 %1335  ;;  %v608_v13 = vsel %vm331_vm0, %v103_v44, 0.0 }
 0x24a   :  { %v2488_v58 = vrot.slane %v1336_v22, %v4802_v6 }
 0x24b   :  { %588 = vadd.xlane.f32.xlu1 %v587_v29 }
 0x24c   :  { %v6765_v24 = vsel %vm1667_vm6, %v2488_v58, %v6584_v3  ;;  %648 = vadd.xlane.f32.xlu0 %v647_v1  ;;  %v6767_v0 = vpop.xlane.xlu1 %1404 }
 0x24d   :  { %v6770_v51 = vpop.xlane.xlu0 %1377 }
 0x24f   :  { %630 = vadd.xlane.f32.xlu1 %v629_v50 }
 0x250   :  { %609 = vadd.xlane.f32.xlu0 %v608_v13  ;;  %v859_v3 = vpop.xlane.xlu1 %858  ;;  %v118_v13 = vld [vmem:[%s7336_s0 + $0x358] sm:$0xff] }
 0x251   :  { %v1713_v48 = vrot.slane %v859_v3, %v4790_v60  ;;  %v835_v21 = vpop.xlane.xlu0 %834 }
 0x252   :  { %v1673_v18 = vrot.slane %v835_v21, %v4790_v60 }
 0x253   :  { %v1714_v31 = vsel %vm1674_vm7, %v1713_v48, %v6642_v14  ;;  %669 = vadd.xlane.f32.xlu1 %v668_v54  ;;  %v104_v14 = vld [vmem:[%s7336_s0 + $0x2e8] sm:$0xff]  ;;  %v653_v54 = vsel %vm331_vm0, %v118_v13, 0.0 }
 0x254   :  { %v1675_v9 = vsel %vm1674_vm7, %v1673_v18, %v6620_v43  ;;  %651 = vadd.xlane.f32.xlu0 %v650_v62  ;;  %v901_v57 = vpop.xlane.xlu1 %900  ;;  %v97_v43 = vld [vmem:[%s7336_s0 + $0x2b0] sm:$0xff]  ;;  %v611_v55 = vsel %vm331_vm0, %v104_v14, 0.0  ;;  %v98_v62 = vld [vmem:[%s7336_s0 + $0x2b8] sm:$0xff] }
 0x255   :  { %v6795_v15 = vsel %vm2612_vm8, %v1714_v31, %v1675_v9  ;;  %v1781_v63 = vrot.slane %v901_v57, %v4772_v41  ;;  %v880_v52 = vpop.xlane.xlu0 %879  ;;  %v590_v50 = vsel %vm331_vm0, %v97_v43, 0.0  ;;  %v593_v31 = vsel %vm331_vm0, %v98_v62, 0.0  ;;  %v113_v62 = vld [vmem:[%s7336_s0 + $0x330] sm:$0xff] }
 0x256   :  { %v1747_v25 = vrot.slane %v880_v52, %v4802_v6 }
 0x257   :  { %v6808_v29 = vsel %vm1660_vm5, %v1781_v63, %v6660_v27  ;;  %570 = vadd.xlane.f32.xlu1 %v569_v49  ;;  %v112_v63 = vld [vmem:[%s7336_s0 + $0x328] sm:$0xff] }
 0x258   :  { %v6812_v22 = vsel %vm1667_vm6, %v1747_v25, %v6638_v7  ;;  %672 = vadd.xlane.f32.xlu0 %v671_v38  ;;  %v943_v1 = vpop.xlane.xlu1 %942  ;;  %v111_v7 = vld [vmem:[%s7336_s0 + $0x320] sm:$0xff] }
 0x259   :  { %v1849_v58 = vrot.slane %v943_v1, %v4766_v36  ;;  %v922_v44 = vpop.xlane.xlu0 %921  ;;  %v632_v21 = vsel %vm331_vm0, %v111_v7, 0.0  ;;  %v635_v1 = vsel %vm331_vm0, %v112_v63, 0.0 }
 0x25a   :  { %v1815_v27 = vrot.slane %v922_v44, %v4777_v46 }
 0x25b   :  { %v6826_v34 = vsel %vm1646_vm3, %v1849_v58, %v6674_v23  ;;  %612 = vadd.xlane.f32.xlu1 %v611_v55  ;;  %v125_v23 = vld [vmem:[%s7336_s0 + $0x390] sm:$0xff] }
 0x25c   :  { %v6830_v59 = vsel %vm1653_vm4, %v1815_v27, %v6656_v20  ;;  %591 = vadd.xlane.f32.xlu0 %v590_v50  ;;  %v982_v3 = vpop.xlane.xlu1 %981  ;;  %v674_v49 = vsel %vm331_vm0, %v125_v23, 0.0 }
 0x25d   :  { %v964_v48 = vpop.xlane.xlu0 %963  ;;  %v1913_v20 = vrot.slane %v982_v3, %v4756_v32 }
 0x25e   :  { %v1883_v42 = vrot.slane %v964_v48, %v4763_v35 }
 0x25f   :  { %654 = vadd.xlane.f32.xlu1 %v653_v54 }
 0x260   :  { %v6844_v18 = vsel %vm1639_vm2, %v1883_v42, %v6693_v2  ;;  %633 = vadd.xlane.f32.xlu0 %v632_v21  ;;  %v1099_v4 = vpop.xlane.xlu1 %1098  ;;  %v105_v2 = vld [vmem:[%s7336_s0 + $0x2f0] sm:$0xff] }
 0x261   :  { %v2103_v9 = vrot.slane %v1099_v4, %v4790_v60  ;;  %v985_v57 = vpop.xlane.xlu0 %984  ;;  %v614_v44 = vsel %vm331_vm0, %v105_v2, 0.0  ;;  %v638_v4 = vsel %vm331_vm0, %v113_v62, 0.0 }
 0x262   :  { %v1917_v52 = vrot.slane %v985_v57, %v4769_v37  ;;  %v127_v57 = vld [vmem:[%s7336_s0 + $0x3a0] sm:$0xff] }
 0x263   :  { %v2104_v38 = vsel %vm1674_vm7, %v2103_v9, %v6711_v53  ;;  %594 = vadd.xlane.f32.xlu1 %v593_v31  ;;  %v126_v53 = vld [vmem:[%s7336_s0 + $0x398] sm:$0xff] }
 0x264   :  { %v6860_v14 = vsel %vm2616_vm10, %v2104_v38, %v6690_v39  ;;  %v6863_v25 = vsel %vm1632_vm1, %v1917_v52, %v1913_v20  ;;  %675 = vadd.xlane.f32.xlu0 %v674_v49  ;;  %v1141_v43 = vpop.xlane.xlu1 %1140  ;;  %v119_v39 = vld [vmem:[%s7336_s0 + $0x360] sm:$0xff]  ;;  %v677_v3 = vsel %vm331_vm0, %v126_v53, 0.0  ;;  %v120_v49 = vld [vmem:[%s7336_s0 + $0x368] sm:$0xff]  ;;  %v680_v52 = vsel %vm331_vm0, %v127_v57, 0.0 }
 0x265   :  { %v2171_v55 = vrot.slane %v1141_v43, %v4772_v41  ;;  %v1120_v58 = vpop.xlane.xlu0 %1119  ;;  %v656_v21 = vsel %vm331_vm0, %v119_v39, 0.0  ;;  %v659_v38 = vsel %vm331_vm0, %v120_v49, 0.0  ;;  %v121_v43 = vld [vmem:[%s7336_s0 + $0x370] sm:$0xff]  ;;  %v122_v39 = vld [vmem:[%s7336_s0 + $0x378] sm:$0xff] }
 0x266   :  { %v2137_v50 = vrot.slane %v1120_v58, %v4802_v6  ;;  %v662_v58 = vsel %vm331_vm0, %v121_v43, 0.0 }
 0x267   :  { %v6877_v13 = vsel %vm1660_vm5, %v2171_v55, %v6730_v5  ;;  %636 = vadd.xlane.f32.xlu1 %v635_v1 }
 0x268   :  { %v6881_v27 = vsel %vm1667_vm6, %v2137_v50, %v6707_v28  ;;  %615 = vadd.xlane.f32.xlu0 %v614_v44  ;;  %v1183_v7 = vpop.xlane.xlu1 %1182  ;;  %v106_v28 = vld [vmem:[%s7336_s0 + $0x2f8] sm:$0xff] }
 0x269   :  { %v2239_v54 = vrot.slane %v1183_v7, %v4766_v36  ;;  %v1162_v48 = vpop.xlane.xlu0 %1161  ;;  %v617_v9 = vsel %vm331_vm0, %v106_v28, 0.0  ;;  %v128_v7 = vld [vmem:[%s7336_s0 + $0x3a8] sm:$0xff] }
 0x26a   :  { %v2205_v5 = vrot.slane %v1162_v48, %v4777_v46  ;;  %v683_v28 = vsel %vm331_vm0, %v128_v7, 0.0 }
 0x26b   :  { %v6895_v42 = vsel %vm1646_vm3, %v2239_v54, %v6746_v17  ;;  %678 = vadd.xlane.f32.xlu1 %v677_v3 }
 0x26c   :  { %v6899_v23 = vsel %vm1653_vm4, %v2205_v5, %v6725_v61  ;;  %657 = vadd.xlane.f32.xlu0 %v656_v21  ;;  %v6901_v20 = vpop.xlane.xlu1 %1359  ;;  %v665_v21 = vsel %vm331_vm0, %v122_v39, 0.0 }
 0x26d   :  { %v1339_v31 = vpop.xlane.xlu0 %1338 }
 0x26e   :  { %v2493_v17 = vrot.slane %v1339_v31, %v4790_v60 }
 0x26f   :  { %639 = vadd.xlane.f32.xlu1 %v638_v4 }
 0x270   :  { %v2494_v61 = vsel %vm1674_vm7, %v2493_v17, %v6765_v24  ;;  %618 = vadd.xlane.f32.xlu0 %v617_v9  ;;  %v6914_v63 = vpop.xlane.xlu1 %1407  ;;  %v114_v24 = vld [vmem:[%s7336_s0 + $0x338] sm:$0xff] }
 0x271   :  { %v6917_v2 = vpop.xlane.xlu0 %1380  ;;  %v2637_v1 = vsel %vm7341_vm12, %v2494_v61, %v6753_v19  ;;  %v641_v50 = vsel %vm331_vm0, %v114_v24, 0.0  ;;  %v4360_v61 = vsel %vm7340_vm15, %v5519_v12, 0.0  ;;  %v2605_v39 = vrot.slane %v6914_v63, %v4802_v6 }
 0x273   :  { %681 = vadd.xlane.f32.xlu1 %v680_v52 }
 0x274   :  { %660 = vadd.xlane.f32.xlu0 %v659_v38  ;;  %v904_v55 = vpop.xlane.xlu1 %903 }
 0x275   :  { %v1786_v44 = vrot.slane %v904_v55, %v4802_v6  ;;  %v883_v53 = vpop.xlane.xlu0 %882  ;;  %v2522_v55 = vrot.slane %v6748_v45, %v4772_v41 }
 0x276   :  { %v1752_v19 = vrot.slane %v883_v53, %v4790_v60 }
 0x277   :  { %v1787_v3 = vsel %vm1667_vm6, %v1786_v44, %v6808_v29  ;;  %663 = vadd.xlane.f32.xlu1 %v662_v58  ;;  %v130_v29 = vld [vmem:[%s7336_s0 + $0x3b8] sm:$0xff]  ;;  %v2527_v58 = vrot.slane %v6901_v20, %v4802_v6  ;;  %v2523_v12 = vsel %vm1660_vm5, %v2522_v55, %v6606_v33 }
 0x278   :  { %v1753_v54 = vsel %vm1674_vm7, %v1752_v19, %v6812_v22  ;;  %642 = vadd.xlane.f32.xlu0 %v641_v50  ;;  %v6942_v48 = vpop.xlane.xlu1 %945  ;;  %v129_v22 = vld [vmem:[%s7336_s0 + $0x3b0] sm:$0xff]  ;;  %v689_v31 = vsel %vm331_vm0, %v130_v29, 0.0 }
 0x279   :  { %v2615_v62 = vsel %vm2614_vm9, %v1753_v54, %v6795_v15  ;;  %v6947_v5 = vpop.xlane.xlu0 %924  ;;  %v686_v15 = vsel %vm331_vm0, %v129_v22, 0.0 }
 0x27b   :  { %666 = vadd.xlane.f32.xlu1 %v665_v21 }
 0x27c   :  { %684 = vadd.xlane.f32.xlu0 %v683_v28  ;;  %v6956_v4 = vpop.xlane.xlu1 %987 }
 0x27d   :  { %v6959_v9 = vpop.xlane.xlu0 %966 }
 0x27f   :  { %690 = vadd.xlane.f32.xlu1 %v689_v31 }
 0x280   :  { %687 = vadd.xlane.f32.xlu0 %v686_v15  ;;  %v1144_v57 = vpop.xlane.xlu1 %1143 }
 0x281   :  { %v1123_v17 = vpop.xlane.xlu0 %1122 }
 0x282   :  { %v2142_v49 = vrot.slane %v1123_v17, %v4790_v60 }
 0x284   :  { %v2143_v52 = vsel %vm1674_vm7, %v2142_v49, %v6881_v27  ;;  %4361 = vadd.xlane.f32.xlu0 %v4360_v61  ;;  %v6967_v38 = vpop.xlane.xlu1 %1185  ;;  %v2600_v27 = vrot.slane %v6767_v0, %v4772_v41 }
 0x285   :  { %v2629_v43 = vsel %vm2618_vm11, %v2143_v52, %v6860_v14  ;;  %v6971_v24 = vpop.xlane.xlu0 %1164  ;;  %v2528_v14 = vsel %vm1667_vm6, %v2527_v58, %v2523_v12 }
 0x286   :  { %v2601_v33 = vsel %vm1660_vm5, %v2600_v27, %v6624_v8  ;;  %v2176_v8 = vrot.slane %v1144_v57, %v4802_v6 }
 0x287   :  { %v2606_v28 = vsel %vm1667_vm6, %v2605_v39, %v2601_v33 }
 0x288   :  { %v1384_v44 = vpop.xlane.xlu1 %1383  ;;  %v2177_v55 = vsel %vm1667_vm6, %v2176_v8, %v6877_v13 }
 0x289   :  { %v1363_v53 = vpop.xlane.xlu0 %1362  ;;  %v2566_v61 = vrot.slane %v1384_v44, %v4802_v6  ;;  %v1820_v44 = vrot.slane %v6947_v5, %v4772_v41 }
 0x28a   :  { %v2532_v50 = vrot.slane %v1363_v53, %v4790_v60 }
 0x28c   :  { %v2533_v45 = vsel %vm1674_vm7, %v2532_v50, %v2528_v14  ;;  %v907_v19 = vpop.xlane.xlu1 %906 }
 0x28d   :  { %v1791_v20 = vrot.slane %v907_v19, %v4790_v60  ;;  %v1411_v7 = vpop.xlane.xlu0 %1410  ;;  %v2638_v54 = vsel %vm7342_vm13, %v2533_v45, %v2637_v1  ;;  %v1821_v19 = vsel %vm1660_vm5, %v1820_v44, %v6830_v59  ;;  %v1854_v59 = vrot.slane %v6942_v48, %v4777_v46 }
 0x28e   :  { %v2610_v0 = vrot.slane %v1411_v7, %v4790_v60 }
 0x28f   :  { %v1792_v21 = vsel %vm1674_vm7, %v1791_v20, %v1787_v3  ;;  %v2556_v3 = vrot.slane %v6770_v51, %v4777_v46  ;;  %v1855_v48 = vsel %vm1653_vm4, %v1854_v59, %v6826_v34 }
 0x290   :  { %v2617_v63 = vsel %vm2616_vm10, %v1792_v21, %v2615_v62  ;;  %v949_v29 = vpop.xlane.xlu1 %948  ;;  %v2611_v22 = vsel %vm1674_vm7, %v2610_v0, %v2606_v28  ;;  %v2561_v62 = vrot.slane %v6917_v2, %v4772_v41 }
 0x291   :  { %4413 = vmatpush3.msk.msra.mxu0 %vm2646_vm14, %v2611_v22  ;;  %v928_v31 = vpop.xlane.xlu0 %927  ;;  %v2557_v58 = vsel %vm1653_vm4, %v2556_v3, %v6602_v26  ;;  %vm7343_vm14 = vcmask 1047559   ;;  %v1859_v8 = vrot.slane %v949_v29, %v4772_v41 }
 0x292   :  { %4414 = vmatprep.subr.mxu0 %v4430_v56  ;;  %v2562_v51 = vsel %vm1660_vm5, %v2561_v62, %v2557_v58  ;;  %v1825_v13 = vrot.slane %v928_v31, %v4802_v6 }
 0x293   :  { %v2567_v50 = vsel %vm1667_vm6, %v2566_v61, %v2562_v51 }
 0x294   :  { %v6996_v1 = vpop.xlane.xlu1 %990  ;;  %v1826_v5 = vsel %vm1667_vm6, %v1825_v13, %v1821_v19 }
 0x295   :  { %v6998_v15 = vpop.xlane.xlu0 %969  ;;  %v1927_v19 = vrot.slane %v6996_v1, %v4766_v36 }
 0x298   :  { %v1168_v17 = vpop.xlane.xlu1 %1167 }
 0x299   :  { %v1147_v49 = vpop.xlane.xlu0 %1146  ;;  %v2215_v21 = vrot.slane %v1168_v17, %v4802_v6 }
 0x29a   :  { %v2181_v52 = vrot.slane %v1147_v49, %v4790_v60 }
 0x29c   :  { %v2182_v57 = vsel %vm1674_vm7, %v2181_v52, %v2177_v55  ;;  %v1387_v53 = vpop.xlane.xlu1 %1386  ;;  %v1860_v52 = vsel %vm1660_vm5, %v1859_v8, %v1855_v48 }
 0x29d   :  { %v2571_v12 = vrot.slane %v1387_v53, %v4790_v60  ;;  %v1189_v27 = vpop.xlane.xlu0 %1188  ;;  %v2630_v2 = vsel %vm7341_vm12, %v2182_v57, %v2629_v43  ;;  %v1418_v57 = vadd.s32 1, %v4735_v16  ;;  %v1888_v53 = vrot.slane %v6959_v9, %v4766_v36 }
 0x29e   :  { %v2249_v61 = vrot.slane %v1189_v27, %v4772_v41  ;;  %v1416_v27 = vmul.u32 5, %v4735_v16 }
 0x29f   :  { %v2572_v14 = vsel %vm1674_vm7, %v2571_v12, %v2567_v50 }
 0x2a0   :  { %v952_v26 = vpop.xlane.xlu1 %951  ;;  %v2639_v39 = vsel %vm7343_vm14, %v2572_v14, %v2638_v54  ;;  %v2210_v54 = vrot.slane %v6971_v24, %v4772_v41  ;;  %v2244_v24 = vrot.slane %v6967_v38, %v4777_v46  ;;  %vm7079_vm15 = vcmp.ge.s32.totalorder %v4725_v11, %v1416_v27 }
 0x2a1   :  { %v931_v45 = vpop.xlane.xlu0 %930  ;;  %4415 = vmatpush3.msra.mxu0 %v2639_v39  ;;  %v1864_v62 = vrot.slane %v952_v26, %v4802_v6  ;;  %v1922_v39 = vrot.slane %v6956_v4, %v4763_v35 }
 0x2a2   :  { %v1830_v20 = vrot.slane %v931_v45, %v4790_v60  ;;  %4416 = vmatprep.subr.mxu0 %v4430_v56  ;;  %v2211_v31 = vsel %vm1660_vm5, %v2210_v54, %v6899_v23  ;;  %v2245_v34 = vsel %vm1653_vm4, %v2244_v24, %v6895_v42  ;;  %v1419_v42 = vmul.u32 5, %v1418_v57 }
 0x2a3   :  { %v1865_v38 = vsel %vm1667_vm6, %v1864_v62, %v1860_v52  ;;  %v2250_v44 = vsel %vm1660_vm5, %v2249_v61, %v2245_v34 }
 0x2a4   :  { %v1831_v43 = vsel %vm1674_vm7, %v1830_v20, %v1826_v5  ;;  %v7027_v7 = vpop.xlane.xlu1 %993 }
 0x2a5   :  { %v2619_v33 = vsel %vm2618_vm11, %v1831_v43, %v2617_v63  ;;  %v973_v0 = vpop.xlane.xlu0 %972  ;;  %v2216_v63 = vsel %vm1667_vm6, %v2215_v21, %v2211_v31 }
 0x2a6   :  { %v1898_v9 = vrot.slane %v973_v0, %v4772_v41 }
 0x2a8   :  { %v1192_v28 = vpop.xlane.xlu1 %1191 }
 0x2a9   :  { %v1171_v22 = vpop.xlane.xlu0 %1170  ;;  %v2254_v55 = vrot.slane %v1192_v28, %v4802_v6 }
 0x2aa   :  { %v2220_v3 = vrot.slane %v1171_v22, %v4790_v60 }
 0x2ab   :  { %v2255_v26 = vsel %vm1667_vm6, %v2254_v55, %v2250_v44 }
 0x2ac   :  { %v2221_v17 = vsel %vm1674_vm7, %v2220_v3, %v2216_v63  ;;  %v976_v49 = vpop.xlane.xlu1 %975 }
 0x2ad   :  { %v955_v23 = vpop.xlane.xlu0 %954  ;;  %v2631_v29 = vsel %vm7342_vm13, %v2221_v17, %v2630_v2  ;;  %v1893_v2 = vrot.slane %v6998_v15, %v4777_v46  ;;  %v1903_v16 = vrot.slane %v976_v49, %v4802_v6  ;;  %v1889_v15 = vsel %vm1646_vm3, %v1888_v53, %v6844_v18 }
 0x2ae   :  { %v1869_v58 = vrot.slane %v955_v23, %v4790_v60 }
 0x2af   :  { %v1894_v43 = vsel %vm1653_vm4, %v1893_v2, %v1889_v15 }
 0x2b0   :  { %v1870_v51 = vsel %vm1674_vm7, %v1869_v58, %v1865_v38  ;;  %v1195_v12 = vpop.xlane.xlu1 %1194  ;;  %v1899_v18 = vsel %vm1660_vm5, %v1898_v9, %v1894_v43 }
 0x2b1   :  { %v2259_v50 = vrot.slane %v1195_v12, %v4790_v60  ;;  %v997_v13 = vpop.xlane.xlu0 %996  ;;  %v2621_v14 = vsel %vm7341_vm12, %v1870_v51, %v2619_v33  ;;  %v1932_v33 = vrot.slane %v7027_v7, %v4777_v46  ;;  %v1923_v7 = vsel %vm1639_vm2, %v1922_v39, %v6863_v25 }
 0x2b2   :  { %v1937_v54 = vrot.slane %v997_v13, %v4772_v41  ;;  %v1904_v28 = vsel %vm1667_vm6, %v1903_v16, %v1899_v18  ;;  %v1928_v22 = vsel %vm1646_vm3, %v1927_v19, %v1923_v7 }
 0x2b3   :  { %v2260_v45 = vsel %vm1674_vm7, %v2259_v50, %v2255_v26  ;;  %v1933_v3 = vsel %vm1653_vm4, %v1932_v33, %v1928_v22 }
 0x2b4   :  { %v1000_v20 = vpop.xlane.xlu1 %999  ;;  %v2632_v5 = vsel %vm7343_vm14, %v2260_v45, %v2631_v29  ;;  %vm7088_vm14 = vcmp.lt.s32.totalorder %v4725_v11, %v1419_v42  ;;  %v1938_v25 = vsel %vm1660_vm5, %v1937_v54, %v1933_v3 }
 0x2b5   :  { %v979_v0 = vpop.xlane.xlu0 %978  ;;  %4417 = vmatpush3.msra.mxu0 %v2632_v5  ;;  %v1942_v59 = vrot.slane %v1000_v20, %v4802_v6  ;;  %vm1421_vm12 = vmand %vm7079_vm15, %vm7088_vm14 }
 0x2b6   :  { %v1908_v1 = vrot.slane %v979_v0, %v4790_v60  ;;  %4418 = vmatprep.subr.mxu0 %v4430_v56  ;;  %v1422_v23 = vsel %vm1421_vm12, 0.008, %v4430_v56 }
 0x2b7   :  { %v1943_v17 = vsel %vm1667_vm6, %v1942_v59, %v1938_v25 }
 0x2b8   :  { %v1909_v31 = vsel %vm1674_vm7, %v1908_v1, %v1904_v28  ;;  %v574_v8 = vpop.xlane.xlu1 %573 }
 0x2b9   :  { %v772_v63 = vmul.f32 0.04, %v574_v8  ;;  %v1003_v62 = vpop.xlane.xlu0 %1002  ;;  %v2623_v11 = vsel %vm7342_vm13, %v1909_v31, %v2621_v14  ;;  %vm7348_vm13 = vcmask 1047559  }
 0x2ba   :  { %v1947_v24 = vrot.slane %v1003_v62, %v4790_v60 }
 0x2bb   :  { %v3600_v49 = vmul.f32 %v772_v63, %v772_v63  ;;  %v3232_v58 = vrot.slane %v772_v63, %v4756_v32 }
 0x2bc   :  { %v580_v48 = vpop.xlane.xlu1 %579  ;;  %v1948_v61 = vsel %vm1674_vm7, %v1947_v24, %v1943_v17 }
 0x2bd   :  { %v774_v29 = vmul.f32 0.04, %v580_v48  ;;  %v577_v52 = vpop.xlane.xlu0 %576  ;;  %v2625_v55 = vsel %vm7348_vm13, %v1948_v61, %v2623_v11  ;;  %v4153_v34 = vrot.slane %v3600_v49, %v4756_v32 }
 0x2be   :  { %v773_v57 = vmul.f32 0.04, %v577_v52  ;;  %4419 = vmatpush3.msra.mxu0 %v2625_v55 }
 0x2bf   :  { %v3241_v38 = vrot.slane %v774_v29, %v4763_v35  ;;  %v3602_v53 = vmul.f32 %v774_v29, %v774_v29  ;;  %4421 = vmatmul.mubr.msk.f32.vlgmr.msra.gmra.mxu0 %vm331_vm0, %v1422_v23  ;;  %vm7349_vm0 = vcmask 1045509  }
 0x2c0   :  { %v3236_v51 = vrot.slane %v773_v57, %v4769_v37  ;;  %v3601_v12 = vmul.f32 %v773_v57, %v773_v57  ;;  %v601_v27 = vpop.xlane.xlu1 %600 }
 0x2c1   :  { %v4162_v56 = vrot.slane %v3602_v53, %v4763_v35  ;;  %v781_v2 = vmul.f32 0.04, %v601_v27  ;;  %v598_v44 = vpop.xlane.xlu0 %597 }
 0x2c2   :  { %v3237_v50 = vsel %vm1632_vm1, %v3236_v51, %v3232_v58  ;;  %v4157_v13 = vrot.slane %v3601_v12, %v4769_v37  ;;  %v780_v14 = vmul.f32 0.04, %v598_v44 }
 0x2c3   :  { %v3275_v9 = vrot.slane %v781_v2, %v4769_v37  ;;  %v3242_v26 = vsel %vm1639_vm2, %v3241_v38, %v3237_v50  ;;  %v3609_v38 = vmul.f32 %v781_v2, %v781_v2 }
 0x2c4   :  { %v4158_v42 = vsel %vm1632_vm1, %v4157_v13, %v4153_v34  ;;  %v3271_v39 = vrot.slane %v780_v14, %v4756_v32  ;;  %v604_v16 = vpop.xlane.xlu1 %603  ;;  %v3608_v53 = vmul.f32 %v780_v14, %v780_v14 }
 0x2c5   :  { %v782_v45 = vmul.f32 0.04, %v604_v16  ;;  %v7123_v15 = vsel %vm1639_vm2, %v4162_v56, %v4158_v42  ;;  %v583_v19 = vpop.xlane.xlu0 %582  ;;  %v4196_v2 = vrot.slane %v3609_v38, %v4769_v37 }
 0x2c6   :  { %v3276_v20 = vsel %vm1632_vm1, %v3275_v9, %v3271_v39  ;;  %v775_v5 = vmul.f32 0.04, %v583_v19  ;;  %v4192_v14 = vrot.slane %v3608_v53, %v4756_v32 }
 0x2c7   :  { %v3280_v43 = vrot.slane %v782_v45, %v4763_v35  ;;  %v3610_v50 = vmul.f32 %v782_v45, %v782_v45 }
 0x2c8   :  { %v3246_v33 = vrot.slane %v775_v5, %v4766_v36  ;;  %v625_v0 = vpop.xlane.xlu1 %624  ;;  %v3603_v42 = vmul.f32 %v775_v5, %v775_v5 }
 0x2c9   :  { %v3281_v4 = vsel %vm1639_vm2, %v3280_v43, %v3276_v20  ;;  %v789_v18 = vmul.f32 0.04, %v625_v0  ;;  %v622_v54 = vpop.xlane.xlu0 %621  ;;  %v4201_v20 = vrot.slane %v3610_v50, %v4763_v35 }
 0x2ca   :  { %v3247_v1 = vsel %vm1646_vm3, %v3246_v33, %v3242_v26  ;;  %v788_v21 = vmul.f32 0.04, %v622_v54  ;;  %v4167_v5 = vrot.slane %v3603_v42, %v4766_v36 }
 0x2cb   :  { %v3314_v7 = vrot.slane %v789_v18, %v4769_v37  ;;  %v3617_v54 = vmul.f32 %v789_v18, %v789_v18 }
 0x2cc   :  { %v3310_v28 = vrot.slane %v788_v21, %v4756_v32  ;;  %v607_v59 = vpop.xlane.xlu1 %606 }
 0x2cd   :  { %v783_v22 = vmul.f32 0.04, %v607_v59  ;;  %v586_v31 = vpop.xlane.xlu0 %585 }
 0x2ce   :  { %v3315_v8 = vsel %vm1632_vm1, %v3314_v7, %v3310_v28  ;;  %v776_v3 = vmul.f32 0.04, %v586_v31 }
 0x2cf   :  { %v3285_v63 = vrot.slane %v783_v22, %v4766_v36 }
 0x2d0   :  { %v3251_v62 = vrot.slane %v776_v3, %v4777_v46  ;;  %v646_v11 = vpop.xlane.xlu1 %645 }
 0x2d1   :  { %v3286_v25 = vsel %vm1646_vm3, %v3285_v63, %v3281_v4  ;;  %v628_v24 = vpop.xlane.xlu0 %627  ;;  %v7137_v49 = vmul.f32 0.04, %v646_v11  ;;  %v4197_v4 = vsel %vm1632_vm1, %v4196_v2, %v4192_v14 }
 0x2d2   :  { %v3252_v17 = vsel %vm1653_vm4, %v3251_v62, %v3247_v1  ;;  %v790_v48 = vmul.f32 0.04, %v628_v24  ;;  %v3604_v1 = vmul.f32 %v776_v3, %v776_v3  ;;  %v3611_v24 = vmul.f32 %v783_v22, %v783_v22 }
 0x2d3   :  { %v3349_v55 = vrot.slane %v7137_v49, %v4756_v32  ;;  %v4168_v3 = vsel %vm1646_vm3, %v4167_v5, %v7123_v15 }
 0x2d4   :  { %v3319_v61 = vrot.slane %v790_v48, %v4763_v35  ;;  %v589_v23 = vpop.xlane.xlu1 %588  ;;  %v4206_v50 = vrot.slane %v3611_v24, %v4766_v36 }
 0x2d5   :  { %v777_v29 = vmul.f32 0.04, %v589_v23  ;;  %v649_v52 = vpop.xlane.xlu0 %648  ;;  %v4172_v23 = vrot.slane %v3604_v1, %v4777_v46 }
 0x2d6   :  { %v3320_v58 = vsel %vm1639_vm2, %v3319_v61, %v3315_v8  ;;  %v7143_v57 = vmul.f32 0.04, %v649_v52  ;;  %v4202_v8 = vsel %vm1639_vm2, %v4201_v20, %v4197_v4  ;;  %v4235_v61 = vrot.slane %v3617_v54, %v4769_v37 }
 0x2d7   :  { %v3256_v34 = vrot.slane %v777_v29, %v4772_v41  ;;  %v4207_v54 = vsel %vm1646_vm3, %v4206_v50, %v4202_v8 }
 0x2d8   :  { %v3353_v51 = vrot.slane %v7143_v57, %v4769_v37  ;;  %v631_v12 = vpop.xlane.xlu1 %630 }
 0x2d9   :  { %v7149_v27 = vsel %vm1660_vm5, %v3256_v34, %v3252_v17  ;;  %v7151_v56 = vmul.f32 0.04, %v631_v12  ;;  %v610_v44 = vpop.xlane.xlu0 %609  ;;  %v3618_v34 = vmul.f32 %v790_v48, %v790_v48 }
 0x2da   :  { %v3354_v13 = vsel %vm1632_vm1, %v3353_v51, %v3349_v55  ;;  %v7154_v9 = vmul.f32 0.04, %v610_v44 }
 0x2db   :  { %v3324_v26 = vrot.slane %v7151_v56, %v4766_v36 }
 0x2dc   :  { %v3290_v39 = vrot.slane %v7154_v9, %v4777_v46  ;;  %v670_v16 = vpop.xlane.xlu1 %669 }
 0x2dd   :  { %v7163_v19 = vsel %vm1646_vm3, %v3324_v26, %v3320_v58  ;;  %v652_v45 = vpop.xlane.xlu0 %651  ;;  %v7167_v33 = vmul.f32 0.04, %v670_v16  ;;  %v3605_v58 = vmul.f32 %v777_v29, %v777_v29  ;;  %v4173_v26 = vsel %vm1653_vm4, %v4172_v23, %v4168_v3 }
 0x2de   :  { %v3291_v43 = vsel %vm1653_vm4, %v3290_v39, %v3286_v25  ;;  %v7169_v0 = vmul.f32 0.04, %v652_v45  ;;  %v3616_v25 = vmul.f32 %v788_v21, %v788_v21  ;;  %v4240_v45 = vrot.slane %v3618_v34, %v4763_v35 }
 0x2df   :  { %v3388_v63 = vrot.slane %v7167_v33, %v4756_v32  ;;  %v4177_v42 = vrot.slane %v3605_v58, %v4772_v41 }
 0x2e0   :  { %v3358_v7 = vrot.slane %v7169_v0, %v4763_v35  ;;  %v571_v28 = vpop.xlane.xlu1 %570  ;;  %v4231_v44 = vrot.slane %v3616_v25, %v4756_v32  ;;  %v3626_v23 = vmul.f32 %v7169_v0, %v7169_v0 }
 0x2e1   :  { %v771_v59 = vmul.f32 0.04, %v571_v28  ;;  %v673_v31 = vpop.xlane.xlu0 %672 }
 0x2e2   :  { %v3359_v62 = vsel %vm1639_vm2, %v3358_v7, %v3354_v13  ;;  %v805_v11 = vmul.f32 0.04, %v673_v31  ;;  %v7198_v13 = vmul.f32 %v7137_v49, %v7137_v49  ;;  %v3625_v49 = vmul.f32 %v7143_v57, %v7143_v57 }
 0x2e3   :  { %v3227_v17 = vrot.slane %v771_v59, %v4790_v60  ;;  %v3599_v18 = vmul.f32 %v771_v59, %v771_v59  ;;  %v4236_v4 = vsel %vm1632_vm1, %v4235_v61, %v4231_v44 }
 0x2e4   :  { %v3392_v52 = vrot.slane %v805_v11, %v4769_v37  ;;  %v613_v55 = vpop.xlane.xlu1 %612  ;;  %v4270_v57 = vrot.slane %v7198_v13, %v4756_v32  ;;  %v4241_v25 = vsel %vm1639_vm2, %v4240_v45, %v4236_v4  ;;  %v4274_v8 = vrot.slane %v3625_v49, %v4769_v37 }
 0x2e5   :  { %v3228_v38 = vsel %vm1674_vm7, %v3227_v17, %v5614_v30  ;;  %v4148_v21 = vrot.slane %v3599_v18, %v4790_v60  ;;  %v785_v22 = vmul.f32 0.04, %v613_v55  ;;  %v592_v53 = vpop.xlane.xlu0 %591  ;;  %v3612_v17 = vmul.f32 %v7154_v9, %v7154_v9 }
 0x2e6   :  { %v3431_v51 = vsel %vm2612_vm8, %v3228_v38, %v5554_v40  ;;  %v3393_v15 = vsel %vm1632_vm1, %v3392_v52, %v3388_v63  ;;  %v778_v12 = vmul.f32 0.04, %v592_v53  ;;  %v3632_v18 = vmul.f32 %v7167_v33, %v7167_v33 }
 0x2e7   :  { %v4149_v29 = vsel %vm1674_vm7, %v4148_v21, %v5622_v10  ;;  %v3295_v30 = vrot.slane %v785_v22, %v4772_v41  ;;  %v3633_v58 = vmul.f32 %v805_v11, %v805_v11  ;;  %v3613_v53 = vmul.f32 %v785_v22, %v785_v22 }
 0x2e8   :  { %v4352_v48 = vsel %vm2612_vm8, %v4149_v29, %v5561_v47  ;;  %v3261_v40 = vrot.slane %v778_v12, %v4802_v6  ;;  %v3606_v2 = vmul.f32 %v778_v12, %v778_v12  ;;  %v655_v14 = vpop.xlane.xlu1 %654  ;;  %v4211_v0 = vrot.slane %v3612_v17, %v4777_v46 }
 0x2e9   :  { %v3296_v39 = vsel %vm1660_vm5, %v3295_v30, %v3291_v43  ;;  %v799_v10 = vmul.f32 0.04, %v655_v14  ;;  %v634_v16 = vpop.xlane.xlu0 %633  ;;  %v3619_v43 = vmul.f32 %v7151_v56, %v7151_v56  ;;  %v4309_v50 = vrot.slane %v3632_v18, %v4756_v32 }
 0x2ea   :  { %v3262_v47 = vsel %vm1667_vm6, %v3261_v40, %v7149_v27  ;;  %v792_v20 = vmul.f32 0.04, %v634_v16  ;;  %v4182_v1 = vrot.slane %v3606_v2, %v4802_v6  ;;  %v4178_v27 = vsel %vm1660_vm5, %v4177_v42, %v4173_v26 }
 0x2eb   :  { %v3363_v5 = vrot.slane %v799_v10, %v4766_v36  ;;  %v4279_v16 = vrot.slane %v3626_v23, %v4763_v35  ;;  %v4216_v45 = vrot.slane %v3613_v53, %v4772_v41  ;;  %v3627_v4 = vmul.f32 %v799_v10, %v799_v10 }
 0x2ec   :  { %v3329_v7 = vrot.slane %v792_v20, %v4777_v46  ;;  %v595_v28 = vpop.xlane.xlu1 %594  ;;  %v4183_v52 = vsel %vm1667_vm6, %v4182_v1, %v4178_v27  ;;  %v3620_v30 = vmul.f32 %v792_v20, %v792_v20  ;;  %v4212_v20 = vsel %vm1653_vm4, %v4211_v0, %v4207_v54 }
 0x2ed   :  { %v3364_v59 = vsel %vm1646_vm3, %v3363_v5, %v3359_v62  ;;  %v779_v31 = vmul.f32 0.04, %v595_v28  ;;  %v676_v63 = vpop.xlane.xlu0 %675  ;;  %v4245_v62 = vrot.slane %v3619_v43, %v4766_v36  ;;  %vm7353_vm8 = vcmask 523264  }
 0x2ee   :  { %v3330_v56 = vsel %vm1653_vm4, %v3329_v7, %v7163_v19  ;;  %v806_v24 = vmul.f32 0.04, %v676_v63  ;;  %v4250_v43 = vrot.slane %v3620_v30, %v4777_v46  ;;  %v4217_v63 = vsel %vm1660_vm5, %v4216_v45, %v4212_v20 }
 0x2ef   :  { %v3266_v3 = vrot.slane %v779_v31, %v4790_v60  ;;  %v3607_v61 = vmul.f32 %v779_v31, %v779_v31 }
 0x2f0   :  { %v3397_v55 = vrot.slane %v806_v24, %v4763_v35  ;;  %v637_v19 = vpop.xlane.xlu1 %636  ;;  %v3634_v40 = vmul.f32 %v806_v24, %v806_v24 }
 0x2f1   :  { %v3267_v38 = vsel %vm1674_vm7, %v3266_v3, %v3262_v47  ;;  %v4187_v9 = vrot.slane %v3607_v61, %v4790_v60  ;;  %v793_v21 = vmul.f32 0.04, %v637_v19  ;;  %v616_v33 = vpop.xlane.xlu0 %615 }
 0x2f2   :  { %v3432_v34 = vsel %vm2614_vm9, %v3267_v38, %v3431_v51  ;;  %v3398_v12 = vsel %vm1639_vm2, %v3397_v55, %v3393_v15  ;;  %v786_v44 = vmul.f32 0.04, %v616_v33  ;;  %v4313_v51 = vrot.slane %v3633_v58, %v4769_v37 }
 0x2f3   :  { %v4188_v29 = vsel %vm1674_vm7, %v4187_v9, %v4183_v52  ;;  %v3334_v11 = vrot.slane %v793_v21, %v4772_v41  ;;  %v4246_v37 = vsel %vm1646_vm3, %v4245_v62, %v4241_v25  ;;  %v4318_v1 = vrot.slane %v3634_v40, %v4763_v35 }
 0x2f4   :  { %v7245_v13 = vsel %vm2614_vm9, %v4188_v29, %v4352_v48  ;;  %v3300_v22 = vrot.slane %v786_v44, %v4802_v6  ;;  %v679_v2 = vpop.xlane.xlu1 %678  ;;  %v3614_v14 = vmul.f32 %v786_v44, %v786_v44  ;;  %v4275_v48 = vsel %vm1632_vm1, %v4274_v8, %v4270_v57 }
 0x2f5   :  { %v3335_v15 = vsel %vm1660_vm5, %v3334_v11, %v3330_v56  ;;  %v807_v26 = vmul.f32 0.04, %v679_v2  ;;  %v658_v42 = vpop.xlane.xlu0 %657  ;;  %v4314_v27 = vsel %vm1632_vm1, %v4313_v51, %v4309_v50  ;;  %v4280_v10 = vsel %vm1639_vm2, %v4279_v16, %v4275_v48 }
 0x2f6   :  { %v3301_v49 = vsel %vm1667_vm6, %v3300_v22, %v3296_v39  ;;  %v800_v47 = vmul.f32 0.04, %v658_v42  ;;  %v4221_v39 = vrot.slane %v3614_v14, %v4802_v6  ;;  %v4284_v35 = vrot.slane %v3627_v4, %v4766_v36 }
 0x2f7   :  { %v3402_v5 = vrot.slane %v807_v26, %v4766_v36  ;;  %v3621_v56 = vmul.f32 %v793_v21, %v793_v21  ;;  %v3635_v24 = vmul.f32 %v807_v26, %v807_v26  ;;  %v4251_v18 = vsel %vm1653_vm4, %v4250_v43, %v4246_v37 }
 0x2f8   :  { %v3368_v7 = vrot.slane %v800_v47, %v4777_v46  ;;  %v640_v28 = vpop.xlane.xlu1 %639  ;;  %v4319_v3 = vsel %vm1639_vm2, %v4318_v1, %v4314_v27  ;;  %v4222_v52 = vsel %vm1667_vm6, %v4221_v39, %v4217_v63  ;;  %v3628_v55 = vmul.f32 %v800_v47, %v800_v47 }
 0x2f9   :  { %v3403_v57 = vsel %vm1646_vm3, %v3402_v5, %v3398_v12  ;;  %v794_v31 = vmul.f32 0.04, %v640_v28  ;;  %v619_v54 = vpop.xlane.xlu0 %618  ;;  %v4255_v53 = vrot.slane %v3621_v56, %v4772_v41  ;;  %v4323_v12 = vrot.slane %v3635_v24, %v4766_v36 }
 0x2fa   :  { %v3369_v25 = vsel %vm1653_vm4, %v3368_v7, %v3364_v59  ;;  %v787_v8 = vmul.f32 0.04, %v619_v54  ;;  %v4289_v22 = vrot.slane %v3628_v55, %v4777_v46  ;;  %vm4363_vm1 = vcmask 522240  }
 0x2fb   :  { %v3339_v17 = vrot.slane %v794_v31, %v4802_v6  ;;  %v3622_v38 = vmul.f32 %v794_v31, %v794_v31  ;;  %v4256_v16 = vsel %vm1660_vm5, %v4255_v53, %v4251_v18  ;;  %v4324_v47 = vsel %vm1646_vm3, %v4323_v12, %v4319_v3 }
 0x2fc   :  { %v3305_v61 = vrot.slane %v787_v8, %v4790_v60  ;;  %v3615_v62 = vmul.f32 %v787_v8, %v787_v8  ;;  %v682_v23 = vpop.xlane.xlu1 %681  ;;  %vm7350_vm2 = vcmask 1046534  }
 0x2fd   :  { %v3340_v59 = vsel %vm1667_vm6, %v3339_v17, %v3335_v15  ;;  %v808_v19 = vmul.f32 0.04, %v682_v23  ;;  %v661_v58 = vpop.xlane.xlu0 %660  ;;  %v4260_v14 = vrot.slane %v3622_v38, %v4802_v6 }
 0x2fe   :  { %v3306_v9 = vsel %vm1674_vm7, %v3305_v61, %v3301_v49  ;;  %v4226_v21 = vrot.slane %v3615_v62, %v4790_v60  ;;  %v801_v33 = vmul.f32 0.04, %v661_v58 }
 0x2ff   :  { %v3433_v44 = vsel %vm2616_vm10, %v3306_v9, %v3432_v34  ;;  %v3407_v0 = vrot.slane %v808_v19, %v4777_v46  ;;  %v3636_v29 = vmul.f32 %v808_v19, %v808_v19  ;;  %v4285_v34 = vsel %vm1646_vm3, %v4284_v35, %v4280_v10  ;;  %vm7351_vm3 = vmmov %vm7349_vm0 }
 0x300   :  { %v4227_v50 = vsel %vm1674_vm7, %v4226_v21, %v4222_v52  ;;  %v3373_v11 = vrot.slane %v801_v33, %v4772_v41  ;;  %v3629_v30 = vmul.f32 %v801_v33, %v801_v33  ;;  %v664_v40 = vpop.xlane.xlu1 %663  ;;  %v4290_v5 = vsel %vm1653_vm4, %v4289_v22, %v4285_v34 }
 0x301   :  { %v3408_v2 = vsel %vm1653_vm4, %v3407_v0, %v3403_v57  ;;  %v802_v51 = vmul.f32 0.04, %v664_v40  ;;  %v643_v15 = vpop.xlane.xlu0 %642  ;;  %v4354_v36 = vsel %vm2616_vm10, %v4227_v50, %v7245_v13  ;;  %v4328_v48 = vrot.slane %v3636_v29, %v4777_v46 }
 0x302   :  { %v3374_v26 = vsel %vm1660_vm5, %v3373_v11, %v3369_v25  ;;  %v795_v42 = vmul.f32 0.04, %v643_v15  ;;  %v4294_v20 = vrot.slane %v3629_v30, %v4772_v41  ;;  %v4261_v28 = vsel %vm1667_vm6, %v4260_v14, %v4256_v16 }
 0x303   :  { %v3378_v45 = vrot.slane %v802_v51, %v4802_v6  ;;  %v3630_v49 = vmul.f32 %v802_v51, %v802_v51  ;;  %v4329_v10 = vsel %vm1653_vm4, %v4328_v48, %v4324_v47  ;;  %vm7352_vm4 = vmmov %vm7350_vm2  ;;  %vm4391_vm10 = vcmask 39936  }
 0x304   :  { %v3344_v13 = vrot.slane %v795_v42, %v4790_v60  ;;  %v667_v4 = vpop.xlane.xlu1 %666  ;;  %v3623_v43 = vmul.f32 %v795_v42, %v795_v42  ;;  %v4295_v63 = vsel %vm1660_vm5, %v4294_v20, %v4290_v5 }
 0x305   :  { %v3379_v37 = vsel %vm1667_vm6, %v3378_v45, %v3374_v26  ;;  %v803_v1 = vmul.f32 0.04, %v667_v4  ;;  %v685_v7 = vpop.xlane.xlu0 %684  ;;  %v4299_v57 = vrot.slane %v3630_v49, %v4802_v6 }
 0x306   :  { %v3345_v27 = vsel %vm1674_vm7, %v3344_v13, %v3340_v59  ;;  %v809_v39 = vmul.f32 0.04, %v685_v7  ;;  %v4265_v56 = vrot.slane %v3623_v43, %v4790_v60 }
 0x307   :  { %v3383_v46 = vrot.slane %v803_v1, %v4790_v60  ;;  %v3631_v31 = vmul.f32 %v803_v1, %v803_v1  ;;  %v3434_v54 = vsel %vm2618_vm11, %v3345_v27, %v3433_v44  ;;  %v4300_v55 = vsel %vm1667_vm6, %v4299_v57, %v4295_v63 }
 0x308   :  { %v3412_v25 = vrot.slane %v809_v39, %v4772_v41  ;;  %v3637_v8 = vmul.f32 %v809_v39, %v809_v39  ;;  %v691_v35 = vpop.xlane.xlu1 %690  ;;  %v4266_v9 = vsel %vm1674_vm7, %v4265_v56, %v4261_v28 }
 0x309   :  { %v3384_v24 = vsel %vm1674_vm7, %v3383_v46, %v3379_v37  ;;  %v4304_v17 = vrot.slane %v3631_v31, %v4790_v60  ;;  %v688_v18 = vpop.xlane.xlu0 %687  ;;  %v811_v3 = vmul.f32 0.04, %v691_v35  ;;  %v4355_v50 = vsel %vm2618_vm11, %v4266_v9, %v4354_v36 }
 0x30a   :  { %v3413_v61 = vsel %vm1660_vm5, %v3412_v25, %v3408_v2  ;;  %v4333_v62 = vrot.slane %v3637_v8, %v4772_v41  ;;  %v810_v23 = vmul.f32 0.04, %v688_v18  ;;  %v3435_v52 = vsel %vm7349_vm0, %v3384_v24, %v3434_v54 }
 0x30b   :  { %v3422_v59 = vrot.slane %v811_v3, %v4790_v60  ;;  %v3639_v19 = vmul.f32 %v811_v3, %v811_v3  ;;  %v4305_v12 = vsel %vm1674_vm7, %v4304_v17, %v4300_v55 }
 0x30c   :  { %v3417_v58 = vrot.slane %v810_v23, %v4802_v6  ;;  %v3638_v38 = vmul.f32 %v810_v23, %v810_v23  ;;  %v4334_v21 = vsel %vm1660_vm5, %v4333_v62, %v4329_v10  ;;  %v4356_v30 = vsel %vm7351_vm3, %v4305_v12, %v4355_v50 }
 0x30d   :  { %v4343_v33 = vrot.slane %v3639_v19, %v4790_v60  ;;  %vm4368_vm5 = vcmask 520192   ;;  %v4362_v15 = vpop.xlane.xlu0 %4361 }
 0x30e   :  { %v3418_v53 = vsel %vm1667_vm6, %v3417_v58, %v3413_v61  ;;  %v4338_v41 = vrot.slane %v3638_v38, %v4802_v6 }
 0x30f   :  { %v3423_v44 = vsel %vm1674_vm7, %v3422_v59, %v3418_v53 }
 0x310   :  { %v4339_v0 = vsel %vm1667_vm6, %v4338_v41, %v4334_v21  ;;  %v3436_v29 = vsel %vm7350_vm2, %v3423_v44, %v3435_v52  ;;  %vm7354_vm6 = vmmov %vm7353_vm8 }
 0x311   :  { %v4344_v11 = vsel %vm1674_vm7, %v4343_v33, %v4339_v0  ;;  %vm7355_vm9 = vmmov %vm7354_vm6  ;;  %vm4393_vm7 = vcmask 38912  }
 0x312   :  { %v4357_v60 = vsel %vm7352_vm4, %v4344_v11, %v4356_v30 }
 0x313   :  { %v4364_v40 = vsel %vm4363_vm1, %v4357_v60, 0.0 }
 0x314   :  { %4365 = vadd.xlane.f32.xlu1 %v4364_v40 }
 0x37f   :  { %v2715_v6 = vpop.f32.mrf.mxu0 }
 0x380   :  { %v4367_v22 = vmul.f32 %v2715_v6, %v2715_v6  ;;  %4423 = vmatprep.subr.msk.mxu1 %vm7353_vm8, %v2715_v6 }
 0x381   :  { %v4422_v2 = vpop.f32.mrf.mxu0  ;;  %4424 = vmatpush3.xpose.msk.msra.mxu1 %vm7354_vm6, %v2715_v6 }
 0x382   :  { %v4369_v51 = vsel %vm4368_vm5, %v4367_v22, 0.0 }
 0x383   :  { %4370 = vadd.xlane.f32.xlu0 %v4369_v51 }
 0x384   :  { %4426 = vmatmul.mubr.msk.f32.vlgmr.msra.gmra.mxu1 %vm7355_vm9, %v3436_v29 }
 0x39d   :  { %v4366_v26 = vpop.xlane.xlu1 %4365 }
 0x40c   :  { %v4371_v36 = vpop.xlane.xlu0 %4370 }
 0x40d   :  { %v4380_v16 = vrot.slane %v4371_v36, %v4756_v32 }
 0x444   :  { %v4427_v34 = vpop.f32.mrf.mxu1 }
 0x445   :  { %v4373_v14 = vmul.f32 2.0, %v4427_v34 }
 0x446   :  { %v3511_v42 = vpop.f32.mrf.mxu1 }
 0x447   :  { %v4375_v45 = vsub.f32 %v4373_v14, %v4366_v26  ;;  %v4372_v49 = vmul.f32 2.0, %v3511_v42 }
 0x449   :  { %v4390_v47 = vsub.f32 %v4375_v45, %v4380_v16  ;;  %v4374_v48 = vsub.f32 %v4372_v49, %v4362_v15 }
 0x44b   :  { %4394 = vst.msk [vmem:[%s7338_s2 + $0x8] sm:$0x7f] %vm4393_vm7, %v4390_v47  ;;  %v4389_v20 = vsub.f32 %v4374_v48, %v4380_v16 }
 0x44d   :  { %4392 = vst.msk [vmem:[%s7338_s2] sm:$0xff] %vm4391_vm10, %v4389_v20 }

</bundles_post_ra>
